<compile_context>
chip_gen: v6e
topology: v6e:2x2x1
jax: 0.10.0
libtpu: 0.0.40
codegen_flags: <defaults>
</compile_context>

<pallas_src>
import math

import jax
import jax.numpy as jnp
from jax.experimental import pallas as pl
from jax.experimental.pallas import tpu as pltpu

# ----- module hyper-parameters (deterministic, synthetic) --------------------
N_COMPS = 1
N_CHANNELS = 4
N_DIMS = 32
SIGMA_INIT = 0.1
KEEP_CENTER = False        # exercise the mean-subtract / add-back path
# int_param=False, activated_channel=None, f_Li=identity, mask=ones

# matrix_exp: exp(A) = (P(A / 2^s))^(2^s), P = degree-10 Taylor evaluated with
# Paterson-Stockmeyer.  With s=3 the scaled ||t||_inf ~ 0.6 for this config and
# the order-10 truncation error (~theta^11/11!) is ~1e-10, far below f32
# round-off even after 2^3 amplification.
EXPM_SQUARINGS = 3          # >= 1 (last squaring is folded into the matvec)
EXPM_TAYLOR_ORDER = 10      # fixed by the Paterson-Stockmeyer chunking below

_FACT_INV = [1.0 / math.factorial(k) for k in range(EXPM_TAYLOR_ORDER + 1)]


# ----- in-kernel helpers ------------------------------------------------------
def _bmm(a, b):
    """Batched (tb, n, n) @ (tb, n, n) on the MXU with f32 accumulation."""
    return jnp.einsum('bij,bjk->bik', a, b, preferred_element_type=jnp.float32)


def _expm_half(t):
    """Return q = P(t)^(2^(s-1)) where P is the degree-10 Taylor polynomial.

    t is the ALREADY SCALED Lie-algebra element (the 2^-s factor is folded into
    the weights outside the kernel).  The caller applies q twice to the vector,
    which supplies the final squaring.  5 + (s-1) batched matmuls total.
    """
    n = t.shape[-1]
    eye = jnp.eye(n, dtype=jnp.float32)

    # Paterson-Stockmeyer, chunk size 3:
    #   P(t) = b0 + b1*t3 + b2*t3^2 + b3*t3^3
    t2 = _bmm(t, t)
    t3 = _bmm(t2, t)
    b0 = eye + t + _FACT_INV[2] * t2
    b1 = _FACT_INV[3] * eye + _FACT_INV[4] * t + _FACT_INV[5] * t2
    b2 = _FACT_INV[6] * eye + _FACT_INV[7] * t + _FACT_INV[8] * t2
    b3 = _FACT_INV[9] * eye + _FACT_INV[10] * t
    p = _bmm(b3, t3) + b2            # Horner in t3: 3 matmuls
    p = _bmm(p, t3) + b1
    p = _bmm(p, t3) + b0

    for _ in range(EXPM_SQUARINGS - 1):   # static, unrolled (2 steps)
        p = _bmm(p, p)
    return p


# ----- fused forward kernel ---------------------------------------------------
def _lie_forward_kernel(x_ref, xmean_ref, z_ref, li_ref, o_ref):
    """t = sum_c z[:,c]*Li_scaled[c]; q = expm_half(t); out = q@(q@xc) + mean."""
    x = x_ref[...]                                # (tb, n)
    m = xmean_ref[...]                            # (1, n) (zeros if keep_center)
    xc = x - m
    z = z_ref[...]                                # (tb, C)
    li = li_ref[...]                              # (C, n, n), sigma & 2^-s folded

    # Lie-algebra element (pre-scaled): K = n_channels = 4 contraction done as
    # a VPU FMA (an MXU pass here would use 4/256 of the systolic depth).
    n_ch = li_ref.shape[0]
    t = z[:, 0:1][:, :, None] * li[0]             # (tb,1,1)*(n,n) -> (tb,n,n)
    for c in range(1, n_ch):                      # static, n_ch == 4
        t = t + z[:, c:c + 1][:, :, None] * li[c]

    q = _expm_half(t)                             # (tb, n, n) = exp(A)^(1/2)

    # Group action with the last squaring folded in:
    #   out = q @ (q @ xc) + mean
    # Each matvec is a batched VPU broadcast-multiply + lane reduce; the result
    # is written with ONE full-tile store (no per-row masked vst.msk stores).
    v = jnp.sum(q * xc[:, None, :], axis=-1)      # (tb, n)
    o_ref[...] = (jnp.sum(q * v[:, None, :], axis=-1) + m).astype(o_ref.dtype)


# ----- wrappers ---------------------------------------------------------------
def _round_up(v, m):
    return ((v + m - 1) // m) * m


def _lie_apply_2d(x2, xmean2, z_raw, li_eff, batch_block):
    b, n = x2.shape
    c = li_eff.shape[0]

    # Batch tile: cap at ~256 so the live expm intermediates (~40 KiB / elem)
    # stay ~10 MiB and fit the scoped-VMEM defaults on v5e/v6e/v7x; pad the
    # batch up to a multiple of tb (never fall back to tb = B for large B).
    tb_cap = 256 if batch_block is None else max(8, _round_up(batch_block, 8))
    tb = min(tb_cap, _round_up(b, 8))
    b_pad = _round_up(b, tb)
    if b_pad != b:
        x2 = jnp.pad(x2, ((0, b_pad - b), (0, 0)))
        z_raw = jnp.pad(z_raw, ((0, b_pad - b), (0, 0)))

    out = pl.pallas_call(
        _lie_forward_kernel,
        out_shape=jax.ShapeDtypeStruct((b_pad, n), x2.dtype),
        grid=(b_pad // tb,),
        in_specs=[
            pl.BlockSpec((tb, n), lambda i: (i, 0)),        # x
            pl.BlockSpec((1, n), lambda i: (0, 0)),         # hoisted batch mean
            pl.BlockSpec((tb, c), lambda i: (i, 0)),        # raw coefficients
            pl.BlockSpec((c, n, n), lambda i: (0, 0, 0)),   # sigma+scale folded Li
        ],
        out_specs=pl.BlockSpec((tb, n), lambda i: (i, 0)),
        compiler_params=pltpu.CompilerParams(
            dimension_semantics=("parallel",)),
    )(x2, xmean2, z_raw, li_eff)
    return out[:b]


def lie_generator_forward(x, z_raw, sigma, Li, *, keep_center=KEEP_CENTER,
                          batch_block=None):
    """Full LieGenerator.forward for the single learnable '(1, 4, 32)' component.

    mask == ones, f_Li == identity, int_param == False and n_comps == 1, so the
    padding / stack / sum in sample_group_element is the identity.  z_raw plays
    the role of torch.randn in sample_coefficient (coef_dist == 'normal').
    """
    # Weight-only precompute (done once, outside the kernel):
    #   A/2^s = z_raw . ((sigma @ Li) * 2^-s)
    li_eff = jnp.einsum('cj,jkl->ckl', sigma, Li,
                        precision=jax.lax.Precision.HIGHEST)
    li_eff = li_eff * (2.0 ** -EXPM_SQUARINGS)

    out_shape = x.shape
    if x.ndim == 3:                    # (B, seq, feat) path: flatten to (B, -1)
        # NOTE: the original module requires seq*feat == n_dims here (g is
        # (B, n_dims, n_dims) and is applied to the flattened vector).
        assert x.shape[1] * x.shape[2] == Li.shape[-1], (
            "3-D input must flatten to n_dims to match the group representation")
        bsz = x.shape[0]
        if keep_center:
            xmean2 = jnp.zeros((1, x.shape[1] * x.shape[2]), x.dtype)
        else:
            xm = jnp.mean(x, axis=(0, 1), keepdims=True)    # dims except last
            xmean2 = jnp.broadcast_to(xm, (1,) + x.shape[1:]).reshape(1, -1)
        x2 = x.reshape(bsz, -1)
    else:
        if keep_center:
            xmean2 = jnp.zeros((1, x.shape[-1]), x.dtype)
        else:
            xmean2 = jnp.mean(x, axis=0, keepdims=True)     # hoisted, grid-safe
        x2 = x

    out2 = _lie_apply_2d(x2, xmean2, z_raw, li_eff, batch_block)
    return out2.reshape(out_shape)


# ----- demo -------------------------------------------------------------------
if __name__ == "__main__":
    key = jax.random.PRNGKey(0)
    k_x, k_li, k_z = jax.random.split(key, 3)

    B = 2
    x = jax.random.normal(k_x, (B, N_DIMS), dtype=jnp.float32)
    Li = jax.random.normal(k_li, (N_CHANNELS, N_DIMS, N_DIMS), dtype=jnp.float32)
    sigma = jnp.eye(N_CHANNELS, dtype=jnp.float32) * SIGMA_INIT
    z_raw = jax.random.normal(k_z, (B, N_CHANNELS), dtype=jnp.float32)

    out = jax.block_until_ready(lie_generator_forward(x, z_raw, sigma, Li))

    # pure-JAX reference of the same forward (full-precision matmuls so the
    # reference expm is itself accurate on TPU).
    with jax.default_matmul_precision("float32"):
        x_mean = jnp.mean(x, axis=0, keepdims=True)
        xc = x - x_mean
        z = z_raw @ sigma
        A_ref = jnp.einsum('bj,jkl->bkl', z, Li)
        g_ref = jax.vmap(jax.scipy.linalg.expm)(A_ref)
        ref = jnp.einsum('bij,bj->bi', g_ref, xc) + x_mean
    ref = jax.block_until_ready(ref)

    assert out.shape == x.shape and out.dtype == x.dtype
    max_err = float(jnp.max(jnp.abs(out - ref)))
    assert jnp.allclose(out, ref, atol=2e-3, rtol=2e-3), max_err

    print("KERNEL_OK")
</pallas_src>

<mosaic_0001>
module attributes {stable_mosaic.version = 11 : i64} {
  func.func @_lie_forward_kernel(%arg0: i32, %arg1: memref<8x32xf32, #tpu.memory_space<vmem>>, %arg2: memref<1x32xf32, #tpu.memory_space<vmem>>, %arg3: memref<8x4xf32, #tpu.memory_space<vmem>>, %arg4: memref<4x32x32xf32, #tpu.memory_space<vmem>>, %arg5: memref<8x32xf32, #tpu.memory_space<vmem>>) attributes {dimension_semantics = [#tpu.dimension_semantics<parallel>], iteration_bounds = array<i64: 1>, scalar_prefetch = 0 : i64, scratch_operands = 0 : i64, tpu.core_type = #tpu.core_type<tc>, window_params = [{transform_indices = @transform_0, window_bounds = array<i64: 8, 32>}, {pipeline_mode = #tpu.pipeline_mode<synchronous>, transform_indices = @transform_1, window_bounds = array<i64: 1, 32>}, {transform_indices = @transform_2, window_bounds = array<i64: 8, 4>}, {pipeline_mode = #tpu.pipeline_mode<synchronous>, transform_indices = @transform_3, window_bounds = array<i64: 4, 32, 32>}, {transform_indices = @transform_4, window_bounds = array<i64: 8, 32>}]} {
    %c0 = arith.constant 0 : index
    %c0_0 = arith.constant 0 : index
    %0 = vector.load %arg1[%c0, %c0_0] : memref<8x32xf32, #tpu.memory_space<vmem>>, vector<8x32xf32>
    %c0_1 = arith.constant 0 : index
    %c0_2 = arith.constant 0 : index
    %1 = vector.load %arg2[%c0_1, %c0_2] : memref<1x32xf32, #tpu.memory_space<vmem>>, vector<1x32xf32>
    %2 = vector.broadcast %1 : vector<1x32xf32> to vector<8x32xf32>
    %3 = arith.subf %0, %2 : vector<8x32xf32>
    %c0_3 = arith.constant 0 : index
    %c0_4 = arith.constant 0 : index
    %4 = vector.load %arg3[%c0_3, %c0_4] : memref<8x4xf32, #tpu.memory_space<vmem>>, vector<8x4xf32>
    %c0_5 = arith.constant 0 : index
    %c0_6 = arith.constant 0 : index
    %c0_7 = arith.constant 0 : index
    %5 = vector.load %arg4[%c0_5, %c0_6, %c0_7] : memref<4x32x32xf32, #tpu.memory_space<vmem>>, vector<4x32x32xf32>
    %6 = vector.extract_strided_slice %4 {offsets = [0, 0], sizes = [8, 1], strides = [1, 1]} : vector<8x4xf32> to vector<8x1xf32>
    %7 = vector.shape_cast %6 : vector<8x1xf32> to vector<8x1x1xf32>
    %8 = vector.extract_strided_slice %5 {offsets = [0, 0, 0], sizes = [1, 32, 32], strides = [1, 1, 1]} : vector<4x32x32xf32> to vector<1x32x32xf32>
    %9 = vector.shape_cast %8 : vector<1x32x32xf32> to vector<32x32xf32>
    %10 = vector.shape_cast %9 : vector<32x32xf32> to vector<1x32x32xf32>
    %11 = vector.broadcast %7 : vector<8x1x1xf32> to vector<8x32x32xf32>
    %12 = vector.broadcast %10 : vector<1x32x32xf32> to vector<8x32x32xf32>
    %13 = arith.mulf %11, %12 : vector<8x32x32xf32>
    %14 = vector.extract_strided_slice %4 {offsets = [0, 1], sizes = [8, 1], strides = [1, 1]} : vector<8x4xf32> to vector<8x1xf32>
    %15 = vector.shape_cast %14 : vector<8x1xf32> to vector<8x1x1xf32>
    %16 = vector.extract_strided_slice %5 {offsets = [1, 0, 0], sizes = [1, 32, 32], strides = [1, 1, 1]} : vector<4x32x32xf32> to vector<1x32x32xf32>
    %17 = vector.shape_cast %16 : vector<1x32x32xf32> to vector<32x32xf32>
    %18 = vector.shape_cast %17 : vector<32x32xf32> to vector<1x32x32xf32>
    %19 = vector.broadcast %15 : vector<8x1x1xf32> to vector<8x32x32xf32>
    %20 = vector.broadcast %18 : vector<1x32x32xf32> to vector<8x32x32xf32>
    %21 = arith.mulf %19, %20 : vector<8x32x32xf32>
    %22 = arith.addf %13, %21 : vector<8x32x32xf32>
    %23 = vector.extract_strided_slice %4 {offsets = [0, 2], sizes = [8, 1], strides = [1, 1]} : vector<8x4xf32> to vector<8x1xf32>
    %24 = vector.shape_cast %23 : vector<8x1xf32> to vector<8x1x1xf32>
    %25 = vector.extract_strided_slice %5 {offsets = [2, 0, 0], sizes = [1, 32, 32], strides = [1, 1, 1]} : vector<4x32x32xf32> to vector<1x32x32xf32>
    %26 = vector.shape_cast %25 : vector<1x32x32xf32> to vector<32x32xf32>
    %27 = vector.shape_cast %26 : vector<32x32xf32> to vector<1x32x32xf32>
    %28 = vector.broadcast %24 : vector<8x1x1xf32> to vector<8x32x32xf32>
    %29 = vector.broadcast %27 : vector<1x32x32xf32> to vector<8x32x32xf32>
    %30 = arith.mulf %28, %29 : vector<8x32x32xf32>
    %31 = arith.addf %22, %30 : vector<8x32x32xf32>
    %32 = vector.extract_strided_slice %4 {offsets = [0, 3], sizes = [8, 1], strides = [1, 1]} : vector<8x4xf32> to vector<8x1xf32>
    %33 = vector.shape_cast %32 : vector<8x1xf32> to vector<8x1x1xf32>
    %34 = vector.extract_strided_slice %5 {offsets = [3, 0, 0], sizes = [1, 32, 32], strides = [1, 1, 1]} : vector<4x32x32xf32> to vector<1x32x32xf32>
    %35 = vector.shape_cast %34 : vector<1x32x32xf32> to vector<32x32xf32>
    %36 = vector.shape_cast %35 : vector<32x32xf32> to vector<1x32x32xf32>
    %37 = vector.broadcast %33 : vector<8x1x1xf32> to vector<8x32x32xf32>
    %38 = vector.broadcast %36 : vector<1x32x32xf32> to vector<8x32x32xf32>
    %39 = arith.mulf %37, %38 : vector<8x32x32xf32>
    %40 = arith.addf %31, %39 : vector<8x32x32xf32>
    %41 = tpu.iota {dimensions = array<i32: 0>} : vector<32x32xi32>
    %42 = tpu.iota {dimensions = array<i32: 1>} : vector<32x32xi32>
    %c0_i32 = arith.constant 0 : i32
    %43 = vector.broadcast %c0_i32 : i32 to vector<32x32xi32>
    %44 = arith.addi %41, %43 : vector<32x32xi32>
    %45 = arith.cmpi eq, %44, %42 : vector<32x32xi32>
    %46 = arith.extui %45 : vector<32x32xi1> to vector<32x32xi32>
    %47 = arith.sitofp %46 : vector<32x32xi32> to vector<32x32xf32>
    "tpu.trace_start"() <{level = 10 : i32, message = "bij,bjk->bik"}> : () -> ()
    %cst = arith.constant dense<0.000000e+00> : vector<8x32x32xf32>
    %48 = tpu.matmul %40, %40, %cst {dimension_numbers = #tpu.dot_dimension_numbers<[2], [1], [1], [2], [0, 0, 0, 1, 1, 2], [0], [0]>} : vector<8x32x32xf32>, vector<8x32x32xf32>, vector<8x32x32xf32> -> vector<8x32x32xf32>
    %cst_8 = arith.constant dense<0.000000e+00> : vector<8x32x32xf32>
    %49 = tpu.matmul %48, %40, %cst_8 {dimension_numbers = #tpu.dot_dimension_numbers<[2], [1], [1], [2], [0, 0, 0, 1, 1, 2], [0], [0]>} : vector<8x32x32xf32>, vector<8x32x32xf32>, vector<8x32x32xf32> -> vector<8x32x32xf32>
    "tpu.trace_stop"() : () -> ()
    %50 = vector.shape_cast %47 : vector<32x32xf32> to vector<1x32x32xf32>
    %51 = vector.broadcast %50 : vector<1x32x32xf32> to vector<8x32x32xf32>
    %52 = arith.addf %51, %40 : vector<8x32x32xf32>
    %cst_9 = arith.constant 5.000000e-01 : f32
    %53 = vector.broadcast %cst_9 : f32 to vector<8x32x32xf32>
    %54 = arith.mulf %53, %48 : vector<8x32x32xf32>
    %55 = arith.addf %52, %54 : vector<8x32x32xf32>
    %cst_10 = arith.constant 0.166666672 : f32
    %56 = vector.broadcast %cst_10 : f32 to vector<32x32xf32>
    %57 = arith.mulf %56, %47 : vector<32x32xf32>
    %cst_11 = arith.constant 0.0416666679 : f32
    %58 = vector.broadcast %cst_11 : f32 to vector<8x32x32xf32>
    %59 = arith.mulf %58, %40 : vector<8x32x32xf32>
    %60 = vector.shape_cast %57 : vector<32x32xf32> to vector<1x32x32xf32>
    %61 = vector.broadcast %60 : vector<1x32x32xf32> to vector<8x32x32xf32>
    %62 = arith.addf %61, %59 : vector<8x32x32xf32>
    %cst_12 = arith.constant 0.00833333377 : f32
    %63 = vector.broadcast %cst_12 : f32 to vector<8x32x32xf32>
    %64 = arith.mulf %63, %48 : vector<8x32x32xf32>
    %65 = arith.addf %62, %64 : vector<8x32x32xf32>
    %cst_13 = arith.constant 0.00138888892 : f32
    %66 = vector.broadcast %cst_13 : f32 to vector<32x32xf32>
    %67 = arith.mulf %66, %47 : vector<32x32xf32>
    %cst_14 = arith.constant 1.98412701E-4 : f32
    %68 = vector.broadcast %cst_14 : f32 to vector<8x32x32xf32>
    %69 = arith.mulf %68, %40 : vector<8x32x32xf32>
    %70 = vector.shape_cast %67 : vector<32x32xf32> to vector<1x32x32xf32>
    %71 = vector.broadcast %70 : vector<1x32x32xf32> to vector<8x32x32xf32>
    %72 = arith.addf %71, %69 : vector<8x32x32xf32>
    %cst_15 = arith.constant 2.48015876E-5 : f32
    %73 = vector.broadcast %cst_15 : f32 to vector<8x32x32xf32>
    %74 = arith.mulf %73, %48 : vector<8x32x32xf32>
    %75 = arith.addf %72, %74 : vector<8x32x32xf32>
    %cst_16 = arith.constant 2.75573188E-6 : f32
    %76 = vector.broadcast %cst_16 : f32 to vector<32x32xf32>
    %77 = arith.mulf %76, %47 : vector<32x32xf32>
    %cst_17 = arith.constant 2.755732E-7 : f32
    %78 = vector.broadcast %cst_17 : f32 to vector<8x32x32xf32>
    %79 = arith.mulf %78, %40 : vector<8x32x32xf32>
    %80 = vector.shape_cast %77 : vector<32x32xf32> to vector<1x32x32xf32>
    %81 = vector.broadcast %80 : vector<1x32x32xf32> to vector<8x32x32xf32>
    %82 = arith.addf %81, %79 : vector<8x32x32xf32>
    "tpu.trace_start"() <{level = 10 : i32, message = "bij,bjk->bik"}> : () -> ()
    %cst_18 = arith.constant dense<0.000000e+00> : vector<8x32x32xf32>
    %83 = tpu.matmul %82, %49, %cst_18 {dimension_numbers = #tpu.dot_dimension_numbers<[2], [1], [1], [2], [0, 0, 0, 1, 1, 2], [0], [0]>} : vector<8x32x32xf32>, vector<8x32x32xf32>, vector<8x32x32xf32> -> vector<8x32x32xf32>
    "tpu.trace_stop"() : () -> ()
    %84 = arith.addf %83, %75 : vector<8x32x32xf32>
    "tpu.trace_start"() <{level = 10 : i32, message = "bij,bjk->bik"}> : () -> ()
    %cst_19 = arith.constant dense<0.000000e+00> : vector<8x32x32xf32>
    %85 = tpu.matmul %84, %49, %cst_19 {dimension_numbers = #tpu.dot_dimension_numbers<[2], [1], [1], [2], [0, 0, 0, 1, 1, 2], [0], [0]>} : vector<8x32x32xf32>, vector<8x32x32xf32>, vector<8x32x32xf32> -> vector<8x32x32xf32>
    "tpu.trace_stop"() : () -> ()
    %86 = arith.addf %85, %65 : vector<8x32x32xf32>
    "tpu.trace_start"() <{level = 10 : i32, message = "bij,bjk->bik"}> : () -> ()
    %cst_20 = arith.constant dense<0.000000e+00> : vector<8x32x32xf32>
    %87 = tpu.matmul %86, %49, %cst_20 {dimension_numbers = #tpu.dot_dimension_numbers<[2], [1], [1], [2], [0, 0, 0, 1, 1, 2], [0], [0]>} : vector<8x32x32xf32>, vector<8x32x32xf32>, vector<8x32x32xf32> -> vector<8x32x32xf32>
    "tpu.trace_stop"() : () -> ()
    %88 = arith.addf %87, %55 : vector<8x32x32xf32>
    "tpu.trace_start"() <{level = 10 : i32, message = "bij,bjk->bik"}> : () -> ()
    %cst_21 = arith.constant dense<0.000000e+00> : vector<8x32x32xf32>
    %89 = tpu.matmul %88, %88, %cst_21 {dimension_numbers = #tpu.dot_dimension_numbers<[2], [1], [1], [2], [0, 0, 0, 1, 1, 2], [0], [0]>} : vector<8x32x32xf32>, vector<8x32x32xf32>, vector<8x32x32xf32> -> vector<8x32x32xf32>
    %cst_22 = arith.constant dense<0.000000e+00> : vector<8x32x32xf32>
    %90 = tpu.matmul %89, %89, %cst_22 {dimension_numbers = #tpu.dot_dimension_numbers<[2], [1], [1], [2], [0, 0, 0, 1, 1, 2], [0], [0]>} : vector<8x32x32xf32>, vector<8x32x32xf32>, vector<8x32x32xf32> -> vector<8x32x32xf32>
    "tpu.trace_stop"() : () -> ()
    %91 = vector.shape_cast %3 : vector<8x32xf32> to vector<8x1x32xf32>
    %92 = vector.broadcast %91 : vector<8x1x32xf32> to vector<8x32x32xf32>
    %93 = arith.mulf %90, %92 : vector<8x32x32xf32>
    %cst_23 = arith.constant dense<0.000000e+00> : vector<8x32xf32>
    %94 = vector.multi_reduction <add>, %93, %cst_23 [2] : vector<8x32x32xf32> to vector<8x32xf32>
    %95 = vector.shape_cast %94 : vector<8x32xf32> to vector<8x1x32xf32>
    %96 = vector.broadcast %95 : vector<8x1x32xf32> to vector<8x32x32xf32>
    %97 = arith.mulf %90, %96 : vector<8x32x32xf32>
    %cst_24 = arith.constant dense<0.000000e+00> : vector<8x32xf32>
    %98 = vector.multi_reduction <add>, %97, %cst_24 [2] : vector<8x32x32xf32> to vector<8x32xf32>
    %99 = vector.broadcast %1 : vector<1x32xf32> to vector<8x32xf32>
    %100 = arith.addf %98, %99 : vector<8x32xf32>
    %c0_25 = arith.constant 0 : index
    %c0_26 = arith.constant 0 : index
    %101 = vector.load %arg5[%c0_25, %c0_26] : memref<8x32xf32, #tpu.memory_space<vmem>>, vector<8x32xf32>
    tpu.vector_store %arg5[%c0_25, %c0_26], %100 {strides = array<i32>} : memref<8x32xf32, #tpu.memory_space<vmem>>, vector<8x32xf32>,
    return
  }
  func.func @transform_0(%arg0: i32) -> (i32, i32) {
    %c0_i32 = arith.constant 0 : i32
    %c0_i32_0 = arith.constant 0 : i32
    return %arg0, %c0_i32 : i32, i32
  }
  func.func @transform_1(%arg0: i32) -> (i32, i32) {
    %c0_i32 = arith.constant 0 : i32
    %c0_i32_0 = arith.constant 0 : i32
    %c0_i32_1 = arith.constant 0 : i32
    return %c0_i32, %c0_i32_0 : i32, i32
  }
  func.func @transform_2(%arg0: i32) -> (i32, i32) {
    %c0_i32 = arith.constant 0 : i32
    %c0_i32_0 = arith.constant 0 : i32
    return %arg0, %c0_i32 : i32, i32
  }
  func.func @transform_3(%arg0: i32) -> (i32, i32, i32) {
    %c0_i32 = arith.constant 0 : i32
    %c0_i32_0 = arith.constant 0 : i32
    %c0_i32_1 = arith.constant 0 : i32
    %c0_i32_2 = arith.constant 0 : i32
    return %c0_i32, %c0_i32_0, %c0_i32_1 : i32, i32, i32
  }
  func.func @transform_4(%arg0: i32) -> (i32, i32) {
    %c0_i32 = arith.constant 0 : i32
    %c0_i32_0 = arith.constant 0 : i32
    return %arg0, %c0_i32 : i32, i32
  }
}

</mosaic_0001>

<bundles_post_ra>
// kernel: tpu_custom_call.1
= control target key start
LH: loop header
LB: loop body
LE: loop exit
PB: predicated region body
PF: predicated region fallthrough
CT: control target
= control target key end

     0   :  { %9 = vsyncpa [#allocation3], 0  ;;  %s10780_s0 = inlined_call_operand.vmem [shape: f32[8,32], index: 0, kind: input, shape index: {}]   ;;  %s10781_s1 = inlined_call_operand.vmem [shape: f32[1,32], index: 1, kind: input, shape index: {}]   ;;  %s10782_s2 = inlined_call_operand.vmem [shape: f32[8,4], index: 2, kind: input, shape index: {}]   ;;  %s10783_s3 = inlined_call_operand.hbm [shape: f32[4,32,32], index: 3, kind: input, shape index: {}]   ;;  %s10784_s4 = inlined_call_operand.hbm [shape: f32[8,32], index: 4, kind: output, shape index: {}]  }
   0x1   :  { %10 = vsyncpa [#allocation4], 0  ;;  %s8869_s15 = smov [#allocation2]  }
   0x2   :  { %s22_s16 = sshll.u32 %s8869_s15, 4  ;;  %s23_s16 = int_to_ptr.vmem [resolvable:$true] %s22_s16 }
   0x3   :  { %s8833_s17 = scalar_lea.vmem %s23_s16, 2048  ;;  %p8838_p1 = scmp.lt.s32.totalorder %s23_s16, %s23_s16 }
   0x4   :  { %p8834_p0 = scmp.ne.s32.totalorder %s23_s16, %s8833_s17  ;;  %p8839_p2 = scmp.lt.s32.totalorder %s8833_s17, %s8833_s17 }
   0x6   :  { %p8840_p3 = por %p8839_p2, %p8838_p1 }
   0x8   :  { %p8841_p4 = pnand %p8840_p3, %p8834_p0 }
   0xa   :  { %8844 = shalt.err (!%p8841_p4)
}
   0xb   :  { %s8870_s18 = smov 128   ;;  %s8871_s19 = smov 8  }
   0xc   :  { %28 = dma.hbm_to_vmem [thread:$0]  %s10783_s3, 2048, %s23_s16, [#allocation3], %s8870_s18, %s8870_s18, %s8871_s19  }
   0xd   :  { %8865 = dma.done.wait [#allocation3], 2048  }
   0xe   :  { %8866 = vsyncadd [#allocation3], 4294965248  ;;  %v10785_v0 = vlaneseq  ;;  %v8872_v1 = vmov 2   ;;  %v8873_v2 = vmov 0   ;;  %v8874_v3 = vmov 1966171168  }
   0xf   :  { %8799 = vset.pattern.permute.xlu1 %v8872_v1  ;;  %8797 = vset.pattern.permute.xlu0 %v8873_v2  ;;  %v61_v4 = vunpack.c.l.s4 %v8874_v3  ;;  %v41_v8 = vld [vmem:[%s10782_s2] sm:$0xff]  ;;  %v8875_v17 = vmov 3   ;;  %v8876_v18 = vmov 1   ;;  %v8956_v36 = vld [vmem:[#allocation2 + $0x8] sm:$0xff]  ;;  %v8958_v37 = vld [vmem:[#allocation2 + $0x10] sm:$0xff]  ;;  %vm511_vm0 = vcmask 261120  }
  0x10   :  { %v8910_v5 = vshrl.u32 %v10785_v0, 7  ;;  %v59_v16 = vcombine.high %v41_v8, %v41_v8  ;;  %v8954_v35 = vld [vmem:[#allocation2] sm:$0xff]  ;;  %v8960_v38 = vld [vmem:[#allocation2 + $0x18] sm:$0xff]  ;;  %v8964_v40 = vld [vmem:[#allocation2 + $0x28] sm:$0xff]  ;;  %vm6631_vm5 = vcmask 130112   ;;  %vm6645_vm6 = vcmask 261312  }
  0x11   :  { %v62_v6 = vunpack.c.0.s8 %v61_v4  ;;  %v8962_v39 = vld [vmem:[#allocation2 + $0x20] sm:$0xff]  ;;  %v8966_v41 = vld [vmem:[#allocation2 + $0x30] sm:$0xff]  ;;  %v8968_v42 = vld [vmem:[#allocation2 + $0x38] sm:$0xff]  ;;  %vm6638_vm7 = vcmask 195712   ;;  %vm6780_vm8 = vcmask 1041409   ;;  %vm6781_vm9 = vcmask 1042434  }
  0x12   :  { %10956 = vst [vmem:[#allocation8_spill] sm:$0xff] %v8910_v5  ;;  %v8920_v10 = vsub.s32 0, %v8910_v5  ;;  %v8970_v43 = vld [vmem:[#allocation2 + $0x40] sm:$0xff]  ;;  %v8972_v44 = vld [vmem:[#allocation2 + $0x50] sm:$0xff]  ;;  %v8974_v45 = vld [vmem:[#allocation2 + $0x58] sm:$0xff]  ;;  %vm6783_vm10 = vcmask 1043459  }
  0x13   :  { %v8913_v7 = vsub.s32 %v62_v6, %v8910_v5  ;;  %v8980_v52 = vld [vmem:[#allocation2 + $0x48] sm:$0xff]  ;;  %v8982_v53 = vld [vmem:[#allocation2 + $0x60] sm:$0xff]  ;;  %v8991_v61 = vld [vmem:[#allocation2 + $0x78] sm:$0xff]  ;;  %vm6785_vm11 = vcmask 1044484   ;;  %vm6787_vm12 = vcmask 1045509   ;;  %vm6789_vm13 = vcmask 1046534  }
  0x14   :  { %10958 = vst [vmem:[#allocation10_spill] sm:$0xff] %v8920_v10  ;;  %v8994_v4 = vld [vmem:[#allocation2 + $0x70] sm:$0xff]  ;;  %vm6791_vm14 = vcmask 1047559  }
  0x15   :  { %10957 = vst [vmem:[#allocation9_spill] sm:$0xff] %v8913_v7  ;;  %v66_v9 = vrot.slane %v41_v8, %v8913_v7  ;;  %v73_v22 = vrot.slane %v59_v16, %v8913_v7 }
  0x17   :  { %v82_v11 = vrot.slane %v66_v9, %v8913_v7  ;;  %v74_v13 = vcombine.high %v66_v9, %v66_v9  ;;  %v89_v24 = vrot.slane %v73_v22, %v8913_v7  ;;  %v75_v26 = vcombine.high %v73_v22, %v73_v22 }
  0x19   :  { %v111_v12 = vrot.slane %v82_v11, %v8920_v10  ;;  %v104_v14 = vcombine.high %v82_v11, %v82_v11  ;;  %v96_v15 = vrot.slane %v74_v13, %v8913_v7  ;;  %v127_v25 = vrot.slane %v89_v24, %v8920_v10 }
  0x1a   :  { %v103_v27 = vrot.slane %v75_v26, %v8913_v7  ;;  %v105_v31 = vcombine.high %v89_v24, %v89_v24 }
  0x1b   :  { %301 = vperm.xlu1 %8799, %v111_v12   ;;  %141 = vperm.xlu0 %8797, %v111_v12   ;;  %v119_v19 = vrot.slane %v104_v14, %v8920_v10  ;;  %v115_v20 = vrot.slane %v96_v15, %v8920_v10  ;;  %v106_v21 = vcombine.high %v96_v15, %v96_v15  ;;  %v9000_v15 = vld [vmem:[#allocation2 + $0x68] sm:$0xff] }
  0x1c   :  { %v107_v28 = vcombine.high %v103_v27, %v103_v27  ;;  %v131_v29 = vrot.slane %v103_v27, %v8920_v10  ;;  %v135_v32 = vrot.slane %v105_v31, %v8920_v10 }
  0x1d   :  { %v123_v23 = vrot.slane %v106_v21, %v8920_v10 }
  0x1e   :  { %v139_v30 = vrot.slane %v107_v28, %v8920_v10 }
  0x1f   :  { %8800 = vset.pattern.permute.xlu1 %v8875_v17  ;;  %8798 = vset.pattern.permute.xlu0 %v8876_v18 }
  0x20   :  { %397 = vperm.xlu1 %8800, %v111_v12   ;;  %205 = vperm.xlu0 %8798, %v111_v12  }
  0x24   :  { %8801 = vset.pattern.permute.xlu1 %v8873_v2  ;;  %8804 = vset.pattern.permute.xlu0 %v8873_v2 }
  0x25   :  { %149 = vperm.xlu0 %8804, %v119_v19   ;;  %145 = vperm.xlu1 %8801, %v115_v20  }
  0x29   :  { %8807 = vset.pattern.permute.xlu0 %v8876_v18  ;;  %8802 = vset.pattern.permute.xlu1 %v8876_v18 }
  0x2a   :  { %209 = vperm.xlu1 %8802, %v115_v20   ;;  %217 = vperm.xlu0 %8807, %v123_v23  }
  0x2e   :  { %8803 = vset.pattern.permute.xlu1 %v8875_v17  ;;  %221 = vperm.xlu0 %8807, %v127_v25  }
  0x2f   :  { %401 = vperm.xlu1 %8803, %v115_v20  }
  0x32   :  { %8811 = vset.pattern.permute.xlu0 %v8872_v1 }
  0x33   :  { %8805 = vset.pattern.permute.xlu1 %v8876_v18  ;;  %305 = vperm.xlu0 %8811, %v115_v20  }
  0x34   :  { %213 = vperm.xlu1 %8805, %v119_v19  }
  0x37   :  { %317 = vperm.xlu0 %8811, %v127_v25  }
  0x38   :  { %8806 = vset.pattern.permute.xlu1 %v8873_v2 }
  0x39   :  { %153 = vperm.xlu1 %8806, %v123_v23  }
  0x3b   :  { %8813 = vset.pattern.permute.xlu0 %v8875_v17 }
  0x3c   :  { %405 = vperm.xlu0 %8813, %v119_v19  }
  0x3d   :  { %8808 = vset.pattern.permute.xlu1 %v8872_v1 }
  0x3e   :  { %309 = vperm.xlu1 %8808, %v119_v19  }
  0x40   :  { %417 = vperm.xlu0 %8813, %v131_v29  }
  0x42   :  { %313 = vperm.xlu1 %8808, %v123_v23  }
  0x44   :  { %8818 = vset.pattern.permute.xlu0 %v8873_v2 }
  0x45   :  { %169 = vperm.xlu0 %8818, %v139_v30  }
  0x46   :  { %8809 = vset.pattern.permute.xlu1 %v8875_v17 }
  0x47   :  { %409 = vperm.xlu1 %8809, %v123_v23  }
  0x49   :  { %8820 = vset.pattern.permute.xlu0 %v8872_v1 }
  0x4a   :  { %329 = vperm.xlu0 %8820, %v139_v30  }
  0x4b   :  { %8810 = vset.pattern.permute.xlu1 %v8873_v2 }
  0x4c   :  { %157 = vperm.xlu1 %8810, %v127_v25  }
  0x4e   :  { %8822 = vset.pattern.permute.xlu0 %v8873_v2 }
  0x50   :  { %161 = vperm.xlu1 %8810, %v131_v29  }
  0x54   :  { %8812 = vset.pattern.permute.xlu1 %v8876_v18 }
  0x55   :  { %225 = vperm.xlu1 %8812, %v131_v29  }
  0x59   :  { %8814 = vset.pattern.permute.xlu1 %v8872_v1 }
  0x5a   :  { %321 = vperm.xlu1 %8814, %v131_v29  }
  0x5e   :  { %8815 = vset.pattern.permute.xlu1 %v8875_v17 }
  0x5f   :  { %413 = vperm.xlu1 %8815, %v127_v25  }
  0x63   :  { %8816 = vset.pattern.permute.xlu1 %v8873_v2 }
  0x64   :  { %165 = vperm.xlu1 %8816, %v135_v32  }
  0x68   :  { %8817 = vset.pattern.permute.xlu1 %v8876_v18 }
  0x69   :  { %229 = vperm.xlu1 %8817, %v135_v32  }
  0x6d   :  { %233 = vperm.xlu1 %8817, %v139_v30  }
  0x71   :  { %8819 = vset.pattern.permute.xlu1 %v8872_v1 }
  0x72   :  { %325 = vperm.xlu1 %8819, %v135_v32  }
  0x76   :  { %8821 = vset.pattern.permute.xlu1 %v8875_v17 }
  0x77   :  { %421 = vperm.xlu1 %8821, %v135_v32  }
  0x7b   :  { %425 = vperm.xlu1 %8821, %v139_v30  }
  0x7f   :  { %8823 = vset.pattern.permute.xlu1 %v8873_v2 }
  0x96   :  { %v302_v33 = vpop.permute.xlu1 %301  ;;  %v142_v34 = vpop.permute.xlu0 %141 }
  0x97   :  { %v172_v46 = vmul.f32 %v142_v34, %v8954_v35  ;;  %v173_v47 = vmul.f32 %v142_v34, %v8956_v36  ;;  %v174_v48 = vmul.f32 %v142_v34, %v8958_v37  ;;  %v175_v49 = vmul.f32 %v142_v34, %v8960_v38 }
  0x98   :  { %v332_v58 = vmul.f32 %v302_v33, %v8970_v43  ;;  %v334_v59 = vmul.f32 %v302_v33, %v8972_v44  ;;  %v335_v60 = vmul.f32 %v302_v33, %v8974_v45  ;;  %v333_v3 = vmul.f32 %v302_v33, %v8980_v52 }
  0x9b   :  { %v398_v50 = vpop.permute.xlu1 %397  ;;  %v206_v51 = vpop.permute.xlu0 %205 }
  0x9c   :  { %v236_v54 = vmul.f32 %v206_v51, %v8962_v39  ;;  %v237_v55 = vmul.f32 %v206_v51, %v8964_v40  ;;  %v238_v56 = vmul.f32 %v206_v51, %v8966_v41  ;;  %v239_v57 = vmul.f32 %v206_v51, %v8968_v42 }
  0x9d   :  { %v428_v6 = vmul.f32 %v398_v50, %v8982_v53  ;;  %v431_v11 = vmul.f32 %v398_v50, %v8991_v61  ;;  %v430_v16 = vmul.f32 %v398_v50, %v8994_v4  ;;  %v429_v20 = vmul.f32 %v398_v50, %v9000_v15 }
  0x9e   :  { %v268_v62 = vadd.f32 %v236_v54, %v172_v46  ;;  %v269_v63 = vadd.f32 %v237_v55, %v173_v47  ;;  %v270_v1 = vadd.f32 %v238_v56, %v174_v48  ;;  %v271_v2 = vadd.f32 %v239_v57, %v175_v49 }
  0xa0   :  { %v146_v8 = vpop.permute.xlu1 %145  ;;  %v8997_v9 = vpop.permute.xlu0 %149  ;;  %v364_v12 = vadd.f32 %v332_v58, %v268_v62  ;;  %v366_v13 = vadd.f32 %v334_v59, %v270_v1  ;;  %v367_v14 = vadd.f32 %v335_v60, %v271_v2  ;;  %v365_v17 = vadd.f32 %v333_v3, %v269_v63 }
  0xa1   :  { %v176_v30 = vmul.f32 %v146_v8, %v8954_v35  ;;  %v178_v31 = vmul.f32 %v146_v8, %v8958_v37  ;;  %v179_v32 = vmul.f32 %v146_v8, %v8960_v38  ;;  %v177_v34 = vmul.f32 %v146_v8, %v8956_v36 }
  0xa2   :  { %v9003_v18 = vadd.f32 %v428_v6, %v364_v12  ;;  %v9005_v19 = vadd.f32 %v431_v11, %v367_v14  ;;  %v9008_v21 = vadd.f32 %v430_v16, %v366_v13  ;;  %v9016_v24 = vadd.f32 %v429_v20, %v365_v17 }
  0xa3   :  { %v180_v11 = vmul.f32 %v8997_v9, %v8954_v35  ;;  %v183_v12 = vmul.f32 %v8997_v9, %v8960_v38 }
  0xa4   :  { %10959 = vst [vmem:[#allocation11_spill] sm:$0xff] %v9003_v18  ;;  %10960 = vst [vmem:[#allocation12_spill] sm:$0xff] %v9008_v21  ;;  %8003 = vmatprep.subr.mxu0 %v9005_v19  ;;  %8011 = vmatprep.mubr.msk.f32.mxu0 %vm511_vm0, %v9003_v18 }
  0xa5   :  { %v210_v22 = vpop.permute.xlu1 %209  ;;  %v9013_v23 = vpop.permute.xlu0 %217  ;;  %8004 = vmatpush3.msra.mxu0 %v9005_v19  ;;  %10961 = vst [vmem:[#allocation13_spill] sm:$0xff] %v9016_v24 }
  0xa6   :  { %8005 = vmatprep.subr.mxu0 %v9008_v21  ;;  %v240_v26 = vmul.f32 %v210_v22, %v8962_v39  ;;  %v242_v27 = vmul.f32 %v210_v22, %v8966_v41  ;;  %v243_v28 = vmul.f32 %v210_v22, %v8968_v42  ;;  %v241_v33 = vmul.f32 %v210_v22, %v8964_v40 }
  0xa7   :  { %8006 = vmatpush3.msra.mxu0 %v9008_v21  ;;  %v182_v22 = vmul.f32 %v8997_v9, %v8958_v37 }
  0xa8   :  { %8007 = vmatprep.subr.mxu0 %v9016_v24  ;;  %v272_v46 = vadd.f32 %v240_v26, %v176_v30  ;;  %v274_v47 = vadd.f32 %v242_v27, %v178_v31  ;;  %v275_v48 = vadd.f32 %v243_v28, %v179_v32  ;;  %v273_v57 = vadd.f32 %v241_v33, %v177_v34 }
  0xa9   :  { %v9021_v25 = vpop.permute.xlu0 %221  ;;  %8008 = vmatpush3.msra.mxu0 %v9016_v24 }
  0xaa   :  { %v402_v29 = vpop.permute.xlu1 %401  ;;  %8009 = vmatprep.subr.mxu0 %v9003_v18 }
  0xab   :  { %8010 = vmatpush3.msra.mxu0 %v9003_v18  ;;  %v432_v58 = vmul.f32 %v402_v29, %v8982_v53  ;;  %v435_v59 = vmul.f32 %v402_v29, %v8991_v61  ;;  %v434_v2 = vmul.f32 %v402_v29, %v8994_v4  ;;  %v433_v14 = vmul.f32 %v402_v29, %v9000_v15 }
  0xac   :  { %8012 = vmatmul.mubr.msk.f32.vlgmr.msra.gmra.mxu0 %vm511_vm0, %v9016_v24  ;;  %v181_v29 = vmul.f32 %v8997_v9, %v8956_v36 }
  0xad   :  { %8014 = vmatprep.mubr.msk.f32.mxu0 %vm511_vm0, %v9008_v21 }
  0xae   :  { %v306_v49 = vpop.permute.xlu0 %305 }
  0xaf   :  { %v336_v50 = vmul.f32 %v306_v49, %v8970_v43  ;;  %v337_v51 = vmul.f32 %v306_v49, %v8980_v52  ;;  %v338_v54 = vmul.f32 %v306_v49, %v8972_v44  ;;  %v339_v55 = vmul.f32 %v306_v49, %v8974_v45  ;;  %v214_v56 = vpop.permute.xlu1 %213 }
  0xb0   :  { %8015 = vmatmul.mubr.msk.f32.gmra.mxu0 %vm511_vm0, %v9005_v19  ;;  %v244_v17 = vmul.f32 %v214_v56, %v8962_v39  ;;  %v247_v20 = vmul.f32 %v214_v56, %v8968_v42  ;;  %v246_v27 = vmul.f32 %v214_v56, %v8966_v41  ;;  %v245_v30 = vmul.f32 %v214_v56, %v8964_v40 }
  0xb1   :  { %v368_v60 = vadd.f32 %v336_v50, %v272_v46  ;;  %v370_v62 = vadd.f32 %v338_v54, %v274_v47  ;;  %v371_v63 = vadd.f32 %v339_v55, %v275_v48  ;;  %v369_v3 = vadd.f32 %v337_v51, %v273_v57 }
  0xb2   :  { %v9046_v1 = vpop.permute.xlu0 %317  ;;  %v276_v31 = vadd.f32 %v244_v17, %v180_v11  ;;  %v279_v32 = vadd.f32 %v247_v20, %v183_v12  ;;  %v248_v50 = vmul.f32 %v9013_v23, %v8962_v39  ;;  %v278_v51 = vadd.f32 %v246_v27, %v182_v22 }
  0xb3   :  { %v9049_v6 = vadd.f32 %v432_v58, %v368_v60  ;;  %v9051_v8 = vadd.f32 %v435_v59, %v371_v63  ;;  %v9058_v16 = vadd.f32 %v434_v2, %v370_v62  ;;  %v9068_v26 = vadd.f32 %v433_v14, %v369_v3 }
  0xb4   :  { %v154_v13 = vpop.permute.xlu1 %153  ;;  %v251_v54 = vmul.f32 %v9013_v23, %v8968_v42  ;;  %v277_v55 = vadd.f32 %v245_v30, %v181_v29  ;;  %v250_v20 = vmul.f32 %v9013_v23, %v8966_v41  ;;  %v249_v30 = vmul.f32 %v9013_v23, %v8964_v40 }
  0xb5   :  { %10962 = vst [vmem:[#allocation14_spill] sm:$0xff] %v9058_v16  ;;  %8017 = vmatprep.subr.mxu1 %v9051_v8  ;;  %8025 = vmatprep.mubr.msk.f32.mxu1 %vm511_vm0, %v9049_v6  ;;  %v184_v58 = vmul.f32 %v154_v13, %v8954_v35  ;;  %v187_v59 = vmul.f32 %v154_v13, %v8960_v38 }
  0xb6   :  { %8018 = vmatpush3.msra.mxu1 %v9051_v8  ;;  %v186_v22 = vmul.f32 %v154_v13, %v8958_v37 }
  0xb7   :  { %8019 = vmatprep.subr.mxu1 %v9058_v16  ;;  %v406_v28 = vpop.permute.xlu0 %405  ;;  %v280_v27 = vadd.f32 %v248_v50, %v184_v58 }
  0xb8   :  { %8020 = vmatpush3.msra.mxu1 %v9058_v16  ;;  %v436_v34 = vmul.f32 %v406_v28, %v8982_v53  ;;  %v439_v46 = vmul.f32 %v406_v28, %v8991_v61  ;;  %v438_v62 = vmul.f32 %v406_v28, %v8994_v4  ;;  %v437_v3 = vmul.f32 %v406_v28, %v9000_v15 }
  0xb9   :  { %v310_v33 = vpop.permute.xlu1 %309  ;;  %8021 = vmatprep.subr.mxu1 %v9068_v26  ;;  %v283_v28 = vadd.f32 %v251_v54, %v187_v59 }
  0xba   :  { %v340_v47 = vmul.f32 %v310_v33, %v8970_v43  ;;  %v341_v48 = vmul.f32 %v310_v33, %v8980_v52  ;;  %v342_v49 = vmul.f32 %v310_v33, %v8972_v44  ;;  %v343_v9 = vmul.f32 %v310_v33, %v8974_v45  ;;  %8022 = vmatpush3.msra.mxu1 %v9068_v26 }
  0xbb   :  { %8023 = vmatprep.subr.mxu1 %v9049_v6 }
  0xbc   :  { %v372_v56 = vadd.f32 %v340_v47, %v276_v31  ;;  %v375_v57 = vadd.f32 %v343_v9, %v279_v32  ;;  %8024 = vmatpush3.msra.mxu1 %v9049_v6  ;;  %v374_v60 = vadd.f32 %v342_v49, %v278_v51  ;;  %v373_v2 = vadd.f32 %v341_v48, %v277_v55 }
  0xbd   :  { %v314_v63 = vpop.permute.xlu1 %313  ;;  %8026 = vmatmul.mubr.msk.f32.vlgmr.msra.gmra.mxu1 %vm511_vm0, %v9068_v26  ;;  %v185_v31 = vmul.f32 %v154_v13, %v8956_v36  ;;  %v282_v9 = vadd.f32 %v250_v20, %v186_v22  ;;  %v252_v20 = vmul.f32 %v9021_v25, %v8962_v39  ;;  %v253_v22 = vmul.f32 %v9021_v25, %v8964_v40 }
  0xbe   :  { %v9096_v11 = vadd.f32 %v436_v34, %v372_v56  ;;  %v9098_v12 = vadd.f32 %v439_v46, %v375_v57  ;;  %8028 = vmatprep.mubr.msk.f32.mxu1 %vm511_vm0, %v9058_v16  ;;  %v344_v14 = vmul.f32 %v314_v63, %v8970_v43  ;;  %v347_v17 = vmul.f32 %v314_v63, %v8974_v45 }
  0xbf   :  { %v9110_v29 = vadd.f32 %v438_v62, %v374_v60  ;;  %v9117_v32 = vadd.f32 %v437_v3, %v373_v2  ;;  %v346_v33 = vmul.f32 %v314_v63, %v8972_v44  ;;  %v345_v23 = vmul.f32 %v314_v63, %v8980_v52 }
  0xc0   :  { %10963 = vst [vmem:[#allocation15_spill] sm:$0xff] %v9096_v11  ;;  %10964 = vst [vmem:[#allocation16_spill] sm:$0xff] %v9098_v12  ;;  %8031 = vmatprep.subr.mxu0 %v9098_v12  ;;  %8039 = vmatprep.mubr.msk.f32.mxu0 %vm511_vm0, %v9096_v11  ;;  %v376_v46 = vadd.f32 %v344_v14, %v280_v27  ;;  %v379_v47 = vadd.f32 %v347_v17, %v283_v28  ;;  %v418_v17 = vpop.permute.xlu0 %417 }
  0xc1   :  { %10965 = vst [vmem:[#allocation17_spill] sm:$0xff] %v9110_v29  ;;  %8029 = vmatmul.mubr.msk.f32.gmra.mxu1 %vm511_vm0, %v9051_v8  ;;  %10966 = vst [vmem:[#allocation18_spill] sm:$0xff] %v9117_v32  ;;  %8032 = vmatpush3.msra.mxu0 %v9098_v12  ;;  %v281_v54 = vadd.f32 %v249_v30, %v185_v31  ;;  %v378_v55 = vadd.f32 %v346_v33, %v282_v9 }
  0xc2   :  { %v410_v34 = vpop.permute.xlu1 %409  ;;  %8033 = vmatprep.subr.mxu0 %v9110_v29  ;;  %v254_v27 = vmul.f32 %v9021_v25, %v8966_v41  ;;  %v255_v30 = vmul.f32 %v9021_v25, %v8968_v42  ;;  %v451_v5 = vmul.f32 %v418_v17, %v8991_v61 }
  0xc3   :  { %v440_v48 = vmul.f32 %v410_v34, %v8982_v53  ;;  %v443_v49 = vmul.f32 %v410_v34, %v8991_v61  ;;  %v442_v13 = vmul.f32 %v410_v34, %v8994_v4  ;;  %8034 = vmatpush3.msra.mxu0 %v9110_v29  ;;  %v441_v56 = vmul.f32 %v410_v34, %v9000_v15 }
  0xc4   :  { %8035 = vmatprep.subr.mxu0 %v9117_v32  ;;  %v377_v58 = vadd.f32 %v345_v23, %v281_v54 }
  0xc5   :  { %v9127_v50 = vadd.f32 %v440_v48, %v376_v46  ;;  %v9129_v51 = vadd.f32 %v443_v49, %v379_v47  ;;  %8036 = vmatpush3.msra.mxu0 %v9117_v32  ;;  %v9136_v59 = vadd.f32 %v442_v13, %v378_v55  ;;  %v348_v46 = vmul.f32 %v9046_v1, %v8970_v43 }
  0xc6   :  { %8037 = vmatprep.subr.mxu0 %v9096_v11  ;;  %v9144_v60 = vadd.f32 %v441_v56, %v377_v58  ;;  %v448_v49 = vmul.f32 %v418_v17, %v8982_v53 }
  0xc7   :  { %10967 = vst [vmem:[#allocation19_spill] sm:$0xff] %v9127_v50  ;;  %10968 = vst [vmem:[#allocation20_spill] sm:$0xff] %v9129_v51  ;;  %8045 = vmatprep.subr.mxu1 %v9129_v51  ;;  %v158_v57 = vpop.permute.xlu1 %157  ;;  %8038 = vmatpush3.msra.mxu0 %v9096_v11 }
  0xc8   :  { %10969 = vst [vmem:[#allocation21_spill] sm:$0xff] %v9136_v59  ;;  %8053 = vmatprep.mubr.msk.f32.mxu1 %vm511_vm0, %v9127_v50  ;;  %8040 = vmatmul.mubr.msk.f32.vlgmr.msra.gmra.mxu0 %vm511_vm0, %v9117_v32  ;;  %10970 = vst [vmem:[#allocation22_spill] sm:$0xff] %v9144_v60  ;;  %v188_v2 = vmul.f32 %v158_v57, %v8954_v35  ;;  %v191_v31 = vmul.f32 %v158_v57, %v8960_v38 }
  0xc9   :  { %8046 = vmatpush3.msra.mxu1 %v9129_v51  ;;  %8042 = vmatprep.mubr.msk.f32.mxu0 %vm511_vm0, %v9110_v29  ;;  %v190_v47 = vmul.f32 %v158_v57, %v8958_v37 }
  0xca   :  { %8047 = vmatprep.subr.mxu1 %v9136_v59  ;;  %v284_v9 = vadd.f32 %v252_v20, %v188_v2  ;;  %v287_v10 = vadd.f32 %v255_v30, %v191_v31  ;;  %v189_v2 = vmul.f32 %v158_v57, %v8956_v36  ;;  %v350_v20 = vmul.f32 %v9046_v1, %v8972_v44 }
  0xcb   :  { %8048 = vmatpush3.msra.mxu1 %v9136_v59  ;;  %v162_v62 = vpop.permute.xlu1 %161  ;;  %v450_v30 = vmul.f32 %v418_v17, %v8994_v4  ;;  %v286_v31 = vadd.f32 %v254_v27, %v190_v47 }
  0xcc   :  { %8049 = vmatprep.subr.mxu1 %v9144_v60  ;;  %8043 = vmatmul.mubr.msk.f32.gmra.mxu0 %vm511_vm0, %v9098_v12  ;;  %v192_v33 = vmul.f32 %v162_v62, %v8954_v35  ;;  %v194_v34 = vmul.f32 %v162_v62, %v8958_v37  ;;  %v195_v48 = vmul.f32 %v162_v62, %v8960_v38 }
  0xcd   :  { %8050 = vmatpush3.msra.mxu1 %v9144_v60  ;;  %v193_v7 = vmul.f32 %v162_v62, %v8956_v36 }
  0xce   :  { %8051 = vmatprep.subr.mxu1 %v9127_v50 }
  0xcf   :  { %8052 = vmatpush3.msra.mxu1 %v9127_v50 }
  0xd0   :  { %8054 = vmatmul.mubr.msk.f32.vlgmr.msra.gmra.mxu1 %vm511_vm0, %v9144_v60  ;;  %v226_v63 = vpop.permute.xlu1 %225 }
  0xd1   :  { %8056 = vmatprep.mubr.msk.f32.mxu1 %vm511_vm0, %v9136_v59  ;;  %v256_v3 = vmul.f32 %v226_v63, %v8962_v39  ;;  %v258_v14 = vmul.f32 %v226_v63, %v8966_v41  ;;  %v259_v28 = vmul.f32 %v226_v63, %v8968_v42  ;;  %v257_v25 = vmul.f32 %v226_v63, %v8964_v40 }
  0xd3   :  { %v288_v23 = vadd.f32 %v256_v3, %v192_v33  ;;  %v290_v13 = vadd.f32 %v258_v14, %v194_v34  ;;  %v291_v55 = vadd.f32 %v259_v28, %v195_v48  ;;  %v351_v28 = vmul.f32 %v9046_v1, %v8974_v45 }
  0xd4   :  { %8057 = vmatmul.mubr.msk.f32.gmra.mxu1 %vm511_vm0, %v9129_v51  ;;  %v289_v33 = vadd.f32 %v257_v25, %v193_v7  ;;  %v380_v48 = vadd.f32 %v348_v46, %v284_v9 }
  0xd5   :  { %v322_v54 = vpop.permute.xlu1 %321 }
  0xd6   :  { %v352_v56 = vmul.f32 %v322_v54, %v8970_v43  ;;  %v354_v58 = vmul.f32 %v322_v54, %v8972_v44  ;;  %v355_v0 = vmul.f32 %v322_v54, %v8974_v45  ;;  %v353_v50 = vmul.f32 %v322_v54, %v8980_v52 }
  0xd8   :  { %v384_v63 = vadd.f32 %v352_v56, %v288_v23  ;;  %v386_v3 = vadd.f32 %v354_v58, %v290_v13  ;;  %v387_v14 = vadd.f32 %v355_v0, %v291_v55  ;;  %v385_v57 = vadd.f32 %v353_v50, %v289_v33  ;;  %v170_v58 = vpop.permute.xlu0 %169 }
  0xd9   :  { %v383_v23 = vadd.f32 %v351_v28, %v287_v10  ;;  %v285_v55 = vadd.f32 %v253_v22, %v189_v2  ;;  %v349_v10 = vmul.f32 %v9046_v1, %v8980_v52  ;;  %v382_v22 = vadd.f32 %v350_v20, %v286_v31 }
  0xda   :  { %v9195_v62 = vadd.f32 %v448_v49, %v384_v63  ;;  %v9197_v34 = vadd.f32 %v451_v5, %v387_v14  ;;  %v414_v54 = vpop.permute.xlu1 %413  ;;  %v9201_v56 = vadd.f32 %v450_v30, %v386_v3  ;;  %v449_v5 = vmul.f32 %v418_v17, %v9000_v15 }
  0xdb   :  { %v444_v0 = vmul.f32 %v414_v54, %v8982_v53  ;;  %v447_v13 = vmul.f32 %v414_v54, %v8991_v61  ;;  %v446_v7 = vmul.f32 %v414_v54, %v8994_v4  ;;  %v445_v46 = vmul.f32 %v414_v54, %v9000_v15 }
  0xdc   :  { %10971 = vst [vmem:[#allocation23_spill] sm:$0xff] %v9195_v62  ;;  %10972 = vst [vmem:[#allocation24_spill] sm:$0xff] %v9197_v34  ;;  %8073 = vmatprep.subr.mxu1 %v9197_v34  ;;  %8081 = vmatprep.mubr.msk.f32.mxu1 %vm511_vm0, %v9195_v62  ;;  %v9217_v47 = vadd.f32 %v449_v5, %v385_v57  ;;  %v381_v49 = vadd.f32 %v349_v10, %v285_v55  ;;  %v330_v14 = vpop.permute.xlu0 %329 }
  0xdd   :  { %10973 = vst [vmem:[#allocation25_spill] sm:$0xff] %v9201_v56  ;;  %v9208_v27 = vadd.f32 %v444_v0, %v380_v48  ;;  %v9210_v50 = vadd.f32 %v447_v13, %v383_v23  ;;  %8074 = vmatpush3.msra.mxu1 %v9197_v34  ;;  %v9222_v9 = vadd.f32 %v446_v7, %v382_v22 }
  0xde   :  { %8075 = vmatprep.subr.mxu1 %v9201_v56  ;;  %10976 = vst [vmem:[#allocation28_spill] sm:$0xff] %v9217_v47  ;;  %v9227_v1 = vadd.f32 %v445_v46, %v381_v49  ;;  %v200_v3 = vmul.f32 %v170_v58, %v8954_v35  ;;  %v202_v33 = vmul.f32 %v170_v58, %v8958_v37 }
  0xdf   :  { %10974 = vst [vmem:[#allocation26_spill] sm:$0xff] %v9208_v27  ;;  %10975 = vst [vmem:[#allocation27_spill] sm:$0xff] %v9210_v50  ;;  %8059 = vmatprep.subr.mxu0 %v9210_v50  ;;  %8067 = vmatprep.mubr.msk.f32.mxu0 %vm511_vm0, %v9208_v27  ;;  %v166_v17 = vpop.permute.xlu1 %165  ;;  %v203_v30 = vmul.f32 %v170_v58, %v8960_v38  ;;  %v360_v55 = vmul.f32 %v330_v14, %v8970_v43 }
  0xe0   :  { %10977 = vst [vmem:[#allocation29_spill] sm:$0xff] %v9222_v9  ;;  %8076 = vmatpush3.msra.mxu1 %v9201_v56  ;;  %8060 = vmatpush3.msra.mxu0 %v9210_v50  ;;  %10978 = vst [vmem:[#allocation30_spill] sm:$0xff] %v9227_v1  ;;  %v196_v48 = vmul.f32 %v166_v17, %v8954_v35  ;;  %v198_v0 = vmul.f32 %v166_v17, %v8958_v37 }
  0xe1   :  { %8077 = vmatprep.subr.mxu1 %v9217_v47  ;;  %8061 = vmatprep.subr.mxu0 %v9222_v9  ;;  %v199_v13 = vmul.f32 %v166_v17, %v8960_v38  ;;  %v197_v5 = vmul.f32 %v166_v17, %v8956_v36  ;;  %v363_v35 = vmul.f32 %v330_v14, %v8974_v45 }
  0xe2   :  { %8078 = vmatpush3.msra.mxu1 %v9217_v47  ;;  %8062 = vmatpush3.msra.mxu0 %v9222_v9 }
  0xe3   :  { %8079 = vmatprep.subr.mxu1 %v9195_v62  ;;  %8063 = vmatprep.subr.mxu0 %v9227_v1 }
  0xe4   :  { %8080 = vmatpush3.msra.mxu1 %v9195_v62  ;;  %v230_v25 = vpop.permute.xlu1 %229  ;;  %8064 = vmatpush3.msra.mxu0 %v9227_v1 }
  0xe5   :  { %8082 = vmatmul.mubr.msk.f32.vlgmr.msra.gmra.mxu1 %vm511_vm0, %v9217_v47  ;;  %8065 = vmatprep.subr.mxu0 %v9208_v27  ;;  %v260_v63 = vmul.f32 %v230_v25, %v8962_v39  ;;  %v262_v20 = vmul.f32 %v230_v25, %v8966_v41  ;;  %v263_v28 = vmul.f32 %v230_v25, %v8968_v42 }
  0xe6   :  { %8084 = vmatprep.mubr.msk.f32.mxu1 %vm511_vm0, %v9201_v56  ;;  %8066 = vmatpush3.msra.mxu0 %v9208_v27  ;;  %v261_v10 = vmul.f32 %v230_v25, %v8964_v40 }
  0xe7   :  { %8068 = vmatmul.mubr.msk.f32.vlgmr.msra.gmra.mxu0 %vm511_vm0, %v9227_v1  ;;  %v292_v22 = vadd.f32 %v260_v63, %v196_v48  ;;  %v295_v46 = vadd.f32 %v263_v28, %v199_v13 }
  0xe8   :  { %v234_v2 = vpop.permute.xlu1 %233  ;;  %8070 = vmatprep.mubr.msk.f32.mxu0 %vm511_vm0, %v9222_v9 }
  0xe9   :  { %8085 = vmatmul.mubr.msk.f32.gmra.mxu1 %vm511_vm0, %v9197_v34  ;;  %v264_v54 = vmul.f32 %v234_v2, %v8962_v39  ;;  %v267_v57 = vmul.f32 %v234_v2, %v8968_v42  ;;  %v294_v39 = vadd.f32 %v262_v20, %v198_v0  ;;  %v266_v42 = vmul.f32 %v234_v2, %v8966_v41 }
  0xea   :  { %v201_v20 = vmul.f32 %v170_v58, %v8956_v36  ;;  %v265_v41 = vmul.f32 %v234_v2, %v8964_v40  ;;  %v361_v58 = vmul.f32 %v330_v14, %v8980_v52 }
  0xeb   :  { %8071 = vmatmul.mubr.msk.f32.gmra.mxu0 %vm511_vm0, %v9210_v50  ;;  %v296_v37 = vadd.f32 %v264_v54, %v200_v3  ;;  %v299_v62 = vadd.f32 %v267_v57, %v203_v30  ;;  %v298_v48 = vadd.f32 %v266_v42, %v202_v33  ;;  %v362_v54 = vmul.f32 %v330_v14, %v8972_v44 }
  0xed   :  { %v326_v31 = vpop.permute.xlu1 %325  ;;  %v392_v57 = vadd.f32 %v360_v55, %v296_v37 }
  0xee   :  { %v356_v23 = vmul.f32 %v326_v31, %v8970_v43  ;;  %v359_v7 = vmul.f32 %v326_v31, %v8974_v45  ;;  %v358_v49 = vmul.f32 %v326_v31, %v8972_v44  ;;  %v357_v38 = vmul.f32 %v326_v31, %v8980_v52 }
  0xef   :  { %v293_v45 = vadd.f32 %v261_v10, %v197_v5 }
  0xf0   :  { %v388_v43 = vadd.f32 %v356_v23, %v292_v22  ;;  %v391_v56 = vadd.f32 %v359_v7, %v295_v46  ;;  %v390_v28 = vadd.f32 %v358_v49, %v294_v39  ;;  %v395_v23 = vadd.f32 %v363_v35, %v299_v62  ;;  %v10992_v46 = vld [vmem:[#allocation19_spill] sm:$0xff] }
  0xf1   :  { %v389_v13 = vadd.f32 %v357_v38, %v293_v45 }
  0xf2   :  { %v422_v47 = vpop.permute.xlu1 %421 }
  0xf3   :  { %v452_v17 = vmul.f32 %v422_v47, %v8982_v53  ;;  %v454_v25 = vmul.f32 %v422_v47, %v8994_v4  ;;  %v455_v63 = vmul.f32 %v422_v47, %v8991_v61  ;;  %v453_v3 = vmul.f32 %v422_v47, %v9000_v15 }
  0xf4   :  { %v297_v47 = vadd.f32 %v265_v41, %v201_v20  ;;  %v11002_v20 = vld [vmem:[#allocation28_spill] sm:$0xff]  ;;  %v11003_v41 = vld [vmem:[#allocation23_spill] sm:$0xff] }
  0xf5   :  { %v9276_v30 = vadd.f32 %v452_v17, %v388_v43  ;;  %v9278_v31 = vadd.f32 %v455_v63, %v391_v56  ;;  %v9281_v7 = vadd.f32 %v454_v25, %v390_v28  ;;  %v9291_v44 = vadd.f32 %v453_v3, %v389_v13  ;;  %v11000_v63 = vld [vmem:[#allocation25_spill] sm:$0xff] }
  0xf6   :  { %v426_v0 = vpop.permute.xlu1 %425  ;;  %v393_v52 = vadd.f32 %v361_v58, %v297_v47  ;;  %v11004_v28 = vlaneseq  ;;  %v2183_v58 = vmul.f32 0.041666668, %v9210_v50 }
  0xf7   :  { %10979 = vst [vmem:[#allocation31_spill] sm:$0xff] %v9276_v30  ;;  %10980 = vst [vmem:[#allocation32_spill] sm:$0xff] %v9278_v31  ;;  %v456_v36 = vmul.f32 %v426_v0, %v8982_v53  ;;  %v459_v40 = vmul.f32 %v426_v0, %v8991_v61  ;;  %8087 = vmatprep.subr.mxu0 %v9278_v31  ;;  %v458_v56 = vmul.f32 %v426_v0, %v8994_v4 }
  0xf8   :  { %10981 = vst [vmem:[#allocation33_spill] sm:$0xff] %v9281_v7  ;;  %8095 = vmatprep.mubr.msk.f32.mxu0 %vm511_vm0, %v9276_v30  ;;  %8088 = vmatpush3.msra.mxu0 %v9278_v31  ;;  %10982 = vst [vmem:[#allocation34_spill] sm:$0xff] %v9291_v44  ;;  %v394_v53 = vadd.f32 %v362_v54, %v298_v48  ;;  %v457_v61 = vmul.f32 %v426_v0, %v9000_v15  ;;  %v9445_v3 = vand.u32 127, %v11004_v28  ;;  %v11006_v48 = vld [vmem:[#allocation8_spill] sm:$0xff] }
  0xf9   :  { %v9293_v62 = vadd.f32 %v456_v36, %v392_v57  ;;  %v9295_v2 = vadd.f32 %v459_v40, %v395_v23  ;;  %8089 = vmatprep.subr.mxu0 %v9281_v7  ;;  %v496_v54 = vadd.s32 24, %v11006_v48  ;;  %v495_v57 = vadd.s32 16, %v11006_v48 }
  0xfa   :  { %8090 = vmatpush3.msra.mxu0 %v9281_v7  ;;  %v9302_v4 = vadd.f32 %v458_v56, %v394_v53  ;;  %v9309_v14 = vadd.f32 %v457_v61, %v393_v52  ;;  %11005 = vst [vmem:[#allocation52_spill] sm:$0xff] %v9445_v3  ;;  %v8877_v36 = vmov 0.0   ;;  %v2182_v28 = vmul.f32 0.041666668, %v9222_v9 }
  0xfb   :  { %10983 = vst [vmem:[#allocation35_spill] sm:$0xff] %v9293_v62  ;;  %10984 = vst [vmem:[#allocation36_spill] sm:$0xff] %v9295_v2  ;;  %8091 = vmatprep.subr.mxu0 %v9291_v44  ;;  %8101 = vmatprep.subr.mxu1 %v9295_v2  ;;  %vm502_vm1 = vcmp.eq.s32.totalorder %v496_v54, %v9445_v3  ;;  %vm501_vm2 = vcmp.eq.s32.totalorder %v495_v57, %v9445_v3 }
  0xfc   :  { %10985 = vst [vmem:[#allocation37_spill] sm:$0xff] %v9302_v4  ;;  %8109 = vmatprep.mubr.msk.f32.mxu1 %vm511_vm0, %v9293_v62  ;;  %8092 = vmatpush3.msra.mxu0 %v9291_v44  ;;  %10986 = vst [vmem:[#allocation38_spill] sm:$0xff] %v9309_v14  ;;  %v9459_v40 = vsel %vm502_vm1, 1.0, %v8877_v36  ;;  %v9469_v53 = vsel %vm501_vm2, 1.0, %v8877_v36  ;;  %vm499_vm4 = vcmp.eq.s32.totalorder %v11006_v48, %v9445_v3 }
  0xfd   :  { %8102 = vmatpush3.msra.mxu1 %v9295_v2  ;;  %8093 = vmatprep.subr.mxu0 %v9276_v30  ;;  %11010 = vst [vmem:[#allocation56_spill] sm:$0xff] %v9459_v40  ;;  %11013 = vst [vmem:[#allocation59_spill] sm:$0xff] %v9469_v53  ;;  %v9477_v52 = vmul.f32 0.16666667, %v9459_v40  ;;  %v9489_v57 = vmul.f32 0.16666667, %v9469_v53 }
  0xfe   :  { %8103 = vmatprep.subr.mxu1 %v9302_v4  ;;  %8094 = vmatpush3.msra.mxu0 %v9276_v30 }
  0xff   :  { %8104 = vmatpush3.msra.mxu1 %v9302_v4  ;;  %8096 = vmatmul.mubr.msk.f32.vlgmr.msra.gmra.mxu0 %vm511_vm0, %v9291_v44  ;;  %11015 = vst [vmem:[#allocation61_spill] sm:$0xff] %v9477_v52  ;;  %11017 = vst [vmem:[#allocation63_spill] sm:$0xff] %v9489_v57 }
 0x100   :  { %8105 = vmatprep.subr.mxu1 %v9309_v14  ;;  %8115 = vmatprep.subr.mxu0 %v9005_v19 }
 0x101   :  { %8098 = vmatprep.mubr.msk.f32.mxu0 %vm511_vm0, %v9281_v7  ;;  %8106 = vmatpush3.msra.mxu1 %v9309_v14 }
 0x102   :  { %8116 = vmatpush3.msra.mxu0 %v9005_v19  ;;  %8107 = vmatprep.subr.mxu1 %v9293_v62 }
 0x103   :  { %8117 = vmatprep.subr.mxu0 %v9008_v21  ;;  %8108 = vmatpush3.msra.mxu1 %v9293_v62 }
 0x104   :  { %8118 = vmatpush3.msra.mxu0 %v9008_v21  ;;  %8110 = vmatmul.mubr.msk.f32.vlgmr.msra.gmra.mxu1 %vm511_vm0, %v9309_v14 }
 0x105   :  { %8099 = vmatmul.mubr.msk.f32.gmra.mxu0 %vm511_vm0, %v9278_v31  ;;  %8119 = vmatprep.subr.mxu0 %v9016_v24 }
 0x106   :  { %8129 = vmatprep.subr.mxu1 %v9051_v8  ;;  %8112 = vmatprep.mubr.msk.f32.mxu1 %vm511_vm0, %v9302_v4 }
 0x107   :  { %8120 = vmatpush3.msra.mxu0 %v9016_v24  ;;  %8130 = vmatpush3.msra.mxu1 %v9051_v8 }
 0x108   :  { %8121 = vmatprep.subr.mxu0 %v9003_v18  ;;  %8131 = vmatprep.subr.mxu1 %v9058_v16 }
 0x109   :  { %8122 = vmatpush3.msra.mxu0 %v9003_v18  ;;  %8132 = vmatpush3.msra.mxu1 %v9058_v16 }
 0x10a   :  { %8113 = vmatmul.mubr.msk.f32.gmra.mxu1 %vm511_vm0, %v9295_v2  ;;  %8133 = vmatprep.subr.mxu1 %v9068_v26 }
 0x10b   :  { %8143 = vmatprep.subr.mxu0 %v9098_v12  ;;  %8134 = vmatpush3.msra.mxu1 %v9068_v26 }
 0x10c   :  { %8135 = vmatprep.subr.mxu1 %v9049_v6 }
 0x10d   :  { %8136 = vmatpush3.msra.mxu1 %v9049_v6 }
 0x10e   :  { %8157 = vmatprep.subr.mxu1 %v9129_v51 }
 0x16c   :  { %v9348_v15 = vpop.f32.mrf.mxu0 }
 0x16d   :  { %10987 = vst [vmem:[#allocation39_spill] sm:$0xff] %v9348_v15 }
 0x16e   :  { %v9350_v33 = vpop.f32.mrf.mxu0 }
 0x16f   :  { %10988 = vst [vmem:[#allocation40_spill] sm:$0xff] %v9350_v33  ;;  %8123 = vmatprep.mubr.msk.f32.mxu0 %vm511_vm0, %v9350_v33 }
 0x170   :  { %v9354_v55 = vpop.f32.mrf.mxu0  ;;  %8124 = vmatmul.mubr.msk.f32.vlgmr.msra.gmra.mxu0 %vm511_vm0, %v9348_v15 }
 0x171   :  { %8144 = vmatpush3.msra.mxu0 %v9098_v12 }
 0x172   :  { %8145 = vmatprep.subr.mxu0 %v9110_v29  ;;  %v9360_v5 = vpop.f32.mrf.mxu0 }
 0x173   :  { %8146 = vmatpush3.msra.mxu0 %v9110_v29  ;;  %8126 = vmatprep.mubr.msk.f32.mxu0 %vm511_vm0, %v9360_v5 }
 0x174   :  { %8147 = vmatprep.subr.mxu0 %v9117_v32  ;;  %8127 = vmatmul.mubr.msk.f32.gmra.mxu0 %vm511_vm0, %v9354_v55 }
 0x175   :  { %8148 = vmatpush3.msra.mxu0 %v9117_v32 }
 0x176   :  { %8149 = vmatprep.subr.mxu0 %v9096_v11 }
 0x177   :  { %8150 = vmatpush3.msra.mxu0 %v9096_v11 }
 0x178   :  { %8171 = vmatprep.subr.mxu0 %v9210_v50 }
 0x17d   :  { %v9372_v10 = vpop.f32.mrf.mxu1 }
 0x17e   :  { %10989 = vst [vmem:[#allocation41_spill] sm:$0xff] %v9372_v10 }
 0x17f   :  { %v9374_v22 = vpop.f32.mrf.mxu1 }
 0x180   :  { %8137 = vmatprep.mubr.msk.f32.mxu1 %vm511_vm0, %v9374_v22 }
 0x181   :  { %v9378_v35 = vpop.f32.mrf.mxu1  ;;  %8138 = vmatmul.mubr.msk.f32.vlgmr.msra.gmra.mxu1 %vm511_vm0, %v9372_v10 }
 0x182   :  { %10990 = vst [vmem:[#allocation42_spill] sm:$0xff] %v9378_v35  ;;  %8158 = vmatpush3.msra.mxu1 %v9129_v51 }
 0x183   :  { %8159 = vmatprep.subr.mxu1 %v9136_v59  ;;  %v9384_v39 = vpop.f32.mrf.mxu1 }
 0x184   :  { %10991 = vst [vmem:[#allocation43_spill] sm:$0xff] %v9384_v39  ;;  %8160 = vmatpush3.msra.mxu1 %v9136_v59  ;;  %8140 = vmatprep.mubr.msk.f32.mxu1 %vm511_vm0, %v9384_v39 }
 0x185   :  { %8161 = vmatprep.subr.mxu1 %v9144_v60  ;;  %8141 = vmatmul.mubr.msk.f32.gmra.mxu1 %vm511_vm0, %v9378_v35 }
 0x186   :  { %8162 = vmatpush3.msra.mxu1 %v9144_v60 }
 0x187   :  { %8163 = vmatprep.subr.mxu1 %v10992_v46 }
 0x188   :  { %8164 = vmatpush3.msra.mxu1 %v10992_v46  ;;  %v9395_v42 = vpop.f32.mrf.mxu0 }
 0x189   :  { %10993 = vst [vmem:[#allocation44_spill] sm:$0xff] %v9395_v42  ;;  %8185 = vmatprep.subr.mxu1 %v9197_v34 }
 0x18a   :  { %v9398_v49 = vpop.f32.mrf.mxu0 }
 0x18b   :  { %10994 = vst [vmem:[#allocation45_spill] sm:$0xff] %v9398_v49  ;;  %8151 = vmatprep.mubr.msk.f32.mxu0 %vm511_vm0, %v9398_v49 }
 0x18c   :  { %v9402_v37 = vpop.f32.mrf.mxu0  ;;  %8152 = vmatmul.mubr.msk.f32.vlgmr.msra.gmra.mxu0 %vm511_vm0, %v9395_v42 }
 0x18d   :  { %10995 = vst [vmem:[#allocation46_spill] sm:$0xff] %v9402_v37  ;;  %8172 = vmatpush3.msra.mxu0 %v9210_v50 }
 0x18e   :  { %8173 = vmatprep.subr.mxu0 %v9222_v9  ;;  %v9408_v38 = vpop.f32.mrf.mxu0 }
 0x18f   :  { %10996 = vst [vmem:[#allocation47_spill] sm:$0xff] %v9408_v38  ;;  %8174 = vmatpush3.msra.mxu0 %v9222_v9  ;;  %8154 = vmatprep.mubr.msk.f32.mxu0 %vm511_vm0, %v9408_v38 }
 0x190   :  { %v9411_v43 = vpop.f32.mrf.mxu1  ;;  %8175 = vmatprep.subr.mxu0 %v9227_v1  ;;  %8155 = vmatmul.mubr.msk.f32.gmra.mxu0 %vm511_vm0, %v9402_v37  ;;  %v2428_v37 = vmul.f32 2.755732e-07, %v9003_v18 }
 0x191   :  { %10997 = vst [vmem:[#allocation48_spill] sm:$0xff] %v9411_v43  ;;  %8176 = vmatpush3.msra.mxu0 %v9227_v1 }
 0x192   :  { %v9419_v17 = vpop.f32.mrf.mxu1  ;;  %8177 = vmatprep.subr.mxu0 %v9208_v27 }
 0x193   :  { %10998 = vst [vmem:[#allocation49_spill] sm:$0xff] %v9419_v17  ;;  %8165 = vmatprep.mubr.msk.f32.mxu1 %vm511_vm0, %v9419_v17  ;;  %8178 = vmatpush3.msra.mxu0 %v9208_v27 }
 0x194   :  { %v9425_v25 = vpop.f32.mrf.mxu1  ;;  %8166 = vmatmul.mubr.msk.f32.vlgmr.msra.gmra.mxu1 %vm511_vm0, %v9411_v43  ;;  %8199 = vmatprep.subr.mxu0 %v9278_v31 }
 0x195   :  { %10999 = vst [vmem:[#allocation50_spill] sm:$0xff] %v9425_v25  ;;  %8186 = vmatpush3.msra.mxu1 %v9197_v34 }
 0x196   :  { %8187 = vmatprep.subr.mxu1 %v11000_v63  ;;  %v9432_v45 = vpop.f32.mrf.mxu1 }
 0x197   :  { %11001 = vst [vmem:[#allocation51_spill] sm:$0xff] %v9432_v45  ;;  %8188 = vmatpush3.msra.mxu1 %v11000_v63  ;;  %8168 = vmatprep.mubr.msk.f32.mxu1 %vm511_vm0, %v9432_v45  ;;  %v2191_v45 = vmul.f32 0.041666668, %v9278_v31 }
 0x198   :  { %8189 = vmatprep.subr.mxu1 %v11002_v20  ;;  %8169 = vmatmul.mubr.msk.f32.gmra.mxu1 %vm511_vm0, %v9425_v25 }
 0x199   :  { %8190 = vmatpush3.msra.mxu1 %v11002_v20 }
 0x19a   :  { %8191 = vmatprep.subr.mxu1 %v11003_v41 }
 0x19b   :  { %8192 = vmatpush3.msra.mxu1 %v11003_v41 }
 0x19c   :  { %8213 = vmatprep.subr.mxu1 %v9295_v2 }
 0x1a5   :  { %v9449_v23 = vpop.f32.mrf.mxu1 }
 0x1a6   :  { %11007 = vst [vmem:[#allocation53_spill] sm:$0xff] %v9449_v23 }
 0x1a7   :  { %v9452_v0 = vpop.f32.mrf.mxu1  ;;  %v9455_v13 = vpop.f32.mrf.mxu0 }
 0x1a8   :  { %11008 = vst [vmem:[#allocation54_spill] sm:$0xff] %v9452_v0  ;;  %11009 = vst [vmem:[#allocation55_spill] sm:$0xff] %v9455_v13  ;;  %8193 = vmatprep.mubr.msk.f32.mxu1 %vm511_vm0, %v9452_v0 }
 0x1a9   :  { %v9461_v47 = vpop.f32.mrf.mxu1  ;;  %8194 = vmatmul.mubr.msk.f32.vlgmr.msra.gmra.mxu1 %vm511_vm0, %v9449_v23  ;;  %v9467_v56 = vpop.f32.mrf.mxu0 }
 0x1aa   :  { %11011 = vst [vmem:[#allocation57_spill] sm:$0xff] %v9461_v47  ;;  %8214 = vmatpush3.msra.mxu1 %v9295_v2  ;;  %11012 = vst [vmem:[#allocation58_spill] sm:$0xff] %v9467_v56  ;;  %8179 = vmatprep.mubr.msk.f32.mxu0 %vm511_vm0, %v9467_v56  ;;  %v2215_v56 = vadd.f32 %v2183_v58, %v9477_v52 }
 0x1ab   :  { %8215 = vmatprep.subr.mxu1 %v9302_v4  ;;  %v9472_v61 = vpop.f32.mrf.mxu1  ;;  %v9481_v54 = vpop.f32.mrf.mxu0  ;;  %8180 = vmatmul.mubr.msk.f32.vlgmr.msra.gmra.mxu0 %vm511_vm0, %v9455_v13 }
 0x1ac   :  { %11014 = vst [vmem:[#allocation60_spill] sm:$0xff] %v9472_v61  ;;  %8216 = vmatpush3.msra.mxu1 %v9302_v4  ;;  %11016 = vst [vmem:[#allocation62_spill] sm:$0xff] %v9481_v54  ;;  %8196 = vmatprep.mubr.msk.f32.mxu1 %vm511_vm0, %v9472_v61  ;;  %v2247_v23 = vmul.f32 0.008333334, %v9481_v54  ;;  %v2214_v61 = vadd.f32 %v2182_v28, %v9489_v57 }
 0x1ad   :  { %8200 = vmatpush3.msra.mxu0 %v9278_v31  ;;  %8217 = vmatprep.subr.mxu1 %v9309_v14  ;;  %v9496_v0 = vpop.f32.mrf.mxu0 }
 0x1ae   :  { %8197 = vmatmul.mubr.msk.f32.gmra.mxu1 %vm511_vm0, %v9461_v47  ;;  %11018 = vst [vmem:[#allocation64_spill] sm:$0xff] %v9496_v0  ;;  %8201 = vmatprep.subr.mxu0 %v9281_v7  ;;  %v9500_v13 = vadd.f32 %v2247_v23, %v2215_v56  ;;  %v2246_v25 = vmul.f32 0.008333334, %v9496_v0  ;;  %v494_v23 = vadd.s32 8, %v11006_v48  ;;  %v2189_v56 = vmul.f32 0.041666668, %v9291_v44 }
 0x1af   :  { %8218 = vmatpush3.msra.mxu1 %v9309_v14  ;;  %8202 = vmatpush3.msra.mxu0 %v9281_v7 }
 0x1b0   :  { %11019 = vst [vmem:[#allocation65_spill] sm:$0xff] %v9500_v13  ;;  %8219 = vmatprep.subr.mxu1 %v9293_v62  ;;  %8182 = vmatprep.mubr.msk.f32.mxu0 %vm511_vm0, %v9496_v0  ;;  %v9509_v58 = vadd.f32 %v2246_v25, %v2214_v61  ;;  %vm500_vm3 = vcmp.eq.s32.totalorder %v494_v23, %v9445_v3  ;;  %v9524_v61 = vsel %vm499_vm4, 1.0, %v8877_v36  ;;  %v2188_v13 = vmul.f32 0.041666668, %v9276_v30 }
 0x1b1   :  { %8203 = vmatprep.subr.mxu0 %v9291_v44  ;;  %8220 = vmatpush3.msra.mxu1 %v9293_v62  ;;  %v9521_v25 = vsel %vm500_vm3, 1.0, %v8877_v36  ;;  %11022 = vst [vmem:[#allocation68_spill] sm:$0xff] %v9524_v61  ;;  %v9533_v57 = vmul.f32 0.16666667, %v9524_v61  ;;  %v9553_v17 = vmul.f32 2.7557319e-06, %v9524_v61 }
 0x1b2   :  { %11020 = vst [vmem:[#allocation66_spill] sm:$0xff] %v9509_v58  ;;  %8183 = vmatmul.mubr.msk.f32.gmra.mxu0 %vm511_vm0, %v9481_v54  ;;  %11021 = vst [vmem:[#allocation67_spill] sm:$0xff] %v9521_v25  ;;  %v9527_v28 = vmul.f32 0.16666667, %v9521_v25  ;;  %v2193_v54 = vmul.f32 0.041666668, %v9309_v14 }
 0x1b3   :  { %8204 = vmatpush3.msra.mxu0 %v9291_v44  ;;  %11025 = vst [vmem:[#allocation71_spill] sm:$0xff] %v9533_v57  ;;  %v2220_v0 = vadd.f32 %v2188_v13, %v9533_v57 }
 0x1b4   :  { %8205 = vmatprep.subr.mxu0 %v9276_v30  ;;  %11023 = vst [vmem:[#allocation69_spill] sm:$0xff] %v9527_v28  ;;  %v2221_v23 = vadd.f32 %v2189_v56, %v9527_v28  ;;  %v2192_v56 = vmul.f32 0.041666668, %v9293_v62  ;;  %v2225_v13 = vadd.f32 %v2193_v54, %v9527_v28  ;;  %v2195_v54 = vmul.f32 0.041666668, %v9295_v2 }
 0x1b5   :  { %8206 = vmatpush3.msra.mxu0 %v9276_v30 }
 0x1bf   :  { %v9530_v58 = vpop.f32.mrf.mxu0 }
 0x1c0   :  { %11024 = vst [vmem:[#allocation70_spill] sm:$0xff] %v9530_v58  ;;  %v2253_v48 = vmul.f32 0.008333334, %v9530_v58 }
 0x1c1   :  { %v9537_v3 = vpop.f32.mrf.mxu0 }
 0x1c2   :  { %11026 = vst [vmem:[#allocation72_spill] sm:$0xff] %v9537_v3  ;;  %8207 = vmatprep.mubr.msk.f32.mxu0 %vm511_vm0, %v9537_v3  ;;  %v9542_v36 = vadd.f32 %v2253_v48, %v2221_v23  ;;  %v2252_v47 = vmul.f32 0.008333334, %v9537_v3 }
 0x1c3   :  { %8208 = vmatmul.mubr.msk.f32.vlgmr.msra.gmra.mxu0 %vm511_vm0, %v9530_v58  ;;  %v2223_v58 = vadd.f32 %v2191_v45, %v9477_v52  ;;  %v2460_v45 = vadd.f32 %v2428_v37, %v9553_v17 }
 0x1c4   :  { %11027 = vst [vmem:[#allocation73_spill] sm:$0xff] %v9542_v36  ;;  %v9550_v43 = vpop.f32.mrf.mxu1  ;;  %v9556_v48 = vadd.f32 %v2252_v47, %v2220_v0  ;;  %v2224_v0 = vadd.f32 %v2192_v56, %v9533_v57 }
 0x1c5   :  { %11028 = vst [vmem:[#allocation74_spill] sm:$0xff] %v9550_v43  ;;  %v9558_v23 = vpop.f32.mrf.mxu0  ;;  %v2257_v36 = vmul.f32 0.008333334, %v9550_v43 }
 0x1c6   :  { %11029 = vst [vmem:[#allocation75_spill] sm:$0xff] %v9556_v48  ;;  %11030 = vst [vmem:[#allocation76_spill] sm:$0xff] %v9558_v23  ;;  %v9562_v3 = vpop.f32.mrf.mxu1  ;;  %v2255_v38 = vmul.f32 0.008333334, %v9558_v23 }
 0x1c7   :  { %11031 = vst [vmem:[#allocation77_spill] sm:$0xff] %v9562_v3  ;;  %v9566_v42 = vpop.f32.mrf.mxu0  ;;  %8221 = vmatprep.mubr.msk.f32.mxu1 %vm511_vm0, %v9562_v3  ;;  %v9570_v49 = vadd.f32 %v2257_v36, %v2225_v13  ;;  %v2256_v47 = vmul.f32 0.008333334, %v9562_v3  ;;  %v2432_v36 = vmul.f32 2.755732e-07, %v9049_v6 }
 0x1c8   :  { %11032 = vst [vmem:[#allocation78_spill] sm:$0xff] %v9566_v42  ;;  %8210 = vmatprep.mubr.msk.f32.mxu0 %vm511_vm0, %v9566_v42  ;;  %8222 = vmatmul.mubr.msk.f32.vlgmr.msra.gmra.mxu1 %vm511_vm0, %v9550_v43  ;;  %v9580_v48 = vadd.f32 %v2255_v38, %v2223_v58  ;;  %v2440_v43 = vmul.f32 2.755732e-07, %v10992_v46 }
 0x1c9   :  { %11033 = vst [vmem:[#allocation79_spill] sm:$0xff] %v9570_v49  ;;  %8211 = vmatmul.mubr.msk.f32.gmra.mxu0 %vm511_vm0, %v9558_v23  ;;  %v9585_v56 = vadd.f32 %v2256_v47, %v2224_v0  ;;  %v2227_v49 = vadd.f32 %v2195_v54, %v9477_v52  ;;  %v2464_v37 = vadd.f32 %v2432_v36, %v9553_v17  ;;  %v2430_v36 = vmul.f32 2.755732e-07, %v9008_v21 }
 0x1ca   :  { %11034 = vst [vmem:[#allocation80_spill] sm:$0xff] %v9580_v48  ;;  %v9587_v13 = vpop.f32.mrf.mxu1  ;;  %8235 = vmatprep.mubr.msk.f32.mxu0 %vm511_vm0, %v2460_v45  ;;  %v9619_v45 = vmul.f32 2.7557319e-06, %v9469_v53  ;;  %v2431_v48 = vmul.f32 2.755732e-07, %v9005_v19 }
 0x1cb   :  { %11035 = vst [vmem:[#allocation81_spill] sm:$0xff] %v9585_v56  ;;  %11036 = vst [vmem:[#allocation82_spill] sm:$0xff] %v9587_v13  ;;  %v2259_v28 = vmul.f32 0.008333334, %v9587_v13  ;;  %v2436_v52 = vmul.f32 2.755732e-07, %v9096_v11 }
 0x1cc   :  { %v9592_v57 = vpop.f32.mrf.mxu1  ;;  %v2462_v56 = vadd.f32 %v2430_v36, %v9619_v45 }
 0x1cd   :  { %11037 = vst [vmem:[#allocation83_spill] sm:$0xff] %v9592_v57  ;;  %8224 = vmatprep.mubr.msk.f32.mxu1 %vm511_vm0, %v9592_v57  ;;  %v9597_v38 = vadd.f32 %v2259_v28, %v2227_v49  ;;  %v9614_v49 = vmul.f32 2.7557319e-06, %v9521_v25  ;;  %v2429_v28 = vmul.f32 2.755732e-07, %v9016_v24 }
 0x1ce   :  { %8225 = vmatmul.mubr.msk.f32.gmra.mxu1 %vm511_vm0, %v9587_v13 }
 0x1cf   :  { %11038 = vst [vmem:[#allocation84_spill] sm:$0xff] %v9597_v38  ;;  %8249 = vmatprep.mubr.msk.f32.mxu1 %vm511_vm0, %v2464_v37  ;;  %v2461_v37 = vadd.f32 %v2429_v28, %v9614_v49  ;;  %v9627_v38 = vmul.f32 2.7557319e-06, %v9459_v40  ;;  %v2468_v28 = vadd.f32 %v2436_v52, %v9553_v17  ;;  %v2434_v52 = vmul.f32 2.755732e-07, %v9058_v16 }
 0x1d1   :  { %v2463_v13 = vadd.f32 %v2431_v48, %v9627_v38  ;;  %v2433_v48 = vmul.f32 2.755732e-07, %v9068_v26 }
 0x230   :  { %v9602_v58 = vpop.f32.mrf.mxu0 }
 0x231   :  { %11039 = vst [vmem:[#allocation85_spill] sm:$0xff] %v9602_v58 }
 0x232   :  { %v9604_v0 = vpop.f32.mrf.mxu0 }
 0x233   :  { %11040 = vst [vmem:[#allocation86_spill] sm:$0xff] %v9604_v0 }
 0x234   :  { %v9606_v47 = vpop.f32.mrf.mxu0 }
 0x235   :  { %8227 = vmatprep.subr.mxu0 %v9606_v47 }
 0x236   :  { %v9609_v54 = vpop.f32.mrf.mxu0  ;;  %8228 = vmatpush3.msra.mxu0 %v9606_v47 }
 0x237   :  { %8229 = vmatprep.subr.mxu0 %v9609_v54 }
 0x238   :  { %8230 = vmatpush3.msra.mxu0 %v9609_v54 }
 0x239   :  { %8231 = vmatprep.subr.mxu0 %v9602_v58 }
 0x23a   :  { %8232 = vmatpush3.msra.mxu0 %v9602_v58 }
 0x23b   :  { %8233 = vmatprep.subr.mxu0 %v9604_v0 }
 0x23c   :  { %8234 = vmatpush3.msra.mxu0 %v9604_v0 }
 0x23d   :  { %8236 = vmatmul.mubr.msk.f32.vlgmr.msra.gmra.mxu0 %vm511_vm0, %v2461_v37 }
 0x23e   :  { %8238 = vmatprep.mubr.msk.f32.mxu0 %vm511_vm0, %v2462_v56  ;;  %v2465_v56 = vadd.f32 %v2433_v48, %v9614_v49  ;;  %v2472_v48 = vadd.f32 %v2440_v43, %v9553_v17  ;;  %v2438_v43 = vmul.f32 2.755732e-07, %v9110_v29  ;;  %v2444_v29 = vmul.f32 2.755732e-07, %v9208_v27 }
 0x240   :  { %v2470_v46 = vadd.f32 %v2438_v43, %v9619_v45  ;;  %v2442_v43 = vmul.f32 2.755732e-07, %v9136_v59  ;;  %v2476_v27 = vadd.f32 %v2444_v29, %v9553_v17  ;;  %v2448_v59 = vmul.f32 2.755732e-07, %v11003_v41 }
 0x241   :  { %v9636_v57 = vpop.f32.mrf.mxu1  ;;  %8239 = vmatmul.mubr.msk.f32.gmra.mxu0 %vm511_vm0, %v2463_v13  ;;  %v2435_v13 = vmul.f32 2.755732e-07, %v9051_v8 }
 0x242   :  { %11041 = vst [vmem:[#allocation87_spill] sm:$0xff] %v9636_v57  ;;  %8263 = vmatprep.mubr.msk.f32.mxu0 %vm511_vm0, %v2468_v28  ;;  %v2466_v28 = vadd.f32 %v2434_v52, %v9619_v45  ;;  %v2480_v29 = vadd.f32 %v2448_v59, %v9553_v17  ;;  %v2449_v59 = vmul.f32 2.755732e-07, %v11002_v20  ;;  %v2445_v20 = vmul.f32 2.755732e-07, %v9227_v1 }
 0x243   :  { %v9641_v23 = vpop.f32.mrf.mxu1  ;;  %v2467_v11 = vadd.f32 %v2435_v13, %v9627_v38 }
 0x244   :  { %11042 = vst [vmem:[#allocation88_spill] sm:$0xff] %v9641_v23 }
 0x245   :  { %v9643_v42 = vpop.f32.mrf.mxu1 }
 0x246   :  { %8241 = vmatprep.subr.mxu1 %v9643_v42 }
 0x247   :  { %v9646_v36 = vpop.f32.mrf.mxu1  ;;  %8242 = vmatpush3.msra.mxu1 %v9643_v42 }
 0x248   :  { %11043 = vst [vmem:[#allocation89_spill] sm:$0xff] %v9646_v36  ;;  %8243 = vmatprep.subr.mxu1 %v9646_v36 }
 0x249   :  { %8244 = vmatpush3.msra.mxu1 %v9646_v36 }
 0x24a   :  { %8245 = vmatprep.subr.mxu1 %v9636_v57 }
 0x24b   :  { %8246 = vmatpush3.msra.mxu1 %v9636_v57 }
 0x24c   :  { %8247 = vmatprep.subr.mxu1 %v9641_v23  ;;  %v9658_v37 = vpop.f32.mrf.mxu0 }
 0x24d   :  { %8248 = vmatpush3.msra.mxu1 %v9641_v23 }
 0x24e   :  { %8250 = vmatmul.mubr.msk.f32.vlgmr.msra.gmra.mxu1 %vm511_vm0, %v2465_v56  ;;  %v9664_v3 = vpop.f32.mrf.mxu0  ;;  %v2437_v56 = vmul.f32 2.755732e-07, %v9117_v32 }
 0x24f   :  { %8252 = vmatprep.mubr.msk.f32.mxu1 %vm511_vm0, %v2466_v28 }
 0x250   :  { %v9668_v35 = vpop.f32.mrf.mxu0  ;;  %v2469_v28 = vadd.f32 %v2437_v56, %v9614_v49  ;;  %v2441_v56 = vmul.f32 2.755732e-07, %v9144_v60  ;;  %v2446_v60 = vmul.f32 2.755732e-07, %v9222_v9 }
 0x251   :  { %8255 = vmatprep.subr.mxu0 %v9668_v35 }
 0x252   :  { %8253 = vmatmul.mubr.msk.f32.gmra.mxu1 %vm511_vm0, %v2467_v11  ;;  %v9673_v39 = vpop.f32.mrf.mxu0  ;;  %8256 = vmatpush3.msra.mxu0 %v9668_v35 }
 0x253   :  { %8277 = vmatprep.mubr.msk.f32.mxu1 %vm511_vm0, %v2472_v48  ;;  %8257 = vmatprep.subr.mxu0 %v9673_v39  ;;  %v2439_v48 = vmul.f32 2.755732e-07, %v9098_v12 }
 0x254   :  { %v9677_v52 = vpop.f32.mrf.mxu1  ;;  %8258 = vmatpush3.msra.mxu0 %v9673_v39 }
 0x255   :  { %11044 = vst [vmem:[#allocation90_spill] sm:$0xff] %v9677_v52  ;;  %8259 = vmatprep.subr.mxu0 %v9658_v37  ;;  %v2471_v12 = vadd.f32 %v2439_v48, %v9627_v38  ;;  %v2474_v48 = vadd.f32 %v2442_v43, %v9619_v45 }
 0x256   :  { %v9683_v13 = vpop.f32.mrf.mxu1  ;;  %8260 = vmatpush3.msra.mxu0 %v9658_v37 }
 0x257   :  { %11045 = vst [vmem:[#allocation91_spill] sm:$0xff] %v9683_v13  ;;  %8261 = vmatprep.subr.mxu0 %v9664_v3 }
 0x258   :  { %v9687_v11 = vpop.f32.mrf.mxu1  ;;  %8262 = vmatpush3.msra.mxu0 %v9664_v3 }
 0x259   :  { %8269 = vmatprep.subr.mxu1 %v9687_v11  ;;  %8264 = vmatmul.mubr.msk.f32.vlgmr.msra.gmra.mxu0 %vm511_vm0, %v2469_v28  ;;  %v2443_v28 = vmul.f32 2.755732e-07, %v9129_v51 }
 0x25a   :  { %v9696_v32 = vpop.f32.mrf.mxu1  ;;  %8270 = vmatpush3.msra.mxu1 %v9687_v11  ;;  %8266 = vmatprep.mubr.msk.f32.mxu0 %vm511_vm0, %v2470_v46  ;;  %v2473_v46 = vadd.f32 %v2441_v56, %v9614_v49 }
 0x25b   :  { %11046 = vst [vmem:[#allocation92_spill] sm:$0xff] %v9696_v32  ;;  %8271 = vmatprep.subr.mxu1 %v9696_v32 }
 0x25c   :  { %8272 = vmatpush3.msra.mxu1 %v9696_v32 }
 0x25d   :  { %8273 = vmatprep.subr.mxu1 %v9677_v52  ;;  %8267 = vmatmul.mubr.msk.f32.gmra.mxu0 %vm511_vm0, %v2471_v12  ;;  %v2475_v12 = vadd.f32 %v2443_v28, %v9627_v38 }
 0x25e   :  { %8274 = vmatpush3.msra.mxu1 %v9677_v52  ;;  %8291 = vmatprep.mubr.msk.f32.mxu0 %vm511_vm0, %v2476_v27 }
 0x25f   :  { %8275 = vmatprep.subr.mxu1 %v9683_v13 }
 0x260   :  { %8276 = vmatpush3.msra.mxu1 %v9683_v13 }
 0x261   :  { %8278 = vmatmul.mubr.msk.f32.vlgmr.msra.gmra.mxu1 %vm511_vm0, %v2473_v46 }
 0x262   :  { %8280 = vmatprep.mubr.msk.f32.mxu1 %vm511_vm0, %v2474_v48  ;;  %v2450_v48 = vmul.f32 2.755732e-07, %v11000_v63  ;;  %v2451_v63 = vmul.f32 2.755732e-07, %v9197_v34 }
 0x264   :  { %v2483_v34 = vadd.f32 %v2451_v63, %v9627_v38 }
 0x265   :  { %8281 = vmatmul.mubr.msk.f32.gmra.mxu1 %vm511_vm0, %v2475_v12 }
 0x266   :  { %8305 = vmatprep.mubr.msk.f32.mxu1 %vm511_vm0, %v2480_v29  ;;  %v2481_v29 = vadd.f32 %v2449_v59, %v9614_v49  ;;  %v2477_v59 = vadd.f32 %v2445_v20, %v9614_v49 }
 0x269   :  { %v9723_v27 = vpop.f32.mrf.mxu1 }
 0x26a   :  { %11047 = vst [vmem:[#allocation93_spill] sm:$0xff] %v9723_v27 }
 0x26b   :  { %v9725_v56 = vpop.f32.mrf.mxu1  ;;  %v9727_v51 = vpop.f32.mrf.mxu0 }
 0x26c   :  { %11048 = vst [vmem:[#allocation94_spill] sm:$0xff] %v9725_v56  ;;  %11049 = vst [vmem:[#allocation95_spill] sm:$0xff] %v9727_v51 }
 0x26d   :  { %v9731_v41 = vpop.f32.mrf.mxu0 }
 0x26e   :  { %v9729_v43 = vpop.f32.mrf.mxu1  ;;  %11050 = vst [vmem:[#allocation96_spill] sm:$0xff] %v9731_v41 }
 0x26f   :  { %8297 = vmatprep.subr.mxu1 %v9729_v43 }
 0x270   :  { %v9734_v46 = vpop.f32.mrf.mxu1  ;;  %8298 = vmatpush3.msra.mxu1 %v9729_v43 }
 0x271   :  { %11051 = vst [vmem:[#allocation97_spill] sm:$0xff] %v9734_v46  ;;  %8299 = vmatprep.subr.mxu1 %v9734_v46 }
 0x272   :  { %v9739_v28 = vpop.f32.mrf.mxu0  ;;  %8300 = vmatpush3.msra.mxu1 %v9734_v46  ;;  %v2482_v46 = vadd.f32 %v2450_v48, %v9619_v45  ;;  %v2447_v48 = vmul.f32 2.755732e-07, %v9210_v50 }
 0x273   :  { %8283 = vmatprep.subr.mxu0 %v9739_v28  ;;  %8301 = vmatprep.subr.mxu1 %v9723_v27 }
 0x274   :  { %v9745_v12 = vpop.f32.mrf.mxu0  ;;  %8284 = vmatpush3.msra.mxu0 %v9739_v28  ;;  %8302 = vmatpush3.msra.mxu1 %v9723_v27  ;;  %v2456_v27 = vmul.f32 2.755732e-07, %v9293_v62  ;;  %v2478_v62 = vadd.f32 %v2446_v60, %v9619_v45  ;;  %v2479_v63 = vadd.f32 %v2447_v48, %v9627_v38  ;;  %v2454_v48 = vmul.f32 2.755732e-07, %v9281_v7 }
 0x275   :  { %11052 = vst [vmem:[#allocation98_spill] sm:$0xff] %v9745_v12  ;;  %8285 = vmatprep.subr.mxu0 %v9745_v12  ;;  %8303 = vmatprep.subr.mxu1 %v9725_v56 }
 0x276   :  { %8286 = vmatpush3.msra.mxu0 %v9745_v12  ;;  %8304 = vmatpush3.msra.mxu1 %v9725_v56  ;;  %v2488_v9 = vadd.f32 %v2456_v27, %v9553_v17  ;;  %v2486_v7 = vadd.f32 %v2454_v48, %v9619_v45 }
 0x277   :  { %8287 = vmatprep.subr.mxu0 %v9727_v51  ;;  %8306 = vmatmul.mubr.msk.f32.vlgmr.msra.gmra.mxu1 %vm511_vm0, %v2481_v29  ;;  %v2452_v29 = vmul.f32 2.755732e-07, %v9276_v30 }
 0x278   :  { %8288 = vmatpush3.msra.mxu0 %v9727_v51  ;;  %8308 = vmatprep.mubr.msk.f32.mxu1 %vm511_vm0, %v2482_v46 }
 0x279   :  { %8289 = vmatprep.subr.mxu0 %v9731_v41  ;;  %v2484_v20 = vadd.f32 %v2452_v29, %v9553_v17 }
 0x27a   :  { %8290 = vmatpush3.msra.mxu0 %v9731_v41 }
 0x27b   :  { %8292 = vmatmul.mubr.msk.f32.vlgmr.msra.gmra.mxu0 %vm511_vm0, %v2477_v59  ;;  %8309 = vmatmul.mubr.msk.f32.gmra.mxu1 %vm511_vm0, %v2483_v34 }
 0x27c   :  { %8294 = vmatprep.mubr.msk.f32.mxu0 %vm511_vm0, %v2478_v62  ;;  %8333 = vmatprep.mubr.msk.f32.mxu1 %vm511_vm0, %v2488_v9  ;;  %v2453_v62 = vmul.f32 2.755732e-07, %v9291_v44  ;;  %v2455_v44 = vmul.f32 2.755732e-07, %v9278_v31 }
 0x27e   :  { %v2487_v48 = vadd.f32 %v2455_v44, %v9627_v38 }
 0x27f   :  { %8295 = vmatmul.mubr.msk.f32.gmra.mxu0 %vm511_vm0, %v2479_v63  ;;  %v2485_v63 = vadd.f32 %v2453_v62, %v9614_v49  ;;  %v2458_v62 = vmul.f32 2.755732e-07, %v9302_v4  ;;  %v2459_v4 = vmul.f32 2.755732e-07, %v9295_v2 }
 0x280   :  { %8319 = vmatprep.mubr.msk.f32.mxu0 %vm511_vm0, %v2484_v20  ;;  %v2457_v20 = vmul.f32 2.755732e-07, %v9309_v14 }
 0x281   :  { %v2491_v44 = vadd.f32 %v2459_v4, %v9627_v38  ;;  %v9848_v4 = vmul.f32 0.0013888889, %v9524_v61  ;;  %v2296_v38 = vmul.f32 0.0001984127, %v9003_v18  ;;  %v9864_v18 = vmul.f32 0.0013888889, %v9459_v40 }
 0x283   :  { %v9779_v60 = vpop.f32.mrf.mxu0 }
 0x285   :  { %v9781_v27 = vpop.f32.mrf.mxu0 }
 0x288   :  { %v9783_v46 = vpop.f32.mrf.mxu1 }
 0x289   :  { %v9785_v59 = vpop.f32.mrf.mxu0 }
 0x28a   :  { %8311 = vmatprep.subr.mxu0 %v9785_v59  ;;  %v9788_v34 = vpop.f32.mrf.mxu1 }
 0x28b   :  { %v9790_v9 = vpop.f32.mrf.mxu0  ;;  %8312 = vmatpush3.msra.mxu0 %v9785_v59 }
 0x28c   :  { %8313 = vmatprep.subr.mxu0 %v9790_v9 }
 0x28d   :  { %8314 = vmatpush3.msra.mxu0 %v9790_v9 }
 0x28e   :  { %v9796_v17 = vpop.f32.mrf.mxu1  ;;  %8315 = vmatprep.subr.mxu0 %v9779_v60 }
 0x28f   :  { %8325 = vmatprep.subr.mxu1 %v9796_v17  ;;  %8316 = vmatpush3.msra.mxu0 %v9779_v60 }
 0x290   :  { %v9802_v29 = vpop.f32.mrf.mxu1  ;;  %8326 = vmatpush3.msra.mxu1 %v9796_v17  ;;  %8317 = vmatprep.subr.mxu0 %v9781_v27 }
 0x291   :  { %8327 = vmatprep.subr.mxu1 %v9802_v29  ;;  %8318 = vmatpush3.msra.mxu0 %v9781_v27 }
 0x292   :  { %8328 = vmatpush3.msra.mxu1 %v9802_v29  ;;  %8320 = vmatmul.mubr.msk.f32.vlgmr.msra.gmra.mxu0 %vm511_vm0, %v2485_v63  ;;  %v2489_v63 = vadd.f32 %v2457_v20, %v9614_v49  ;;  %v9852_v49 = vmul.f32 0.0013888889, %v9521_v25  ;;  %v2360_v20 = vmul.f32 2.4801588e-05, %v9350_v33  ;;  %v2299_v25 = vmul.f32 0.0001984127, %v9005_v19 }
 0x293   :  { %8329 = vmatprep.subr.mxu1 %v9783_v46  ;;  %8339 = vmatprep.subr.mxu0 %v9606_v47  ;;  %v2362_v33 = vmul.f32 2.4801588e-05, %v9360_v5 }
 0x294   :  { %8322 = vmatprep.mubr.msk.f32.mxu0 %vm511_vm0, %v2486_v7  ;;  %8330 = vmatpush3.msra.mxu1 %v9783_v46  ;;  %v2490_v7 = vadd.f32 %v2458_v62, %v9619_v45  ;;  %v2297_v45 = vmul.f32 0.0001984127, %v9016_v24  ;;  %v2361_v62 = vmul.f32 2.4801588e-05, %v9348_v15 }
 0x295   :  { %8340 = vmatpush3.msra.mxu0 %v9606_v47  ;;  %8331 = vmatprep.subr.mxu1 %v9788_v34 }
 0x296   :  { %8341 = vmatprep.subr.mxu0 %v9609_v54  ;;  %8332 = vmatpush3.msra.mxu1 %v9788_v34 }
 0x297   :  { %8342 = vmatpush3.msra.mxu0 %v9609_v54  ;;  %8334 = vmatmul.mubr.msk.f32.vlgmr.msra.gmra.mxu1 %vm511_vm0, %v2489_v63  ;;  %v2328_v63 = vadd.f32 %v2296_v38, %v9848_v4  ;;  %v2363_v38 = vmul.f32 2.4801588e-05, %v9354_v55 }
 0x298   :  { %8323 = vmatmul.mubr.msk.f32.gmra.mxu0 %vm511_vm0, %v2487_v48  ;;  %8343 = vmatprep.subr.mxu0 %v9602_v58  ;;  %v9859_v48 = vmul.f32 0.0013888889, %v9469_v53 }
 0x299   :  { %8353 = vmatprep.subr.mxu1 %v9643_v42  ;;  %8336 = vmatprep.mubr.msk.f32.mxu1 %vm511_vm0, %v2490_v7  ;;  %v2298_v7 = vmul.f32 0.0001984127, %v9008_v21  ;;  %v2392_v24 = vadd.f32 %v2360_v20, %v2328_v63  ;;  %v2331_v21 = vadd.f32 %v2299_v25, %v9864_v18 }
 0x29a   :  { %8344 = vmatpush3.msra.mxu0 %v9602_v58  ;;  %8354 = vmatpush3.msra.mxu1 %v9643_v42 }
 0x29b   :  { %8345 = vmatprep.subr.mxu0 %v9604_v0  ;;  %8355 = vmatprep.subr.mxu1 %v9646_v36  ;;  %v2330_v53 = vadd.f32 %v2298_v7, %v9859_v48  ;;  %v11054_v7 = vld [vmem:[#allocation42_spill] sm:$0xff] }
 0x29c   :  { %8346 = vmatpush3.msra.mxu0 %v9604_v0  ;;  %8356 = vmatpush3.msra.mxu1 %v9646_v36  ;;  %v2395_v36 = vadd.f32 %v2363_v38, %v2331_v21  ;;  %v2300_v21 = vmul.f32 0.0001984127, %v9049_v6 }
 0x29d   :  { %8337 = vmatmul.mubr.msk.f32.gmra.mxu1 %vm511_vm0, %v2491_v44  ;;  %8357 = vmatprep.subr.mxu1 %v9636_v57  ;;  %v2329_v44 = vadd.f32 %v2297_v45, %v9852_v49  ;;  %v2394_v40 = vadd.f32 %v2362_v33, %v2330_v53  ;;  %v2365_v33 = vmul.f32 2.4801588e-05, %v9372_v10  ;;  %v2302_v53 = vmul.f32 0.0001984127, %v9058_v16 }
 0x29e   :  { %8367 = vmatprep.subr.mxu0 %v9668_v35  ;;  %8358 = vmatpush3.msra.mxu1 %v9636_v57 }
 0x29f   :  { %8359 = vmatprep.subr.mxu1 %v9641_v23 }
 0x2a0   :  { %8360 = vmatpush3.msra.mxu1 %v9641_v23  ;;  %v2393_v23 = vadd.f32 %v2361_v62, %v2329_v44  ;;  %v2367_v44 = vmul.f32 2.4801588e-05, %v11054_v7 }
 0x2a1   :  { %8381 = vmatprep.subr.mxu1 %v9687_v11 }
 0x2fd   :  { %v8237_v61 = vpop.f32.mrf.mxu0 }
 0x2fe   :  { %v2576_v0 = vadd.f32 %v8237_v61, %v2393_v23  ;;  %v2303_v61 = vmul.f32 0.0001984127, %v9051_v8 }
 0x2ff   :  { %v2570_v15 = vpop.f32.mrf.mxu0 }
 0x300   :  { %v2571_v57 = vadd.f32 %v2570_v15, %v2392_v24  ;;  %v2301_v24 = vmul.f32 0.0001984127, %v9068_v26  ;;  %v2364_v15 = vmul.f32 2.4801588e-05, %v9374_v22 }
 0x301   :  { %v8240_v45 = vpop.f32.mrf.mxu0 }
 0x302   :  { %8347 = vmatprep.mubr.msk.f32.mxu0 %vm511_vm0, %v2571_v57  ;;  %v2586_v62 = vadd.f32 %v8240_v45, %v2395_v36  ;;  %v2333_v57 = vadd.f32 %v2301_v24, %v9852_v49  ;;  %v2334_v45 = vadd.f32 %v2302_v53, %v9859_v48  ;;  %v11056_v53 = vld [vmem:[#allocation18_spill] sm:$0xff] }
 0x303   :  { %v2580_v58 = vpop.f32.mrf.mxu0  ;;  %8348 = vmatmul.mubr.msk.f32.vlgmr.msra.gmra.mxu0 %vm511_vm0, %v2576_v0 }
 0x304   :  { %v2581_v20 = vadd.f32 %v2580_v58, %v2394_v40  ;;  %8368 = vmatpush3.msra.mxu0 %v9668_v35  ;;  %v2332_v40 = vadd.f32 %v2300_v21, %v9848_v4  ;;  %v11053_v58 = vld [vmem:[#allocation43_spill] sm:$0xff]  ;;  %v2397_v36 = vadd.f32 %v2365_v33, %v2333_v57 }
 0x305   :  { %8369 = vmatprep.subr.mxu0 %v9673_v39  ;;  %v2366_v0 = vmul.f32 2.4801588e-05, %v11053_v58  ;;  %v11055_v33 = vld [vmem:[#allocation15_spill] sm:$0xff] }
 0x306   :  { %8370 = vmatpush3.msra.mxu0 %v9673_v39  ;;  %8350 = vmatprep.mubr.msk.f32.mxu0 %vm511_vm0, %v2581_v20  ;;  %v2396_v23 = vadd.f32 %v2364_v15, %v2332_v40  ;;  %v2304_v40 = vmul.f32 0.0001984127, %v11055_v33 }
 0x307   :  { %8371 = vmatprep.subr.mxu0 %v9658_v37  ;;  %8351 = vmatmul.mubr.msk.f32.gmra.mxu0 %vm511_vm0, %v2586_v62  ;;  %v2335_v62 = vadd.f32 %v2303_v61, %v9864_v18  ;;  %v2398_v24 = vadd.f32 %v2366_v0, %v2334_v45  ;;  %v11057_v61 = vld [vmem:[#allocation45_spill] sm:$0xff]  ;;  %v11060_v45 = vld [vmem:[#allocation16_spill] sm:$0xff] }
 0x308   :  { %8372 = vmatpush3.msra.mxu0 %v9658_v37 }
 0x309   :  { %8373 = vmatprep.subr.mxu0 %v9664_v3  ;;  %v2399_v16 = vadd.f32 %v2367_v44, %v2335_v62 }
 0x30a   :  { %8374 = vmatpush3.msra.mxu0 %v9664_v3 }
 0x30b   :  { %8395 = vmatprep.subr.mxu0 %v9739_v28 }
 0x30e   :  { %v8251_v25 = vpop.f32.mrf.mxu1 }
 0x30f   :  { %v2673_v20 = vadd.f32 %v8251_v25, %v2397_v36  ;;  %v2305_v25 = vmul.f32 0.0001984127, %v11056_v53  ;;  %v11059_v36 = vld [vmem:[#allocation17_spill] sm:$0xff]  ;;  %v11064_v53 = vld [vmem:[#allocation22_spill] sm:$0xff] }
 0x310   :  { %v2667_v63 = vpop.f32.mrf.mxu1 }
 0x311   :  { %v2668_v38 = vadd.f32 %v2667_v63, %v2396_v23  ;;  %v2368_v23 = vmul.f32 2.4801588e-05, %v11057_v61  ;;  %v2306_v63 = vmul.f32 0.0001984127, %v11059_v36  ;;  %v2337_v44 = vadd.f32 %v2305_v25, %v9852_v49 }
 0x312   :  { %v8254_v21 = vpop.f32.mrf.mxu1 }
 0x313   :  { %8361 = vmatprep.mubr.msk.f32.mxu1 %vm511_vm0, %v2668_v38  ;;  %v2683_v57 = vadd.f32 %v8254_v21, %v2399_v16  ;;  %v2336_v16 = vadd.f32 %v2304_v40, %v9848_v4  ;;  %v11061_v21 = vld [vmem:[#allocation47_spill] sm:$0xff]  ;;  %v2338_v25 = vadd.f32 %v2306_v63, %v9859_v48  ;;  %v11067_v63 = vld [vmem:[#allocation21_spill] sm:$0xff] }
 0x314   :  { %v2677_v10 = vpop.f32.mrf.mxu1  ;;  %8362 = vmatmul.mubr.msk.f32.vlgmr.msra.gmra.mxu1 %vm511_vm0, %v2673_v20  ;;  %v2307_v20 = vmul.f32 0.0001984127, %v11060_v45 }
 0x315   :  { %v2678_v15 = vadd.f32 %v2677_v10, %v2398_v24  ;;  %8382 = vmatpush3.msra.mxu1 %v9687_v11  ;;  %v11058_v10 = vld [vmem:[#allocation44_spill] sm:$0xff]  ;;  %v2400_v62 = vadd.f32 %v2368_v23, %v2336_v16  ;;  %v2370_v24 = vmul.f32 2.4801588e-05, %v11061_v21  ;;  %v11065_v23 = vld [vmem:[#allocation49_spill] sm:$0xff] }
 0x316   :  { %8383 = vmatprep.subr.mxu1 %v9696_v32  ;;  %v2369_v0 = vmul.f32 2.4801588e-05, %v11058_v10  ;;  %v11062_v10 = vld [vmem:[#allocation46_spill] sm:$0xff]  ;;  %v2339_v45 = vadd.f32 %v2307_v20, %v9864_v18  ;;  %v2372_v16 = vmul.f32 2.4801588e-05, %v11065_v23 }
 0x317   :  { %8384 = vmatpush3.msra.mxu1 %v9696_v32  ;;  %8364 = vmatprep.mubr.msk.f32.mxu1 %vm511_vm0, %v2678_v15  ;;  %v2371_v40 = vmul.f32 2.4801588e-05, %v11062_v10  ;;  %v2309_v32 = vmul.f32 0.0001984127, %v11064_v53 }
 0x318   :  { %8385 = vmatprep.subr.mxu1 %v9677_v52  ;;  %8365 = vmatmul.mubr.msk.f32.gmra.mxu1 %vm511_vm0, %v2683_v57  ;;  %v2401_v15 = vadd.f32 %v2369_v0, %v2337_v44  ;;  %v2402_v0 = vadd.f32 %v2370_v24, %v2338_v25  ;;  %v11066_v44 = vld [vmem:[#allocation48_spill] sm:$0xff] }
 0x319   :  { %8386 = vmatpush3.msra.mxu1 %v9677_v52  ;;  %v8265_v38 = vpop.f32.mrf.mxu0  ;;  %v11063_v52 = vld [vmem:[#allocation19_spill] sm:$0xff]  ;;  %v2373_v21 = vmul.f32 2.4801588e-05, %v11066_v44  ;;  %v2403_v7 = vadd.f32 %v2371_v40, %v2339_v45 }
 0x31a   :  { %8387 = vmatprep.subr.mxu1 %v9683_v13  ;;  %v2308_v36 = vmul.f32 0.0001984127, %v11063_v52  ;;  %v2770_v33 = vadd.f32 %v8265_v38, %v2401_v15  ;;  %v2341_v38 = vadd.f32 %v2309_v32, %v9852_v49  ;;  %v11068_v15 = vld [vmem:[#allocation20_spill] sm:$0xff]  ;;  %v11069_v45 = vld [vmem:[#allocation51_spill] sm:$0xff] }
 0x31b   :  { %8388 = vmatpush3.msra.mxu1 %v9683_v13  ;;  %v2764_v57 = vpop.f32.mrf.mxu0  ;;  %v2311_v23 = vmul.f32 0.0001984127, %v11068_v15  ;;  %v2374_v40 = vmul.f32 2.4801588e-05, %v11069_v45 }
 0x31c   :  { %8409 = vmatprep.subr.mxu1 %v9729_v43  ;;  %v2765_v61 = vadd.f32 %v2764_v57, %v2400_v62  ;;  %v2340_v62 = vadd.f32 %v2308_v36, %v9848_v4  ;;  %v2310_v57 = vmul.f32 0.0001984127, %v11067_v63  ;;  %v2405_v25 = vadd.f32 %v2373_v21, %v2341_v38 }
 0x31d   :  { %v8268_v13 = vpop.f32.mrf.mxu0 }
 0x31e   :  { %8375 = vmatprep.mubr.msk.f32.mxu0 %vm511_vm0, %v2765_v61  ;;  %v2780_v61 = vadd.f32 %v8268_v13, %v2403_v7  ;;  %v2404_v24 = vadd.f32 %v2372_v16, %v2340_v62  ;;  %v2342_v32 = vadd.f32 %v2310_v57, %v9859_v48  ;;  %v2343_v7 = vadd.f32 %v2311_v23, %v9864_v18  ;;  %v11072_v23 = vld [vmem:[#allocation93_spill] sm:$0xff] }
 0x31f   :  { %v2774_v10 = vpop.f32.mrf.mxu0  ;;  %8376 = vmatmul.mubr.msk.f32.vlgmr.msra.gmra.mxu0 %vm511_vm0, %v2770_v33 }
 0x320   :  { %v2775_v53 = vadd.f32 %v2774_v10, %v2402_v0  ;;  %8396 = vmatpush3.msra.mxu0 %v9739_v28  ;;  %v11070_v10 = vld [vmem:[#allocation50_spill] sm:$0xff] }
 0x321   :  { %v8279_v20 = vpop.f32.mrf.mxu1  ;;  %8397 = vmatprep.subr.mxu0 %v9745_v12  ;;  %v2375_v36 = vmul.f32 2.4801588e-05, %v11070_v10  ;;  %v11082_v10 = vld [vmem:[#allocation24_spill] sm:$0xff] }
 0x322   :  { %8398 = vmatpush3.msra.mxu0 %v9745_v12  ;;  %8378 = vmatprep.mubr.msk.f32.mxu0 %vm511_vm0, %v2775_v53  ;;  %v2867_v13 = vadd.f32 %v8279_v20, %v2405_v25  ;;  %v2406_v53 = vadd.f32 %v2374_v40, %v2342_v32  ;;  %v11071_v20 = vld [vmem:[#allocation97_spill] sm:$0xff]  ;;  %v11074_v40 = vld [vmem:[#allocation28_spill] sm:$0xff] }
 0x323   :  { %v2861_v33 = vpop.f32.mrf.mxu1  ;;  %8399 = vmatprep.subr.mxu0 %v9727_v51  ;;  %8379 = vmatmul.mubr.msk.f32.gmra.mxu0 %vm511_vm0, %v2780_v61  ;;  %v2407_v16 = vadd.f32 %v2375_v36, %v2343_v7  ;;  %v11073_v61 = vld [vmem:[#allocation23_spill] sm:$0xff]  ;;  %v2317_v25 = vmul.f32 0.0001984127, %v11074_v40  ;;  %v11077_v7 = vld [vmem:[#allocation26_spill] sm:$0xff] }
 0x324   :  { %v2862_v0 = vadd.f32 %v2861_v33, %v2404_v24  ;;  %8400 = vmatpush3.msra.mxu0 %v9727_v51  ;;  %v2316_v24 = vmul.f32 0.0001984127, %v11073_v61  ;;  %v11075_v33 = vld [vmem:[#allocation54_spill] sm:$0xff]  ;;  %v11081_v51 = vld [vmem:[#allocation55_spill] sm:$0xff] }
 0x325   :  { %v8282_v21 = vpop.f32.mrf.mxu1  ;;  %8401 = vmatprep.subr.mxu0 %v9731_v41  ;;  %v2380_v36 = vmul.f32 2.4801588e-05, %v11075_v33 }
 0x326   :  { %8389 = vmatprep.mubr.msk.f32.mxu1 %vm511_vm0, %v2862_v0  ;;  %8402 = vmatpush3.msra.mxu0 %v9731_v41  ;;  %v2877_v57 = vadd.f32 %v8282_v21, %v2407_v16  ;;  %v11076_v0 = vld [vmem:[#allocation53_spill] sm:$0xff]  ;;  %v2312_v21 = vmul.f32 0.0001984127, %v11077_v7 }
 0x327   :  { %v2871_v62 = vpop.f32.mrf.mxu1  ;;  %8390 = vmatmul.mubr.msk.f32.vlgmr.msra.gmra.mxu1 %vm511_vm0, %v2867_v13  ;;  %8423 = vmatprep.subr.mxu0 %v9785_v59  ;;  %v2381_v32 = vmul.f32 2.4801588e-05, %v11076_v0  ;;  %v2348_v13 = vadd.f32 %v2316_v24, %v9848_v4  ;;  %v2377_v0 = vmul.f32 2.4801588e-05, %v11081_v51  ;;  %v2319_v24 = vmul.f32 0.0001984127, %v11082_v10 }
 0x328   :  { %v2872_v38 = vadd.f32 %v2871_v62, %v2406_v53  ;;  %8410 = vmatpush3.msra.mxu1 %v9729_v43  ;;  %v11078_v53 = vld [vmem:[#allocation25_spill] sm:$0xff]  ;;  %v2349_v62 = vadd.f32 %v2317_v25, %v9852_v49  ;;  %v2344_v7 = vadd.f32 %v2312_v21, %v9848_v4  ;;  %v11085_v51 = vld [vmem:[#allocation64_spill] sm:$0xff] }
 0x329   :  { %8411 = vmatprep.subr.mxu1 %v11071_v20  ;;  %v2318_v16 = vmul.f32 0.0001984127, %v11078_v53  ;;  %v11083_v25 = vld [vmem:[#allocation29_spill] sm:$0xff]  ;;  %v2378_v10 = vmul.f32 2.4801588e-05, %v11085_v51 }
 0x32a   :  { %8412 = vmatpush3.msra.mxu1 %v11071_v20  ;;  %8392 = vmatprep.mubr.msk.f32.mxu1 %vm511_vm0, %v2872_v38  ;;  %v11080_v20 = vld [vmem:[#allocation60_spill] sm:$0xff]  ;;  %v2413_v41 = vadd.f32 %v2381_v32, %v2349_v62  ;;  %v2314_v12 = vmul.f32 0.0001984127, %v11083_v25 }
 0x32b   :  { %8413 = vmatprep.subr.mxu1 %v11072_v23  ;;  %8393 = vmatmul.mubr.msk.f32.gmra.mxu1 %vm511_vm0, %v2877_v57  ;;  %v2313_v57 = vmul.f32 0.0001984127, %v9227_v1  ;;  %v2382_v40 = vmul.f32 2.4801588e-05, %v11080_v20  ;;  %v2350_v53 = vadd.f32 %v2318_v16, %v9859_v48 }
 0x32c   :  { %8414 = vmatpush3.msra.mxu1 %v11072_v23  ;;  %v11079_v23 = vld [vmem:[#allocation58_spill] sm:$0xff] }
 0x32d   :  { %8415 = vmatprep.subr.mxu1 %v9725_v56  ;;  %v2376_v61 = vmul.f32 2.4801588e-05, %v11079_v23  ;;  %v11084_v23 = vld [vmem:[#allocation57_spill] sm:$0xff]  ;;  %v2414_v62 = vadd.f32 %v2382_v40, %v2350_v53  ;;  %v11086_v40 = vld [vmem:[#allocation62_spill] sm:$0xff] }
 0x32e   :  { %8416 = vmatpush3.msra.mxu1 %v9725_v56  ;;  %v2412_v56 = vadd.f32 %v2380_v36, %v2348_v13  ;;  %v2345_v36 = vadd.f32 %v2313_v57, %v9852_v49  ;;  %v2383_v1 = vmul.f32 2.4801588e-05, %v11084_v23  ;;  %v2379_v53 = vmul.f32 2.4801588e-05, %v11086_v40 }
 0x32f   :  { %8437 = vmatprep.subr.mxu1 %v9796_v17  ;;  %v2408_v32 = vadd.f32 %v2376_v61, %v2344_v7  ;;  %v2346_v61 = vadd.f32 %v2314_v12, %v9859_v48 }
 0x337   :  { %v8307_v38 = vpop.f32.mrf.mxu1 }
 0x338   :  { %v3061_v15 = vadd.f32 %v8307_v38, %v2413_v41  ;;  %v2315_v41 = vmul.f32 0.0001984127, %v9210_v50  ;;  %v11127_v50 = vld [vmem:[#allocation22_spill] sm:$0xff] }
 0x339   :  { %v3055_v33 = vpop.f32.mrf.mxu1  ;;  %v2177_v40 = vmul.f32 0.041666668, %v11127_v50 }
 0x33a   :  { %v3056_v45 = vadd.f32 %v3055_v33, %v2412_v56  ;;  %v2409_v56 = vadd.f32 %v2377_v0, %v2345_v36  ;;  %v2351_v33 = vadd.f32 %v2319_v24, %v9864_v18  ;;  %v2347_v24 = vadd.f32 %v2315_v41, %v9864_v18 }
 0x33b   :  { %v8293_v13 = vpop.f32.mrf.mxu0  ;;  %v8310_v20 = vpop.f32.mrf.mxu1 }
 0x33c   :  { %8417 = vmatprep.mubr.msk.f32.mxu1 %vm511_vm0, %v3056_v45  ;;  %v2964_v7 = vadd.f32 %v8293_v13, %v2409_v56  ;;  %v2415_v45 = vadd.f32 %v2383_v1, %v2351_v33  ;;  %v2411_v1 = vadd.f32 %v2379_v53, %v2347_v24  ;;  %v11089_v56 = vld [vmem:[#allocation70_spill] sm:$0xff]  ;;  %v2323_v24 = vmul.f32 0.0001984127, %v9278_v31 }
 0x33d   :  { %v2958_v21 = vpop.f32.mrf.mxu0  ;;  %v3065_v16 = vpop.f32.mrf.mxu1  ;;  %8418 = vmatmul.mubr.msk.f32.vlgmr.msra.gmra.mxu1 %vm511_vm0, %v3061_v15  ;;  %v2410_v15 = vadd.f32 %v2378_v10, %v2346_v61  ;;  %v2385_v33 = vmul.f32 2.4801588e-05, %v11089_v56 }
 0x33e   :  { %v2959_v38 = vadd.f32 %v2958_v21, %v2408_v32  ;;  %v3066_v57 = vadd.f32 %v3065_v16, %v2414_v62  ;;  %8438 = vmatpush3.msra.mxu1 %v9796_v17  ;;  %v3071_v0 = vadd.f32 %v8310_v20, %v2415_v45  ;;  %v2320_v20 = vmul.f32 0.0001984127, %v9276_v30  ;;  %v11088_v32 = vld [vmem:[#allocation72_spill] sm:$0xff]  ;;  %v11091_v45 = vld [vmem:[#allocation33_spill] sm:$0xff] }
 0x33f   :  { %v8296_v25 = vpop.f32.mrf.mxu0  ;;  %8439 = vmatprep.subr.mxu1 %v9802_v29  ;;  %v2384_v62 = vmul.f32 2.4801588e-05, %v11088_v32  ;;  %v2322_v53 = vmul.f32 0.0001984127, %v11091_v45  ;;  %v11095_v30 = vld [vmem:[#allocation76_spill] sm:$0xff] }
 0x340   :  { %8403 = vmatprep.mubr.msk.f32.mxu0 %vm511_vm0, %v2959_v38  ;;  %8440 = vmatpush3.msra.mxu1 %v9802_v29  ;;  %v2974_v10 = vadd.f32 %v8296_v25, %v2411_v1  ;;  %v11087_v25 = vld [vmem:[#allocation34_spill] sm:$0xff]  ;;  %v2352_v21 = vadd.f32 %v2320_v20, %v9848_v4  ;;  %v11090_v38 = vld [vmem:[#allocation35_spill] sm:$0xff]  ;;  %v2387_v32 = vmul.f32 2.4801588e-05, %v11095_v30  ;;  %v2176_v30 = vmul.f32 0.041666668, %v11063_v52 }
 0x341   :  { %v2968_v36 = vpop.f32.mrf.mxu0  ;;  %8404 = vmatmul.mubr.msk.f32.vlgmr.msra.gmra.mxu0 %vm511_vm0, %v2964_v7  ;;  %8420 = vmatprep.mubr.msk.f32.mxu1 %vm511_vm0, %v3066_v57  ;;  %v2321_v13 = vmul.f32 0.0001984127, %v11087_v25  ;;  %v2324_v57 = vmul.f32 0.0001984127, %v11090_v38  ;;  %v2325_v7 = vmul.f32 0.0001984127, %v9309_v14 }
 0x342   :  { %v2969_v12 = vadd.f32 %v2968_v36, %v2410_v15  ;;  %8424 = vmatpush3.msra.mxu0 %v9785_v59  ;;  %8441 = vmatprep.subr.mxu1 %v9783_v46  ;;  %v2416_v61 = vadd.f32 %v2384_v62, %v2352_v21  ;;  %v11092_v36 = vld [vmem:[#allocation77_spill] sm:$0xff]  ;;  %v11094_v20 = vld [vmem:[#allocation78_spill] sm:$0xff] }
 0x343   :  { %8421 = vmatmul.mubr.msk.f32.gmra.mxu1 %vm511_vm0, %v3071_v0  ;;  %8425 = vmatprep.subr.mxu0 %v9790_v9  ;;  %v2353_v16 = vadd.f32 %v2321_v13, %v9852_v49  ;;  %v2386_v56 = vmul.f32 2.4801588e-05, %v11094_v20  ;;  %v2356_v62 = vadd.f32 %v2324_v57, %v9848_v4  ;;  %v2357_v21 = vadd.f32 %v2325_v7, %v9852_v49 }
 0x344   :  { %8442 = vmatpush3.msra.mxu1 %v9783_v46  ;;  %8426 = vmatpush3.msra.mxu0 %v9790_v9  ;;  %v2327_v4 = vmul.f32 0.0001984127, %v9295_v2 }
 0x345   :  { %8443 = vmatprep.subr.mxu1 %v9788_v34  ;;  %8406 = vmatprep.mubr.msk.f32.mxu0 %vm511_vm0, %v2969_v12  ;;  %v2417_v15 = vadd.f32 %v2385_v33, %v2353_v16  ;;  %v2388_v12 = vmul.f32 2.4801588e-05, %v11092_v36  ;;  %v2354_v33 = vadd.f32 %v2322_v53, %v9859_v48  ;;  %v2355_v16 = vadd.f32 %v2323_v24, %v9864_v18  ;;  %v11097_v53 = vld [vmem:[#allocation83_spill] sm:$0xff] }
 0x346   :  { %8427 = vmatprep.subr.mxu0 %v9779_v60  ;;  %8444 = vmatpush3.msra.mxu1 %v9788_v34  ;;  %v2390_v24 = vmul.f32 2.4801588e-05, %v11097_v53 }
 0x347   :  { %8407 = vmatmul.mubr.msk.f32.gmra.mxu0 %vm511_vm0, %v2974_v10  ;;  %8465 = vmatprep.subr.mxu1 %v9643_v42  ;;  %v11093_v10 = vld [vmem:[#allocation74_spill] sm:$0xff]  ;;  %v2419_v49 = vadd.f32 %v2387_v32, %v2355_v16  ;;  %v2359_v32 = vadd.f32 %v2327_v4, %v9864_v18  ;;  %v11104_v16 = vld [vmem:[#allocation11_spill] sm:$0xff]  ;;  %v11106_v4 = vld [vmem:[#allocation40_spill] sm:$0xff] }
 0x348   :  { %8428 = vmatpush3.msra.mxu0 %v9779_v60  ;;  %v2389_v25 = vmul.f32 2.4801588e-05, %v11093_v10 }
 0x349   :  { %8429 = vmatprep.subr.mxu0 %v9781_v27 }
 0x34a   :  { %8430 = vmatpush3.msra.mxu0 %v9781_v27 }
 0x34b   :  { %8451 = vmatprep.subr.mxu0 %v9606_v47 }
 0x352   :  { %v8321_v41 = vpop.f32.mrf.mxu0 }
 0x353   :  { %v3158_v13 = vadd.f32 %v8321_v41, %v2417_v15  ;;  %v2421_v41 = vadd.f32 %v2389_v25, %v2357_v21  ;;  %v2418_v15 = vadd.f32 %v2386_v56, %v2354_v33  ;;  %v11099_v56 = vld [vmem:[#allocation85_spill] sm:$0xff] }
 0x354   :  { %v3152_v0 = vpop.f32.mrf.mxu0  ;;  %v11100_v21 = vld [vmem:[#allocation89_spill] sm:$0xff] }
 0x355   :  { %v3153_v1 = vadd.f32 %v3152_v0, %v2416_v61  ;;  %v2420_v61 = vadd.f32 %v2388_v12, %v2356_v62  ;;  %v11096_v0 = vld [vmem:[#allocation37_spill] sm:$0xff]  ;;  %v11098_v62 = vld [vmem:[#allocation82_spill] sm:$0xff] }
 0x356   :  { %v2326_v10 = vmul.f32 0.0001984127, %v11096_v0 }
 0x357   :  { %v8335_v14 = vpop.f32.mrf.mxu1  ;;  %8431 = vmatprep.mubr.msk.f32.mxu0 %vm511_vm0, %v3153_v1 }
 0x358   :  { %v8324_v38 = vpop.f32.mrf.mxu0  ;;  %8432 = vmatmul.mubr.msk.f32.vlgmr.msra.gmra.mxu0 %vm511_vm0, %v3158_v13  ;;  %v3255_v1 = vadd.f32 %v8335_v14, %v2421_v41  ;;  %v2391_v13 = vmul.f32 2.4801588e-05, %v11098_v62  ;;  %v11105_v41 = vld [vmem:[#allocation13_spill] sm:$0xff] }
 0x359   :  { %v3249_v31 = vpop.f32.mrf.mxu1  ;;  %8452 = vmatpush3.msra.mxu0 %v9606_v47  ;;  %v3168_v25 = vadd.f32 %v8324_v38, %v2419_v49  ;;  %v2358_v47 = vadd.f32 %v2326_v10, %v9859_v48  ;;  %v11101_v48 = vld [vmem:[#allocation86_spill] sm:$0xff]  ;;  %v11102_v10 = vld [vmem:[#allocation87_spill] sm:$0xff]  ;;  %v2228_v49 = vmul.f32 0.008333334, %v11106_v4 }
 0x35a   :  { %v3162_v57 = vpop.f32.mrf.mxu0  ;;  %v3250_v7 = vadd.f32 %v3249_v31, %v2420_v61  ;;  %8453 = vmatprep.subr.mxu0 %v9609_v54  ;;  %v2164_v61 = vmul.f32 0.041666668, %v11104_v16 }
 0x35b   :  { %v3163_v12 = vadd.f32 %v3162_v57, %v2418_v15  ;;  %8454 = vmatpush3.msra.mxu0 %v9609_v54  ;;  %v2422_v14 = vadd.f32 %v2390_v24, %v2358_v47  ;;  %v2423_v54 = vadd.f32 %v2391_v13, %v2359_v32  ;;  %v2165_v15 = vmul.f32 0.041666668, %v11105_v41  ;;  %v11107_v57 = vld [vmem:[#allocation39_spill] sm:$0xff] }
 0x35c   :  { %8445 = vmatprep.mubr.msk.f32.mxu1 %vm511_vm0, %v3250_v7  ;;  %8455 = vmatprep.subr.mxu0 %v11099_v56  ;;  %v2229_v7 = vmul.f32 0.008333334, %v11107_v57  ;;  %v11108_v24 = vld [vmem:[#allocation71_spill] sm:$0xff]  ;;  %v2167_v32 = vmul.f32 0.041666668, %v9005_v19 }
 0x35d   :  { %v8338_v31 = vpop.f32.mrf.mxu1  ;;  %8434 = vmatprep.mubr.msk.f32.mxu0 %vm511_vm0, %v3163_v12  ;;  %8446 = vmatmul.mubr.msk.f32.vlgmr.msra.gmra.mxu1 %vm511_vm0, %v3255_v1  ;;  %v2196_v1 = vadd.f32 %v2164_v61, %v11108_v24  ;;  %v11109_v12 = vld [vmem:[#allocation12_spill] sm:$0xff] }
 0x35e   :  { %8435 = vmatmul.mubr.msk.f32.gmra.mxu0 %vm511_vm0, %v3168_v25  ;;  %8466 = vmatpush3.msra.mxu1 %v9643_v42  ;;  %v3265_v18 = vadd.f32 %v8338_v31, %v2423_v54  ;;  %v11103_v42 = vld [vmem:[#allocation88_spill] sm:$0xff]  ;;  %v2166_v13 = vmul.f32 0.041666668, %v11109_v12  ;;  %v11110_v25 = vld [vmem:[#allocation69_spill] sm:$0xff] }
 0x35f   :  { %v3259_v38 = vpop.f32.mrf.mxu1  ;;  %8456 = vmatpush3.msra.mxu0 %v11099_v56  ;;  %8467 = vmatprep.subr.mxu1 %v11100_v21  ;;  %v2197_v56 = vadd.f32 %v2165_v15, %v11110_v25  ;;  %v2260_v31 = vadd.f32 %v2228_v49, %v2196_v1  ;;  %v2168_v1 = vmul.f32 0.041666668, %v9049_v6 }
 0x360   :  { %v3260_v33 = vadd.f32 %v3259_v38, %v2422_v14  ;;  %8457 = vmatprep.subr.mxu0 %v11101_v48  ;;  %8468 = vmatpush3.msra.mxu1 %v11100_v21  ;;  %v2230_v14 = vmul.f32 0.008333334, %v9360_v5  ;;  %v2231_v21 = vmul.f32 0.008333334, %v9354_v55 }
 0x361   :  { %8458 = vmatpush3.msra.mxu0 %v11101_v48  ;;  %8469 = vmatprep.subr.mxu1 %v11102_v10  ;;  %v2261_v54 = vadd.f32 %v2229_v7, %v2197_v56  ;;  %v11111_v48 = vld [vmem:[#allocation63_spill] sm:$0xff] }
 0x362   :  { %8448 = vmatprep.mubr.msk.f32.mxu1 %vm511_vm0, %v3260_v33  ;;  %8479 = vmatprep.subr.mxu0 %v9668_v35 }
 0x363   :  { %8449 = vmatmul.mubr.msk.f32.gmra.mxu1 %vm511_vm0, %v3265_v18  ;;  %v2198_v18 = vadd.f32 %v2166_v13, %v11111_v48  ;;  %v11114_v13 = vld [vmem:[#allocation14_spill] sm:$0xff] }
 0x364   :  { %8470 = vmatpush3.msra.mxu1 %v11102_v10  ;;  %v2170_v56 = vmul.f32 0.041666668, %v11114_v13 }
 0x365   :  { %8471 = vmatprep.subr.mxu1 %v11103_v42  ;;  %v2262_v15 = vadd.f32 %v2230_v14, %v2198_v18  ;;  %v2234_v14 = vmul.f32 0.008333334, %v11053_v58 }
 0x366   :  { %8472 = vmatpush3.msra.mxu1 %v11103_v42  ;;  %v11112_v42 = vld [vmem:[#allocation61_spill] sm:$0xff]  ;;  %v2202_v18 = vadd.f32 %v2170_v56, %v11111_v48  ;;  %v11118_v56 = vld [vmem:[#allocation18_spill] sm:$0xff] }
 0x367   :  { %8493 = vmatprep.subr.mxu1 %v9687_v11  ;;  %v2199_v61 = vadd.f32 %v2167_v32, %v11112_v42  ;;  %v2171_v32 = vmul.f32 0.041666668, %v9051_v8 }
 0x369   :  { %v2263_v62 = vadd.f32 %v2231_v21, %v2199_v61  ;;  %v2203_v61 = vadd.f32 %v2171_v32, %v11112_v42  ;;  %v11119_v32 = vld [vmem:[#allocation45_spill] sm:$0xff] }
 0x3c3   :  { %v8349_v47 = vpop.f32.mrf.mxu0 }
 0x3c4   :  { %v3352_v10 = vadd.f32 %v8349_v47, %v2261_v54 }
 0x3c5   :  { %v3346_v38 = vpop.f32.mrf.mxu0 }
 0x3c6   :  { %v3347_v33 = vadd.f32 %v3346_v38, %v2260_v31  ;;  %v11115_v38 = vld [vmem:[#allocation42_spill] sm:$0xff] }
 0x3c7   :  { %v8352_v2 = vpop.f32.mrf.mxu0  ;;  %v2235_v21 = vmul.f32 0.008333334, %v11115_v38 }
 0x3c8   :  { %8459 = vmatprep.mubr.msk.f32.mxu0 %vm511_vm0, %v3347_v33  ;;  %v3362_v7 = vadd.f32 %v8352_v2, %v2263_v62  ;;  %v2232_v2 = vmul.f32 0.008333334, %v9374_v22  ;;  %v2200_v62 = vadd.f32 %v2168_v1, %v11108_v24 }
 0x3c9   :  { %v3356_v36 = vpop.f32.mrf.mxu0  ;;  %8460 = vmatmul.mubr.msk.f32.vlgmr.msra.gmra.mxu0 %vm511_vm0, %v3352_v10 }
 0x3ca   :  { %v3357_v49 = vadd.f32 %v3356_v36, %v2262_v15  ;;  %8480 = vmatpush3.msra.mxu0 %v9668_v35  ;;  %v2169_v36 = vmul.f32 0.041666668, %v9068_v26  ;;  %v11113_v35 = vld [vmem:[#allocation41_spill] sm:$0xff]  ;;  %v2264_v31 = vadd.f32 %v2232_v2, %v2200_v62  ;;  %v11116_v2 = vld [vmem:[#allocation15_spill] sm:$0xff] }
 0x3cb   :  { %8481 = vmatprep.subr.mxu0 %v9673_v39 }
 0x3cc   :  { %8482 = vmatpush3.msra.mxu0 %v9673_v39  ;;  %8462 = vmatprep.mubr.msk.f32.mxu0 %vm511_vm0, %v3357_v49  ;;  %v2233_v39 = vmul.f32 0.008333334, %v11113_v35  ;;  %v2266_v49 = vadd.f32 %v2234_v14, %v2202_v18  ;;  %v11120_v14 = vld [vmem:[#allocation90_spill] sm:$0xff] }
 0x3cd   :  { %8483 = vmatprep.subr.mxu0 %v9658_v37  ;;  %8463 = vmatmul.mubr.msk.f32.gmra.mxu0 %vm511_vm0, %v3362_v7  ;;  %v2267_v7 = vadd.f32 %v2235_v21, %v2203_v61  ;;  %v11122_v21 = vld [vmem:[#allocation17_spill] sm:$0xff]  ;;  %v11123_v61 = vld [vmem:[#allocation91_spill] sm:$0xff] }
 0x3ce   :  { %8484 = vmatpush3.msra.mxu0 %v9658_v37  ;;  %v2201_v37 = vadd.f32 %v2169_v36, %v11110_v25 }
 0x3cf   :  { %8485 = vmatprep.subr.mxu0 %v9664_v3 }
 0x3d0   :  { %8486 = vmatpush3.msra.mxu0 %v9664_v3  ;;  %v2265_v54 = vadd.f32 %v2233_v39, %v2201_v37  ;;  %v2172_v39 = vmul.f32 0.041666668, %v11116_v2  ;;  %v11117_v37 = vld [vmem:[#allocation92_spill] sm:$0xff] }
 0x3d1   :  { %8507 = vmatprep.subr.mxu0 %v9739_v28 }
 0x3d4   :  { %v8363_v47 = vpop.f32.mrf.mxu1 }
 0x3d5   :  { %v3449_v10 = vadd.f32 %v8363_v47, %v2265_v54  ;;  %v2173_v47 = vmul.f32 0.041666668, %v11118_v56  ;;  %v11121_v54 = vld [vmem:[#allocation44_spill] sm:$0xff] }
 0x3d6   :  { %v3443_v3 = vpop.f32.mrf.mxu1 }
 0x3d7   :  { %v3444_v33 = vadd.f32 %v3443_v3, %v2264_v31  ;;  %v2236_v31 = vmul.f32 0.008333334, %v11119_v32  ;;  %v2237_v3 = vmul.f32 0.008333334, %v11121_v54  ;;  %v2205_v18 = vadd.f32 %v2173_v47, %v11110_v25 }
 0x3d8   :  { %v8366_v15 = vpop.f32.mrf.mxu1 }
 0x3d9   :  { %8473 = vmatprep.mubr.msk.f32.mxu1 %vm511_vm0, %v3444_v33  ;;  %v3459_v62 = vadd.f32 %v8366_v15, %v2267_v7  ;;  %v2174_v33 = vmul.f32 0.041666668, %v11122_v21  ;;  %v11124_v15 = vld [vmem:[#allocation16_spill] sm:$0xff] }
 0x3da   :  { %v3453_v1 = vpop.f32.mrf.mxu1  ;;  %8474 = vmatmul.mubr.msk.f32.vlgmr.msra.gmra.mxu1 %vm511_vm0, %v3449_v10 }
 0x3db   :  { %v3454_v36 = vadd.f32 %v3453_v1, %v2266_v49  ;;  %8494 = vmatpush3.msra.mxu1 %v9687_v11  ;;  %v2204_v11 = vadd.f32 %v2172_v39, %v11108_v24  ;;  %v2175_v49 = vmul.f32 0.041666668, %v11124_v15  ;;  %v11125_v1 = vld [vmem:[#allocation47_spill] sm:$0xff]  ;;  %v2206_v47 = vadd.f32 %v2174_v33, %v11111_v48 }
 0x3dc   :  { %8495 = vmatprep.subr.mxu1 %v11117_v37  ;;  %v2178_v33 = vmul.f32 0.041666668, %v11067_v63  ;;  %v11147_v63 = vld [vmem:[#allocation24_spill] sm:$0xff] }
 0x3dd   :  { %8496 = vmatpush3.msra.mxu1 %v11117_v37  ;;  %8476 = vmatprep.mubr.msk.f32.mxu1 %vm511_vm0, %v3454_v36  ;;  %v2268_v7 = vadd.f32 %v2236_v31, %v2204_v11  ;;  %v2238_v36 = vmul.f32 0.008333334, %v11125_v1  ;;  %v2207_v21 = vadd.f32 %v2175_v49, %v11112_v42  ;;  %v11128_v31 = vld [vmem:[#allocation49_spill] sm:$0xff] }
 0x3de   :  { %8497 = vmatprep.subr.mxu1 %v11120_v14  ;;  %8477 = vmatmul.mubr.msk.f32.gmra.mxu1 %vm511_vm0, %v3459_v62  ;;  %v2269_v62 = vadd.f32 %v2237_v3, %v2205_v18  ;;  %v2240_v11 = vmul.f32 0.008333334, %v11128_v31  ;;  %v2241_v18 = vmul.f32 0.008333334, %v11066_v44 }
 0x3df   :  { %8498 = vmatpush3.msra.mxu1 %v11120_v14  ;;  %v8377_v10 = vpop.f32.mrf.mxu0  ;;  %v11126_v14 = vld [vmem:[#allocation46_spill] sm:$0xff]  ;;  %v2270_v3 = vadd.f32 %v2238_v36, %v2206_v47 }
 0x3e0   :  { %8499 = vmatprep.subr.mxu1 %v11123_v61  ;;  %v2239_v39 = vmul.f32 0.008333334, %v11126_v14  ;;  %v3546_v56 = vadd.f32 %v8377_v10, %v2269_v62  ;;  %v2209_v10 = vadd.f32 %v2177_v40, %v11110_v25  ;;  %v11129_v62 = vld [vmem:[#allocation20_spill] sm:$0xff]  ;;  %v11130_v36 = vld [vmem:[#allocation98_spill] sm:$0xff]  ;;  %v2210_v40 = vadd.f32 %v2178_v33, %v11111_v48  ;;  %v11135_v33 = vld [vmem:[#allocation97_spill] sm:$0xff] }
 0x3e1   :  { %8500 = vmatpush3.msra.mxu1 %v11123_v61  ;;  %v3540_v37 = vpop.f32.mrf.mxu0  ;;  %v2179_v50 = vmul.f32 0.041666668, %v11129_v62 }
 0x3e2   :  { %8521 = vmatprep.subr.mxu1 %v9729_v43  ;;  %v3541_v51 = vadd.f32 %v3540_v37, %v2268_v7  ;;  %v2271_v54 = vadd.f32 %v2239_v39, %v2207_v21  ;;  %v2208_v7 = vadd.f32 %v2176_v30, %v11108_v24  ;;  %v11131_v21 = vld [vmem:[#allocation51_spill] sm:$0xff]  ;;  %v2273_v44 = vadd.f32 %v2241_v18, %v2209_v10  ;;  %v11134_v18 = vld [vmem:[#allocation96_spill] sm:$0xff] }
 0x3e3   :  { %v8380_v61 = vpop.f32.mrf.mxu0  ;;  %v2242_v39 = vmul.f32 0.008333334, %v11131_v21 }
 0x3e4   :  { %8487 = vmatprep.mubr.msk.f32.mxu0 %vm511_vm0, %v3541_v51  ;;  %v3556_v51 = vadd.f32 %v8380_v61, %v2271_v54  ;;  %v2272_v47 = vadd.f32 %v2240_v11, %v2208_v7  ;;  %v2211_v61 = vadd.f32 %v2179_v50, %v11112_v42  ;;  %v11136_v50 = vld [vmem:[#allocation93_spill] sm:$0xff] }
 0x3e5   :  { %v3550_v1 = vpop.f32.mrf.mxu0  ;;  %8488 = vmatmul.mubr.msk.f32.vlgmr.msra.gmra.mxu0 %vm511_vm0, %v3546_v56  ;;  %v11132_v56 = vld [vmem:[#allocation50_spill] sm:$0xff]  ;;  %v2274_v7 = vadd.f32 %v2242_v39, %v2210_v40 }
 0x3e6   :  { %v3551_v37 = vadd.f32 %v3550_v1, %v2270_v3  ;;  %8508 = vmatpush3.msra.mxu0 %v9739_v28  ;;  %v2243_v1 = vmul.f32 0.008333334, %v11132_v56  ;;  %v11133_v3 = vld [vmem:[#allocation95_spill] sm:$0xff] }
 0x3e7   :  { %v8391_v49 = vpop.f32.mrf.mxu1  ;;  %8509 = vmatprep.subr.mxu0 %v11130_v36 }
 0x3e8   :  { %8510 = vmatpush3.msra.mxu0 %v11130_v36  ;;  %8490 = vmatprep.mubr.msk.f32.mxu0 %vm511_vm0, %v3551_v37  ;;  %v3643_v54 = vadd.f32 %v8391_v49, %v2273_v44  ;;  %v2275_v37 = vadd.f32 %v2243_v1, %v2211_v61  ;;  %v11137_v49 = vld [vmem:[#allocation94_spill] sm:$0xff] }
 0x3e9   :  { %v3637_v30 = vpop.f32.mrf.mxu1  ;;  %8511 = vmatprep.subr.mxu0 %v11133_v3  ;;  %8491 = vmatmul.mubr.msk.f32.gmra.mxu0 %vm511_vm0, %v3556_v51 }
 0x3ea   :  { %v3638_v28 = vadd.f32 %v3637_v30, %v2272_v47  ;;  %8512 = vmatpush3.msra.mxu0 %v11133_v3  ;;  %v11139_v47 = vld [vmem:[#allocation28_spill] sm:$0xff]  ;;  %v11140_v30 = vld [vmem:[#allocation54_spill] sm:$0xff] }
 0x3eb   :  { %v8394_v11 = vpop.f32.mrf.mxu1  ;;  %8513 = vmatprep.subr.mxu0 %v11134_v18  ;;  %v2185_v39 = vmul.f32 0.041666668, %v11139_v47  ;;  %v2248_v1 = vmul.f32 0.008333334, %v11140_v30 }
 0x3ec   :  { %8501 = vmatprep.mubr.msk.f32.mxu1 %vm511_vm0, %v3638_v28  ;;  %8514 = vmatpush3.msra.mxu0 %v11134_v18  ;;  %v3653_v44 = vadd.f32 %v8394_v11, %v2275_v37  ;;  %v11141_v28 = vld [vmem:[#allocation53_spill] sm:$0xff] }
 0x3ed   :  { %v3647_v10 = vpop.f32.mrf.mxu1  ;;  %8502 = vmatmul.mubr.msk.f32.vlgmr.msra.gmra.mxu1 %vm511_vm0, %v3643_v54  ;;  %8535 = vmatprep.subr.mxu0 %v9785_v59  ;;  %v2249_v3 = vmul.f32 0.008333334, %v11141_v28  ;;  %v11142_v54 = vld [vmem:[#allocation26_spill] sm:$0xff]  ;;  %v2217_v11 = vadd.f32 %v2185_v39, %v11110_v25  ;;  %v2187_v28 = vmul.f32 0.041666668, %v11147_v63 }
 0x3ee   :  { %v3648_v51 = vadd.f32 %v3647_v10, %v2274_v7  ;;  %8522 = vmatpush3.msra.mxu1 %v9729_v43  ;;  %v11138_v43 = vld [vmem:[#allocation23_spill] sm:$0xff]  ;;  %v2180_v61 = vmul.f32 0.041666668, %v11142_v54  ;;  %v11143_v7 = vld [vmem:[#allocation30_spill] sm:$0xff]  ;;  %v11148_v54 = vld [vmem:[#allocation60_spill] sm:$0xff] }
 0x3ef   :  { %8523 = vmatprep.subr.mxu1 %v11135_v33  ;;  %v2184_v36 = vmul.f32 0.041666668, %v11138_v43  ;;  %v2181_v37 = vmul.f32 0.041666668, %v11143_v7  ;;  %v11146_v43 = vld [vmem:[#allocation55_spill] sm:$0xff] }
 0x3f0   :  { %8524 = vmatpush3.msra.mxu1 %v11135_v33  ;;  %8504 = vmatprep.mubr.msk.f32.mxu1 %vm511_vm0, %v3648_v51  ;;  %v11144_v51 = vld [vmem:[#allocation58_spill] sm:$0xff]  ;;  %v11145_v33 = vld [vmem:[#allocation25_spill] sm:$0xff]  ;;  %v2245_v30 = vmul.f32 0.008333334, %v11146_v43  ;;  %v2250_v62 = vmul.f32 0.008333334, %v11148_v54  ;;  %v2219_v43 = vadd.f32 %v2187_v28, %v11112_v42 }
 0x3f1   :  { %8525 = vmatprep.subr.mxu1 %v11136_v50  ;;  %8505 = vmatmul.mubr.msk.f32.gmra.mxu1 %vm511_vm0, %v3653_v44  ;;  %v2216_v40 = vadd.f32 %v2184_v36, %v11108_v24  ;;  %v2244_v44 = vmul.f32 0.008333334, %v11144_v51  ;;  %v2212_v36 = vadd.f32 %v2180_v61, %v11108_v24  ;;  %v2213_v56 = vadd.f32 %v2181_v37, %v11110_v25 }
 0x3f2   :  { %8526 = vmatpush3.msra.mxu1 %v11136_v50  ;;  %v2186_v50 = vmul.f32 0.041666668, %v11145_v33 }
 0x3f3   :  { %8527 = vmatprep.subr.mxu1 %v11137_v49  ;;  %v2280_v10 = vadd.f32 %v2248_v1, %v2216_v40  ;;  %v2251_v1 = vmul.f32 0.008333334, %v11084_v23  ;;  %v2276_v40 = vadd.f32 %v2244_v44, %v2212_v36  ;;  %v11152_v44 = vld [vmem:[#allocation73_spill] sm:$0xff] }
 0x3f4   :  { %8528 = vmatpush3.msra.mxu1 %v11137_v49  ;;  %v2281_v49 = vadd.f32 %v2249_v3, %v2217_v11  ;;  %v2218_v3 = vadd.f32 %v2186_v50, %v11111_v48  ;;  %v2277_v11 = vadd.f32 %v2245_v30, %v2213_v56  ;;  %v11151_v30 = vld [vmem:[#allocation75_spill] sm:$0xff] }
 0x3f5   :  { %8549 = vmatprep.subr.mxu1 %v9796_v17 }
 0x3f6   :  { %v2282_v61 = vadd.f32 %v2250_v62, %v2218_v3  ;;  %v11149_v62 = vld [vmem:[#allocation66_spill] sm:$0xff]  ;;  %v2258_v3 = vmul.f32 0.008333334, %v11097_v53 }
 0x3fd   :  { %v8419_v18 = vpop.f32.mrf.mxu1 }
 0x3fe   :  { %v3837_v39 = vadd.f32 %v8419_v18, %v2281_v49  ;;  %v2283_v18 = vadd.f32 %v2251_v1, %v2219_v43  ;;  %v11153_v1 = vld [vmem:[#allocation81_spill] sm:$0xff] }
 0x3ff   :  { %v3831_v47 = vpop.f32.mrf.mxu1 }
 0x400   :  { %v3832_v21 = vadd.f32 %v3831_v47, %v2280_v10 }
 0x401   :  { %v8405_v7 = vpop.f32.mrf.mxu0 }
 0x402   :  { %8529 = vmatprep.mubr.msk.f32.mxu1 %vm511_vm0, %v3832_v21  ;;  %v3740_v25 = vadd.f32 %v8405_v7, %v2277_v11  ;;  %v2254_v7 = vmul.f32 0.008333334, %v11094_v20  ;;  %v11154_v11 = vld [vmem:[#allocation79_spill] sm:$0xff] }
 0x403   :  { %v8422_v33 = vpop.f32.mrf.mxu1  ;;  %v3734_v47 = vpop.f32.mrf.mxu0  ;;  %8530 = vmatmul.mubr.msk.f32.vlgmr.msra.gmra.mxu1 %vm511_vm0, %v3837_v39 }
 0x404   :  { %v3735_v24 = vadd.f32 %v3734_v47, %v2276_v40  ;;  %8550 = vmatpush3.msra.mxu1 %v9796_v17  ;;  %v3847_v21 = vadd.f32 %v8422_v33, %v2283_v18 }
 0x405   :  { %v3841_v37 = vpop.f32.mrf.mxu1  ;;  %8551 = vmatprep.subr.mxu1 %v9802_v29 }
 0x406   :  { %v3842_v10 = vadd.f32 %v3841_v37, %v2282_v61  ;;  %8515 = vmatprep.mubr.msk.f32.mxu0 %vm511_vm0, %v3735_v24  ;;  %8552 = vmatpush3.msra.mxu1 %v9802_v29  ;;  %v11150_v29 = vld [vmem:[#allocation65_spill] sm:$0xff]  ;;  %v11155_v61 = vld [vmem:[#allocation80_spill] sm:$0xff] }
 0x407   :  { %v8408_v42 = vpop.f32.mrf.mxu0  ;;  %8516 = vmatmul.mubr.msk.f32.vlgmr.msra.gmra.mxu0 %vm511_vm0, %v3740_v25  ;;  %8553 = vmatprep.subr.mxu1 %v9783_v46 }
 0x408   :  { %8532 = vmatprep.mubr.msk.f32.mxu1 %vm511_vm0, %v3842_v10  ;;  %8536 = vmatpush3.msra.mxu0 %v9785_v59  ;;  %v3750_v43 = vadd.f32 %v8408_v42, %v11150_v29  ;;  %v2190_v59 = vmul.f32 0.041666668, %v11091_v45 }
 0x409   :  { %v3744_v17 = vpop.f32.mrf.mxu0  ;;  %8533 = vmatmul.mubr.msk.f32.gmra.mxu1 %vm511_vm0, %v3847_v21  ;;  %8537 = vmatprep.subr.mxu0 %v9790_v9 }
 0x40a   :  { %v3745_v56 = vadd.f32 %v3744_v17, %v11149_v62  ;;  %8554 = vmatpush3.msra.mxu1 %v9783_v46  ;;  %8538 = vmatpush3.msra.mxu0 %v9790_v9  ;;  %v11156_v17 = vld [vmem:[#allocation84_spill] sm:$0xff] }
 0x40b   :  { %8555 = vmatprep.subr.mxu1 %v9788_v34  ;;  %8539 = vmatprep.subr.mxu0 %v9779_v60 }
 0x40c   :  { %8518 = vmatprep.mubr.msk.f32.mxu0 %vm511_vm0, %v3745_v56  ;;  %8556 = vmatpush3.msra.mxu1 %v9788_v34  ;;  %v2222_v34 = vadd.f32 %v2190_v59, %v11111_v48  ;;  %v2096_v56 = vmul.f32 0.5, %v11106_v4 }
 0x40d   :  { %8519 = vmatmul.mubr.msk.f32.gmra.mxu0 %vm511_vm0, %v3750_v43  ;;  %v2099_v43 = vmul.f32 0.5, %v9354_v55 }
 0x40e   :  { %8540 = vmatpush3.msra.mxu0 %v9779_v60  ;;  %v2286_v49 = vadd.f32 %v2254_v7, %v2222_v34  ;;  %v11159_v34 = vld [vmem:[#allocation59_spill] sm:$0xff] }
 0x40f   :  { %8541 = vmatprep.subr.mxu0 %v9781_v27  ;;  %v2066_v4 = vadd.f32 %v11159_v34, %v11109_v12  ;;  %v2103_v12 = vmul.f32 0.5, %v11115_v38 }
 0x410   :  { %8542 = vmatpush3.msra.mxu0 %v9781_v27  ;;  %v2194_v27 = vmul.f32 0.041666668, %v11096_v0 }
 0x412   :  { %v2226_v18 = vadd.f32 %v2194_v27, %v11111_v48  ;;  %v11157_v48 = vld [vmem:[#allocation68_spill] sm:$0xff] }
 0x413   :  { %v2064_v29 = vadd.f32 %v11157_v48, %v11104_v16  ;;  %v11160_v16 = vld [vmem:[#allocation67_spill] sm:$0xff] }
 0x414   :  { %v2290_v10 = vadd.f32 %v2258_v3, %v2226_v18  ;;  %v2065_v27 = vadd.f32 %v11160_v16, %v11105_v41  ;;  %v2068_v41 = vadd.f32 %v11157_v48, %v9049_v6  ;;  %v2070_v6 = vadd.f32 %v11159_v34, %v11114_v13 }
 0x415   :  { %v2128_v59 = vadd.f32 %v2096_v56, %v2064_v29  ;;  %v2072_v13 = vadd.f32 %v11157_v48, %v11116_v2  ;;  %v11161_v56 = vld [vmem:[#allocation47_spill] sm:$0xff]  ;;  %v11163_v2 = vld [vmem:[#allocation17_spill] sm:$0xff] }
 0x416   :  { %v2106_v29 = vmul.f32 0.5, %v11161_v56 }
 0x418   :  { %v8433_v46 = vpop.f32.mrf.mxu0 }
 0x419   :  { %v3934_v33 = vadd.f32 %v8433_v46, %v11152_v44  ;;  %v2097_v44 = vmul.f32 0.5, %v11107_v57  ;;  %v2100_v57 = vmul.f32 0.5, %v9374_v22  ;;  %v2101_v22 = vmul.f32 0.5, %v11113_v35 }
 0x41a   :  { %v3928_v9 = vpop.f32.mrf.mxu0 }
 0x41b   :  { %v3929_v28 = vadd.f32 %v3928_v9, %v11151_v30  ;;  %v11158_v9 = vld [vmem:[#allocation56_spill] sm:$0xff] }
 0x41c   :  { %v2067_v30 = vadd.f32 %v11158_v9, %v9005_v19  ;;  %v2129_v19 = vadd.f32 %v2097_v44, %v2065_v27  ;;  %v2071_v3 = vadd.f32 %v11158_v9, %v9051_v8  ;;  %v11164_v44 = vld [vmem:[#allocation18_spill] sm:$0xff] }
 0x41d   :  { %v8447_v50 = vpop.f32.mrf.mxu1  ;;  %8543 = vmatprep.mubr.msk.f32.mxu0 %vm511_vm0, %v3929_v28  ;;  %v2098_v28 = vmul.f32 0.5, %v9360_v5  ;;  %v11165_v27 = vld [vmem:[#allocation50_spill] sm:$0xff] }
 0x41e   :  { %v8436_v60 = vpop.f32.mrf.mxu0  ;;  %8544 = vmatmul.mubr.msk.f32.vlgmr.msra.gmra.mxu0 %vm511_vm0, %v3934_v33  ;;  %v4031_v47 = vadd.f32 %v8447_v50, %v11154_v11  ;;  %v2131_v50 = vadd.f32 %v2099_v43, %v2067_v30  ;;  %v2102_v11 = vmul.f32 0.5, %v11053_v58 }
 0x41f   :  { %v4025_v36 = vpop.f32.mrf.mxu1  ;;  %v3944_v25 = vadd.f32 %v8436_v60, %v11155_v61  ;;  %v2135_v61 = vadd.f32 %v2103_v12, %v2071_v3 }
 0x420   :  { %v3938_v39 = vpop.f32.mrf.mxu0  ;;  %v4026_v40 = vadd.f32 %v4025_v36, %v11153_v1  ;;  %v2134_v8 = vadd.f32 %v2102_v11, %v2070_v6 }
 0x421   :  { %v3939_v24 = vadd.f32 %v3938_v39, %v2286_v49  ;;  %v2130_v49 = vadd.f32 %v2098_v28, %v2066_v4 }
 0x422   :  { %8557 = vmatprep.mubr.msk.f32.mxu1 %vm511_vm0, %v4026_v40  ;;  %v2132_v40 = vadd.f32 %v2100_v57, %v2068_v41  ;;  %v11167_v57 = vld [vmem:[#allocation51_spill] sm:$0xff] }
 0x423   :  { %v8450_v37 = vpop.f32.mrf.mxu1  ;;  %8546 = vmatprep.mubr.msk.f32.mxu0 %vm511_vm0, %v3939_v24  ;;  %8558 = vmatmul.mubr.msk.f32.vlgmr.msra.gmra.mxu1 %vm511_vm0, %v4031_v47  ;;  %v2110_v41 = vmul.f32 0.5, %v11167_v57 }
 0x424   :  { %8547 = vmatmul.mubr.msk.f32.gmra.mxu0 %vm511_vm0, %v3944_v25  ;;  %v4041_v62 = vadd.f32 %v8450_v37, %v11156_v17  ;;  %v2069_v25 = vadd.f32 %v11160_v16, %v9068_v26  ;;  %v2107_v26 = vmul.f32 0.5, %v11126_v14  ;;  %v2074_v14 = vadd.f32 %v11159_v34, %v11163_v2  ;;  %v11174_v2 = vld [vmem:[#allocation25_spill] sm:$0xff] }
 0x425   :  { %v4035_v21 = vpop.f32.mrf.mxu1 }
 0x426   :  { %v4036_v42 = vadd.f32 %v4035_v21, %v2290_v10  ;;  %v2133_v58 = vadd.f32 %v2101_v22, %v2069_v25  ;;  %v2104_v21 = vmul.f32 0.5, %v11119_v32 }
 0x428   :  { %8560 = vmatprep.mubr.msk.f32.mxu1 %vm511_vm0, %v4036_v42  ;;  %v2136_v17 = vadd.f32 %v2104_v21, %v2072_v13  ;;  %v11172_v21 = vld [vmem:[#allocation23_spill] sm:$0xff] }
 0x429   :  { %8561 = vmatmul.mubr.msk.f32.gmra.mxu1 %vm511_vm0, %v4041_v62  ;;  %v2075_v62 = vadd.f32 %v11158_v9, %v11124_v15  ;;  %v2073_v15 = vadd.f32 %v11160_v16, %v11164_v44  ;;  %v2084_v13 = vadd.f32 %v11157_v48, %v11172_v21  ;;  %v11185_v21 = vld [vmem:[#allocation76_spill] sm:$0xff] }
 0x42b   :  { %v2139_v30 = vadd.f32 %v2107_v26, %v2075_v62  ;;  %v2112_v62 = vmul.f32 0.5, %v11144_v51  ;;  %v11176_v51 = vld [vmem:[#allocation62_spill] sm:$0xff] }
 0x489   :  { %v8461_v46 = vpop.f32.mrf.mxu0 }
 0x48a   :  { %v4128_v5 = vadd.f32 %v8461_v46, %v2129_v19  ;;  %v11162_v46 = vld [vmem:[#allocation44_spill] sm:$0xff] }
 0x48b   :  { %v4122_v7 = vpop.f32.mrf.mxu0  ;;  %v2105_v32 = vmul.f32 0.5, %v11162_v46  ;;  %v11173_v46 = vld [vmem:[#allocation26_spill] sm:$0xff] }
 0x48c   :  { %v4123_v33 = vadd.f32 %v4122_v7, %v2128_v59  ;;  %v2108_v7 = vmul.f32 0.5, %v11128_v31 }
 0x48d   :  { %v8464_v60 = vpop.f32.mrf.mxu0 }
 0x48e   :  { %v4138_v55 = vadd.f32 %v8464_v60, %v2131_v50  ;;  %8571 = vmatprep.mubr.msk.f32.mxu0 %vm511_vm0, %v4123_v33  ;;  %v2138_v50 = vadd.f32 %v2106_v29, %v2074_v14  ;;  %v2076_v60 = vadd.f32 %v11157_v48, %v11063_v52  ;;  %v2086_v14 = vadd.f32 %v11159_v34, %v11174_v2 }
 0x48f   :  { %v4132_v36 = vpop.f32.mrf.mxu0 }
 0x490   :  { %v4133_v39 = vadd.f32 %v4132_v36, %v2130_v49  ;;  %8563 = vmatprep.subr.mxu0 %v4138_v55  ;;  %v2137_v49 = vadd.f32 %v2105_v32, %v2073_v15  ;;  %v2140_v31 = vadd.f32 %v2108_v7, %v2076_v60  ;;  %v2080_v32 = vadd.f32 %v11157_v48, %v11173_v46  ;;  %v11178_v60 = vld [vmem:[#allocation27_spill] sm:$0xff] }
 0x491   :  { %8564 = vmatpush3.msra.mxu0 %v4138_v55  ;;  %v2115_v15 = vmul.f32 0.5, %v11176_v51  ;;  %v11188_v46 = vld [vmem:[#allocation35_spill] sm:$0xff] }
 0x492   :  { %8565 = vmatprep.subr.mxu0 %v4133_v39 }
 0x493   :  { %8566 = vmatpush3.msra.mxu0 %v4133_v39 }
 0x494   :  { %8567 = vmatprep.subr.mxu0 %v4128_v5 }
 0x495   :  { %8568 = vmatpush3.msra.mxu0 %v4128_v5 }
 0x496   :  { %8569 = vmatprep.subr.mxu0 %v4123_v33 }
 0x497   :  { %8570 = vmatpush3.msra.mxu0 %v4123_v33 }
 0x498   :  { %8572 = vmatmul.mubr.msk.f32.vlgmr.msra.gmra.mxu0 %vm511_vm0, %v4128_v5 }
 0x499   :  { %8574 = vmatprep.mubr.msk.f32.mxu0 %vm511_vm0, %v4133_v39  ;;  %v11166_v39 = vld [vmem:[#allocation20_spill] sm:$0xff] }
 0x49a   :  { %v8475_v1 = vpop.f32.mrf.mxu1  ;;  %v2079_v5 = vadd.f32 %v11158_v9, %v11166_v39  ;;  %v11180_v39 = vld [vmem:[#allocation29_spill] sm:$0xff] }
 0x49b   :  { %v4225_v35 = vadd.f32 %v8475_v1, %v2133_v58 }
 0x49c   :  { %v4219_v47 = vpop.f32.mrf.mxu1  ;;  %8575 = vmatmul.mubr.msk.f32.gmra.mxu0 %vm511_vm0, %v4138_v55  ;;  %v2111_v55 = vmul.f32 0.5, %v11165_v27 }
 0x49d   :  { %v4220_v24 = vadd.f32 %v4219_v47, %v2132_v40  ;;  %v11168_v40 = vld [vmem:[#allocation48_spill] sm:$0xff]  ;;  %v11169_v47 = vld [vmem:[#allocation21_spill] sm:$0xff] }
 0x49e   :  { %v8478_v38 = vpop.f32.mrf.mxu1  ;;  %v2109_v52 = vmul.f32 0.5, %v11168_v40  ;;  %v2143_v11 = vadd.f32 %v2111_v55, %v2079_v5  ;;  %v2078_v22 = vadd.f32 %v11159_v34, %v11169_v47  ;;  %v2082_v5 = vadd.f32 %v11159_v34, %v11180_v39 }
 0x49f   :  { %v4235_v18 = vadd.f32 %v8478_v38, %v2135_v61  ;;  %8585 = vmatprep.mubr.msk.f32.mxu1 %vm511_vm0, %v4220_v24  ;;  %v11170_v61 = vld [vmem:[#allocation22_spill] sm:$0xff] }
 0x4a0   :  { %v4229_v37 = vpop.f32.mrf.mxu1  ;;  %v2077_v6 = vadd.f32 %v11160_v16, %v11170_v61  ;;  %v2142_v25 = vadd.f32 %v2110_v41, %v2078_v22  ;;  %v11181_v41 = vld [vmem:[#allocation55_spill] sm:$0xff] }
 0x4a1   :  { %v4230_v10 = vadd.f32 %v4229_v37, %v2134_v8  ;;  %8577 = vmatprep.subr.mxu1 %v4235_v18 }
 0x4a2   :  { %8578 = vmatpush3.msra.mxu1 %v4235_v18  ;;  %v2141_v8 = vadd.f32 %v2109_v52, %v2077_v6 }
 0x4a3   :  { %8579 = vmatprep.subr.mxu1 %v4230_v10 }
 0x4a4   :  { %8580 = vmatpush3.msra.mxu1 %v4230_v10 }
 0x4a5   :  { %8581 = vmatprep.subr.mxu1 %v4225_v35  ;;  %v8489_v42 = vpop.f32.mrf.mxu0 }
 0x4a6   :  { %8582 = vmatpush3.msra.mxu1 %v4225_v35  ;;  %v4322_v12 = vadd.f32 %v8489_v42, %v2137_v49 }
 0x4a7   :  { %8583 = vmatprep.subr.mxu1 %v4220_v24  ;;  %v4316_v43 = vpop.f32.mrf.mxu0 }
 0x4a8   :  { %8584 = vmatpush3.msra.mxu1 %v4220_v24  ;;  %v4317_v59 = vadd.f32 %v4316_v43, %v2136_v17  ;;  %v2119_v17 = vmul.f32 0.5, %v11084_v23  ;;  %v2087_v43 = vadd.f32 %v11158_v9, %v11147_v63  ;;  %v2144_v23 = vadd.f32 %v2112_v62, %v2080_v32 }
 0x4a9   :  { %8586 = vmatmul.mubr.msk.f32.vlgmr.msra.gmra.mxu1 %vm511_vm0, %v4225_v35  ;;  %v8492_v28 = vpop.f32.mrf.mxu0  ;;  %v2092_v32 = vadd.f32 %v11157_v48, %v11188_v46 }
 0x4aa   :  { %8588 = vmatprep.mubr.msk.f32.mxu1 %vm511_vm0, %v4230_v10  ;;  %v4332_v33 = vadd.f32 %v8492_v28, %v2139_v30  ;;  %8599 = vmatprep.mubr.msk.f32.mxu0 %vm511_vm0, %v4317_v59  ;;  %v11171_v10 = vld [vmem:[#allocation54_spill] sm:$0xff]  ;;  %v11175_v28 = vld [vmem:[#allocation53_spill] sm:$0xff]  ;;  %v2151_v44 = vadd.f32 %v2119_v17, %v2087_v43  ;;  %v2122_v43 = vmul.f32 0.5, %v11094_v20 }
 0x4ab   :  { %v4326_v4 = vpop.f32.mrf.mxu0  ;;  %v2116_v35 = vmul.f32 0.5, %v11171_v10  ;;  %v2117_v7 = vmul.f32 0.5, %v11175_v28  ;;  %v2090_v28 = vadd.f32 %v11159_v34, %v11091_v45  ;;  %v11193_v45 = vld [vmem:[#allocation74_spill] sm:$0xff] }
 0x4ac   :  { %v4327_v36 = vadd.f32 %v4326_v4, %v2138_v50  ;;  %8591 = vmatprep.subr.mxu0 %v4332_v33 }
 0x4ad   :  { %v8503_v19 = vpop.f32.mrf.mxu1  ;;  %8589 = vmatmul.mubr.msk.f32.gmra.mxu1 %vm511_vm0, %v4235_v18  ;;  %8592 = vmatpush3.msra.mxu0 %v4332_v33  ;;  %v2148_v42 = vadd.f32 %v2116_v35, %v2084_v13  ;;  %v2123_v13 = vmul.f32 0.5, %v11185_v21 }
 0x4ae   :  { %8593 = vmatprep.subr.mxu0 %v4327_v36  ;;  %v4419_v58 = vadd.f32 %v8503_v19, %v2141_v8 }
 0x4af   :  { %v4413_v1 = vpop.f32.mrf.mxu1  ;;  %8594 = vmatpush3.msra.mxu0 %v4327_v36 }
 0x4b0   :  { %v4414_v3 = vadd.f32 %v4413_v1, %v2140_v31  ;;  %8595 = vmatprep.subr.mxu0 %v4322_v12 }
 0x4b1   :  { %v8506_v24 = vpop.f32.mrf.mxu1  ;;  %8596 = vmatpush3.msra.mxu0 %v4322_v12 }
 0x4b2   :  { %v4429_v38 = vadd.f32 %v8506_v24, %v2143_v11  ;;  %8613 = vmatprep.mubr.msk.f32.mxu1 %vm511_vm0, %v4414_v3  ;;  %8597 = vmatprep.subr.mxu0 %v4317_v59  ;;  %v11182_v11 = vld [vmem:[#allocation30_spill] sm:$0xff] }
 0x4b3   :  { %v4423_v18 = vpop.f32.mrf.mxu1  ;;  %8598 = vmatpush3.msra.mxu0 %v4317_v59  ;;  %v2118_v59 = vmul.f32 0.5, %v11148_v54  ;;  %v2083_v54 = vadd.f32 %v11158_v9, %v11178_v60  ;;  %v2081_v47 = vadd.f32 %v11160_v16, %v11182_v11  ;;  %v11192_v60 = vld [vmem:[#allocation36_spill] sm:$0xff] }
 0x4b4   :  { %v4424_v37 = vadd.f32 %v4423_v18, %v2142_v25  ;;  %8605 = vmatprep.subr.mxu1 %v4429_v38  ;;  %8600 = vmatmul.mubr.msk.f32.vlgmr.msra.gmra.mxu0 %vm511_vm0, %v4322_v12  ;;  %v2113_v12 = vmul.f32 0.5, %v11181_v41  ;;  %v11183_v18 = vld [vmem:[#allocation72_spill] sm:$0xff] }
 0x4b5   :  { %8606 = vmatpush3.msra.mxu1 %v4429_v38  ;;  %8602 = vmatprep.mubr.msk.f32.mxu0 %vm511_vm0, %v4327_v36  ;;  %v2150_v49 = vadd.f32 %v2118_v59, %v2086_v14  ;;  %v11179_v36 = vld [vmem:[#allocation64_spill] sm:$0xff]  ;;  %v2147_v40 = vadd.f32 %v2115_v15, %v2083_v54  ;;  %v2120_v8 = vmul.f32 0.5, %v11183_v18  ;;  %v11189_v59 = vld [vmem:[#allocation70_spill] sm:$0xff]  ;;  %v2095_v54 = vadd.f32 %v11158_v9, %v11192_v60 }
 0x4b6   :  { %8607 = vmatprep.subr.mxu1 %v4424_v37  ;;  %v2114_v19 = vmul.f32 0.5, %v11179_v36  ;;  %v2145_v6 = vadd.f32 %v2113_v12, %v2081_v47  ;;  %v11191_v15 = vld [vmem:[#allocation34_spill] sm:$0xff]  ;;  %v2125_v36 = vmul.f32 0.5, %v11193_v45 }
 0x4b7   :  { %8608 = vmatpush3.msra.mxu1 %v4424_v37 }
 0x4b8   :  { %8609 = vmatprep.subr.mxu1 %v4419_v58  ;;  %8603 = vmatmul.mubr.msk.f32.gmra.mxu0 %vm511_vm0, %v4332_v33  ;;  %v11177_v33 = vld [vmem:[#allocation28_spill] sm:$0xff]  ;;  %v2146_v24 = vadd.f32 %v2114_v19, %v2082_v5 }
 0x4b9   :  { %8610 = vmatpush3.msra.mxu1 %v4419_v58  ;;  %v2085_v63 = vadd.f32 %v11160_v16, %v11177_v33  ;;  %v2089_v33 = vadd.f32 %v11160_v16, %v11191_v15  ;;  %v11196_v15 = vld [vmem:[#allocation10_spill] sm:$0xff] }
 0x4ba   :  { %8611 = vmatprep.subr.mxu1 %v4414_v3 }
 0x4bb   :  { %8612 = vmatpush3.msra.mxu1 %v4414_v3  ;;  %v2149_v57 = vadd.f32 %v2117_v7, %v2085_v63  ;;  %v2154_v63 = vadd.f32 %v2122_v43, %v2090_v28  ;;  %v32_v28 = vld [vmem:[%s10780_s0] sm:$0xff]  ;;  %s8878_s0 = smov [#allocation5]  }
 0x4bc   :  { %8614 = vmatmul.mubr.msk.f32.vlgmr.msra.gmra.mxu1 %vm511_vm0, %v4419_v58  ;;  %s7317_s25 = sshll.u32 %s8878_s0, 4  ;;  %s7318_s25 = int_to_ptr.vmem [resolvable:$true] %s7317_s25 }
 0x4bd   :  { %8616 = vmatprep.mubr.msk.f32.mxu1 %vm511_vm0, %v4424_v37  ;;  %v11184_v37 = vld [vmem:[#allocation31_spill] sm:$0xff]  ;;  %s8845_s26 = scalar_lea.vmem %s7318_s25, 128  ;;  %p8850_p6 = scmp.lt.s32.totalorder %s7318_s25, %s7318_s25 }
 0x4be   :  { %v2088_v58 = vadd.f32 %v11157_v48, %v11184_v37  ;;  %p8846_p5 = scmp.ne.s32.totalorder %s7318_s25, %s8845_s26  ;;  %p8851_p7 = scmp.lt.s32.totalorder %s8845_s26, %s8845_s26 }
 0x4c0   :  { %8617 = vmatmul.mubr.msk.f32.gmra.mxu1 %vm511_vm0, %v4429_v38  ;;  %v2152_v35 = vadd.f32 %v2120_v8, %v2088_v58  ;;  %p8852_p8 = por %p8851_p7, %p8850_p6 }
 0x4c2   :  { %p8853_p9 = pnand %p8852_p8, %p8846_p5 }
 0x4c3   :  { %v8531_v26 = vpop.f32.mrf.mxu1 }
 0x4c4   :  { %v4613_v3 = vadd.f32 %v8531_v26, %v2149_v57  ;;  %v11194_v57 = vld [vmem:[#allocation38_spill] sm:$0xff] }
 0x4c5   :  { %v4607_v56 = vpop.f32.mrf.mxu1 }
 0x4c6   :  { %v4608_v29 = vadd.f32 %v4607_v56, %v2148_v42  ;;  %v11186_v42 = vld [vmem:[#allocation77_spill] sm:$0xff]  ;;  %v11187_v56 = vld [vmem:[#allocation32_spill] sm:$0xff] }
 0x4c7   :  { %v8517_v30 = vpop.f32.mrf.mxu0  ;;  %v2124_v17 = vmul.f32 0.5, %v11186_v42 }
 0x4c8   :  { %8641 = vmatprep.mubr.msk.f32.mxu1 %vm511_vm0, %v4608_v29  ;;  %v4516_v25 = vadd.f32 %v8517_v30, %v2145_v6  ;;  %v2121_v30 = vmul.f32 0.5, %v11189_v59 }
 0x4c9   :  { %v8534_v50 = vpop.f32.mrf.mxu1  ;;  %v4510_v4 = vpop.f32.mrf.mxu0 }
 0x4ca   :  { %v4623_v27 = vadd.f32 %v8534_v50, %v2151_v44  ;;  %v4511_v55 = vadd.f32 %v4510_v4, %v2144_v23  ;;  %v2156_v44 = vadd.f32 %v2124_v17, %v2092_v32  ;;  %v11190_v23 = vld [vmem:[#allocation82_spill] sm:$0xff] }
 0x4cb   :  { %v4617_v31 = vpop.f32.mrf.mxu1  ;;  %v2127_v51 = vmul.f32 0.5, %v11190_v23 }
 0x4cc   :  { %v4618_v1 = vadd.f32 %v4617_v31, %v2150_v49  ;;  %8633 = vmatprep.subr.mxu1 %v4623_v27  ;;  %8627 = vmatprep.mubr.msk.f32.mxu0 %vm511_vm0, %v4511_v55  ;;  %v2094_v31 = vadd.f32 %v11159_v34, %v11096_v0  ;;  %v10340_v0 = vld [vmem:[%s10781_s1] ss:$0 sm:$0xff] }
 0x4cd   :  { %v8520_v52 = vpop.f32.mrf.mxu0  ;;  %8634 = vmatpush3.msra.mxu1 %v4623_v27  ;;  %v2159_v19 = vadd.f32 %v2127_v51, %v2095_v54  ;;  %6972 = vbcast.lane.b32.xlu1 %v10340_v0, 256 }
 0x4ce   :  { %v4526_v22 = vadd.f32 %v8520_v52, %v2147_v40  ;;  %8635 = vmatprep.subr.mxu1 %v4618_v1  ;;  %6976 = vbcast.lane.b32.xlu0 %v10340_v0, 264 }
 0x4cf   :  { %v4520_v61 = vpop.f32.mrf.mxu0  ;;  %8636 = vmatpush3.msra.mxu1 %v4618_v1 }
 0x4d0   :  { %v4521_v38 = vadd.f32 %v4520_v61, %v2146_v24  ;;  %8619 = vmatprep.subr.mxu0 %v4526_v22  ;;  %8637 = vmatprep.subr.mxu1 %v4613_v3 }
 0x4d1   :  { %8620 = vmatpush3.msra.mxu0 %v4526_v22  ;;  %8638 = vmatpush3.msra.mxu1 %v4613_v3 }
 0x4d2   :  { %8621 = vmatprep.subr.mxu0 %v4521_v38  ;;  %8639 = vmatprep.subr.mxu1 %v4608_v29 }
 0x4d3   :  { %8622 = vmatpush3.msra.mxu0 %v4521_v38  ;;  %8640 = vmatpush3.msra.mxu1 %v4608_v29  ;;  %v2091_v29 = vadd.f32 %v11158_v9, %v11187_v56  ;;  %v2093_v9 = vadd.f32 %v11160_v16, %v11194_v57 }
 0x4d4   :  { %8623 = vmatprep.subr.mxu0 %v4516_v25  ;;  %8642 = vmatmul.mubr.msk.f32.vlgmr.msra.gmra.mxu1 %vm511_vm0, %v4613_v3 }
 0x4d5   :  { %8624 = vmatpush3.msra.mxu0 %v4516_v25  ;;  %8644 = vmatprep.mubr.msk.f32.mxu1 %vm511_vm0, %v4618_v1  ;;  %v2155_v2 = vadd.f32 %v2123_v13, %v2091_v29  ;;  %v2157_v1 = vadd.f32 %v2125_v36, %v2093_v9 }
 0x4d6   :  { %8625 = vmatprep.subr.mxu0 %v4511_v55  ;;  %6980 = vbcast.lane.b32.xlu1 %v10340_v0, 272 }
 0x4d7   :  { %8626 = vmatpush3.msra.mxu0 %v4511_v55  ;;  %v2153_v55 = vadd.f32 %v2121_v30, %v2089_v33 }
 0x4d8   :  { %8628 = vmatmul.mubr.msk.f32.vlgmr.msra.gmra.mxu0 %vm511_vm0, %v4516_v25  ;;  %8645 = vmatmul.mubr.msk.f32.gmra.mxu1 %vm511_vm0, %v4623_v27  ;;  %v2126_v27 = vmul.f32 0.5, %v11097_v53 }
 0x4d9   :  { %8630 = vmatprep.mubr.msk.f32.mxu0 %vm511_vm0, %v4521_v38 }
 0x4da   :  { %v2158_v53 = vadd.f32 %v2126_v27, %v2094_v31  ;;  %6984 = vbcast.lane.b32.xlu1 %v10340_v0, 280 }
 0x4dc   :  { %8631 = vmatmul.mubr.msk.f32.gmra.mxu0 %vm511_vm0, %v4526_v22 }
 0x4de   :  { %v8545_v10 = vpop.f32.mrf.mxu0 }
 0x4df   :  { %v4710_v39 = vadd.f32 %v8545_v10, %v2153_v55 }
 0x4e0   :  { %v4704_v26 = vpop.f32.mrf.mxu0 }
 0x4e1   :  { %v4705_v62 = vadd.f32 %v4704_v26, %v2152_v35 }
 0x4e3   :  { %v8559_v14 = vpop.f32.mrf.mxu1  ;;  %8655 = vmatprep.mubr.msk.f32.mxu0 %vm511_vm0, %v4705_v62 }
 0x4e4   :  { %v8548_v7 = vpop.f32.mrf.mxu0  ;;  %v4807_v52 = vadd.f32 %v8559_v14, %v2157_v1 }
 0x4e5   :  { %v4720_v20 = vadd.f32 %v8548_v7, %v2155_v2  ;;  %v4801_v50 = vpop.f32.mrf.mxu1  ;;  %v10382_v7 = vsub.f32 %v32_v28, %v10340_v0 }
 0x4e6   :  { %v4714_v48 = vpop.f32.mrf.mxu0  ;;  %v4802_v4 = vadd.f32 %v4801_v50, %v2156_v44  ;;  %v11195_v44 = vld [vmem:[#allocation9_spill] sm:$0xff] }
 0x4e7   :  { %v4715_v49 = vadd.f32 %v4714_v48, %v2154_v63  ;;  %8647 = vmatprep.subr.mxu0 %v4720_v20  ;;  %v6380_v23 = vrot.slane %v10382_v7, %v11195_v44 }
 0x4e8   :  { %8648 = vmatpush3.msra.mxu0 %v4720_v20  ;;  %8669 = vmatprep.mubr.msk.f32.mxu1 %vm511_vm0, %v4802_v4 }
 0x4e9   :  { %v8562_v5 = vpop.f32.mrf.mxu1  ;;  %8649 = vmatprep.subr.mxu0 %v4715_v49  ;;  %v6396_v51 = vrot.slane %v6380_v23, %v11195_v44  ;;  %v6388_v54 = vcombine.high %v6380_v23, %v6380_v23 }
 0x4ea   :  { %v4817_v41 = vadd.f32 %v8562_v5, %v2159_v19  ;;  %8650 = vmatpush3.msra.mxu0 %v4715_v49 }
 0x4eb   :  { %v4811_v12 = vpop.f32.mrf.mxu1  ;;  %8651 = vmatprep.subr.mxu0 %v4710_v39  ;;  %v6425_v33 = vrot.slane %v6396_v51, %v11196_v15  ;;  %v6410_v27 = vrot.slane %v6388_v54, %v11195_v44 }
 0x4ec   :  { %v4812_v40 = vadd.f32 %v4811_v12, %v2158_v53  ;;  %8661 = vmatprep.subr.mxu1 %v4817_v41  ;;  %8652 = vmatpush3.msra.mxu0 %v4710_v39 }
 0x4ed   :  { %8662 = vmatpush3.msra.mxu1 %v4817_v41  ;;  %8653 = vmatprep.subr.mxu0 %v4705_v62  ;;  %v6429_v55 = vrot.slane %v6410_v27, %v11196_v15 }
 0x4ee   :  { %8663 = vmatprep.subr.mxu1 %v4812_v40  ;;  %8654 = vmatpush3.msra.mxu0 %v4705_v62 }
 0x4ef   :  { %8664 = vmatpush3.msra.mxu1 %v4812_v40  ;;  %8656 = vmatmul.mubr.msk.f32.vlgmr.msra.gmra.mxu0 %vm511_vm0, %v4710_v39 }
 0x4f0   :  { %8665 = vmatprep.subr.mxu1 %v4807_v52  ;;  %8658 = vmatprep.mubr.msk.f32.mxu0 %vm511_vm0, %v4715_v49 }
 0x4f1   :  { %8666 = vmatpush3.msra.mxu1 %v4807_v52 }
 0x4f2   :  { %8667 = vmatprep.subr.mxu1 %v4802_v4 }
 0x4f3   :  { %8668 = vmatpush3.msra.mxu1 %v4802_v4  ;;  %8659 = vmatmul.mubr.msk.f32.gmra.mxu0 %vm511_vm0, %v4720_v20 }
 0x4f4   :  { %8670 = vmatmul.mubr.msk.f32.vlgmr.msra.gmra.mxu1 %vm511_vm0, %v4807_v52  ;;  %v6418_v52 = vcombine.high %v6396_v51, %v6396_v51 }
 0x4f5   :  { %8672 = vmatprep.mubr.msk.f32.mxu1 %vm511_vm0, %v4812_v40 }
 0x4f8   :  { %8673 = vmatmul.mubr.msk.f32.gmra.mxu1 %vm511_vm0, %v4817_v41 }
 0x558   :  { %v8573_v34 = vpop.f32.mrf.mxu0 }
 0x55a   :  { %v4898_v16 = vpop.f32.mrf.mxu0 }
 0x55b   :  { %8683 = vmatprep.mubr.msk.f32.mxu0 %vm511_vm0, %v4898_v16 }
 0x55c   :  { %v8576_v3 = vpop.f32.mrf.mxu0 }
 0x55d   :  { %8675 = vmatprep.subr.mxu0 %v8576_v3 }
 0x55e   :  { %v4908_v11 = vpop.f32.mrf.mxu0  ;;  %8676 = vmatpush3.msra.mxu0 %v8576_v3 }
 0x55f   :  { %8677 = vmatprep.subr.mxu0 %v4908_v11 }
 0x560   :  { %8678 = vmatpush3.msra.mxu0 %v4908_v11 }
 0x561   :  { %8679 = vmatprep.subr.mxu0 %v8573_v34 }
 0x562   :  { %8680 = vmatpush3.msra.mxu0 %v8573_v34 }
 0x563   :  { %8681 = vmatprep.subr.mxu0 %v4898_v16 }
 0x564   :  { %8682 = vmatpush3.msra.mxu0 %v4898_v16  ;;  %v6433_v16 = vrot.slane %v6418_v52, %v11196_v15 }
 0x565   :  { %8684 = vmatmul.mubr.msk.f32.vlgmr.msra.gmra.mxu0 %vm511_vm0, %v8573_v34 }
 0x566   :  { %8686 = vmatprep.mubr.msk.f32.mxu0 %vm511_vm0, %v4908_v11 }
 0x569   :  { %v8587_v47 = vpop.f32.mrf.mxu1  ;;  %8687 = vmatmul.mubr.msk.f32.gmra.mxu0 %vm511_vm0, %v8576_v3 }
 0x56b   :  { %v4995_v22 = vpop.f32.mrf.mxu1 }
 0x56c   :  { %8697 = vmatprep.mubr.msk.f32.mxu1 %vm511_vm0, %v4995_v22 }
 0x56d   :  { %v8590_v24 = vpop.f32.mrf.mxu1 }
 0x56e   :  { %8689 = vmatprep.subr.mxu1 %v8590_v24 }
 0x56f   :  { %v5005_v61 = vpop.f32.mrf.mxu1  ;;  %8690 = vmatpush3.msra.mxu1 %v8590_v24 }
 0x570   :  { %8691 = vmatprep.subr.mxu1 %v5005_v61 }
 0x571   :  { %8692 = vmatpush3.msra.mxu1 %v5005_v61 }
 0x572   :  { %8693 = vmatprep.subr.mxu1 %v8587_v47 }
 0x573   :  { %8694 = vmatpush3.msra.mxu1 %v8587_v47 }
 0x574   :  { %8695 = vmatprep.subr.mxu1 %v4995_v22  ;;  %v8601_v6 = vpop.f32.mrf.mxu0 }
 0x575   :  { %8696 = vmatpush3.msra.mxu1 %v4995_v22 }
 0x576   :  { %8698 = vmatmul.mubr.msk.f32.vlgmr.msra.gmra.mxu1 %vm511_vm0, %v8587_v47  ;;  %v5092_v38 = vpop.f32.mrf.mxu0  ;;  %v6420_v47 = vcombine.high %v6410_v27, %v6410_v27 }
 0x577   :  { %8700 = vmatprep.mubr.msk.f32.mxu1 %vm511_vm0, %v5005_v61  ;;  %8711 = vmatprep.mubr.msk.f32.mxu0 %vm511_vm0, %v5092_v38 }
 0x578   :  { %v8604_v25 = vpop.f32.mrf.mxu0 }
 0x579   :  { %8703 = vmatprep.subr.mxu0 %v8604_v25 }
 0x57a   :  { %8701 = vmatmul.mubr.msk.f32.gmra.mxu1 %vm511_vm0, %v8590_v24  ;;  %v5102_v18 = vpop.f32.mrf.mxu0  ;;  %8704 = vmatpush3.msra.mxu0 %v8604_v25 }
 0x57b   :  { %8705 = vmatprep.subr.mxu0 %v5102_v18 }
 0x57c   :  { %v8615_v8 = vpop.f32.mrf.mxu1  ;;  %8706 = vmatpush3.msra.mxu0 %v5102_v18 }
 0x57d   :  { %8707 = vmatprep.subr.mxu0 %v8601_v6 }
 0x57e   :  { %v5189_v37 = vpop.f32.mrf.mxu1  ;;  %8708 = vmatpush3.msra.mxu0 %v8601_v6 }
 0x57f   :  { %8725 = vmatprep.mubr.msk.f32.mxu1 %vm511_vm0, %v5189_v37  ;;  %8709 = vmatprep.subr.mxu0 %v5092_v38 }
 0x580   :  { %v8618_v58 = vpop.f32.mrf.mxu1  ;;  %8710 = vmatpush3.msra.mxu0 %v5092_v38  ;;  %v6437_v38 = vrot.slane %v6420_v47, %v11196_v15 }
 0x581   :  { %8717 = vmatprep.subr.mxu1 %v8618_v58  ;;  %8712 = vmatmul.mubr.msk.f32.vlgmr.msra.gmra.mxu0 %vm511_vm0, %v8601_v6 }
 0x582   :  { %v5199_v10 = vpop.f32.mrf.mxu1  ;;  %8718 = vmatpush3.msra.mxu1 %v8618_v58  ;;  %8714 = vmatprep.mubr.msk.f32.mxu0 %vm511_vm0, %v5102_v18 }
 0x583   :  { %8719 = vmatprep.subr.mxu1 %v5199_v10 }
 0x584   :  { %8720 = vmatpush3.msra.mxu1 %v5199_v10 }
 0x585   :  { %8721 = vmatprep.subr.mxu1 %v8615_v8  ;;  %8715 = vmatmul.mubr.msk.f32.gmra.mxu0 %vm511_vm0, %v8604_v25 }
 0x586   :  { %8722 = vmatpush3.msra.mxu1 %v8615_v8 }
 0x587   :  { %8723 = vmatprep.subr.mxu1 %v5189_v37 }
 0x588   :  { %8724 = vmatpush3.msra.mxu1 %v5189_v37 }
 0x589   :  { %8726 = vmatmul.mubr.msk.f32.vlgmr.msra.gmra.mxu1 %vm511_vm0, %v8615_v8 }
 0x58a   :  { %8728 = vmatprep.mubr.msk.f32.mxu1 %vm511_vm0, %v5199_v10 }
 0x58d   :  { %8729 = vmatmul.mubr.msk.f32.gmra.mxu1 %vm511_vm0, %v8618_v58 }
 0x594   :  { %v8643_v35 = vpop.f32.mrf.mxu1 }
 0x596   :  { %v5383_v21 = vpop.f32.mrf.mxu1 }
 0x597   :  { %8753 = vmatprep.mubr.msk.f32.mxu1 %vm511_vm0, %v5383_v21 }
 0x598   :  { %v8629_v13 = vpop.f32.mrf.mxu0  ;;  %v8646_v26 = vpop.f32.mrf.mxu1 }
 0x599   :  { %8745 = vmatprep.subr.mxu1 %v8646_v26 }
 0x59a   :  { %v5286_v42 = vpop.f32.mrf.mxu0  ;;  %v5393_v17 = vpop.f32.mrf.mxu1  ;;  %8746 = vmatpush3.msra.mxu1 %v8646_v26 }
 0x59b   :  { %8739 = vmatprep.mubr.msk.f32.mxu0 %vm511_vm0, %v5286_v42  ;;  %8747 = vmatprep.subr.mxu1 %v5393_v17 }
 0x59c   :  { %v8632_v62 = vpop.f32.mrf.mxu0  ;;  %8748 = vmatpush3.msra.mxu1 %v5393_v17 }
 0x59d   :  { %8731 = vmatprep.subr.mxu0 %v8632_v62  ;;  %8749 = vmatprep.subr.mxu1 %v8643_v35 }
 0x59e   :  { %v5296_v56 = vpop.f32.mrf.mxu0  ;;  %8732 = vmatpush3.msra.mxu0 %v8632_v62  ;;  %8750 = vmatpush3.msra.mxu1 %v8643_v35 }
 0x59f   :  { %8733 = vmatprep.subr.mxu0 %v5296_v56  ;;  %8751 = vmatprep.subr.mxu1 %v5383_v21 }
 0x5a0   :  { %8734 = vmatpush3.msra.mxu0 %v5296_v56  ;;  %8752 = vmatpush3.msra.mxu1 %v5383_v21 }
 0x5a1   :  { %8735 = vmatprep.subr.mxu0 %v8629_v13  ;;  %8754 = vmatmul.mubr.msk.f32.vlgmr.msra.gmra.mxu1 %vm511_vm0, %v8643_v35 }
 0x5a2   :  { %8736 = vmatpush3.msra.mxu0 %v8629_v13  ;;  %8756 = vmatprep.mubr.msk.f32.mxu1 %vm511_vm0, %v5393_v17 }
 0x5a3   :  { %8737 = vmatprep.subr.mxu0 %v5286_v42 }
 0x5a4   :  { %8738 = vmatpush3.msra.mxu0 %v5286_v42 }
 0x5a5   :  { %8740 = vmatmul.mubr.msk.f32.vlgmr.msra.gmra.mxu0 %vm511_vm0, %v8629_v13  ;;  %8757 = vmatmul.mubr.msk.f32.gmra.mxu1 %vm511_vm0, %v8646_v26 }
 0x5a6   :  { %8742 = vmatprep.mubr.msk.f32.mxu0 %vm511_vm0, %v5296_v56 }
 0x5a9   :  { %8743 = vmatmul.mubr.msk.f32.gmra.mxu0 %vm511_vm0, %v8632_v62 }
 0x5af   :  { %v8657_v29 = vpop.f32.mrf.mxu0 }
 0x5b1   :  { %v5480_v43 = vpop.f32.mrf.mxu0 }
 0x5b2   :  { %8767 = vmatprep.mubr.msk.f32.mxu0 %vm511_vm0, %v5480_v43 }
 0x5b3   :  { %v8660_v46 = vpop.f32.mrf.mxu0 }
 0x5b4   :  { %v8671_v32 = vpop.f32.mrf.mxu1  ;;  %8759 = vmatprep.subr.mxu0 %v8660_v46 }
 0x5b5   :  { %v5490_v59 = vpop.f32.mrf.mxu0  ;;  %8760 = vmatpush3.msra.mxu0 %v8660_v46 }
 0x5b6   :  { %v5577_v30 = vpop.f32.mrf.mxu1  ;;  %8761 = vmatprep.subr.mxu0 %v5490_v59 }
 0x5b7   :  { %8781 = vmatprep.mubr.msk.f32.mxu1 %vm511_vm0, %v5577_v30  ;;  %8762 = vmatpush3.msra.mxu0 %v5490_v59 }
 0x5b8   :  { %v8674_v2 = vpop.f32.mrf.mxu1  ;;  %8763 = vmatprep.subr.mxu0 %v8657_v29 }
 0x5b9   :  { %8773 = vmatprep.subr.mxu1 %v8674_v2  ;;  %8764 = vmatpush3.msra.mxu0 %v8657_v29 }
 0x5ba   :  { %v5587_v14 = vpop.f32.mrf.mxu1  ;;  %8774 = vmatpush3.msra.mxu1 %v8674_v2  ;;  %8765 = vmatprep.subr.mxu0 %v5480_v43 }
 0x5bb   :  { %8775 = vmatprep.subr.mxu1 %v5587_v14  ;;  %8766 = vmatpush3.msra.mxu0 %v5480_v43 }
 0x5bc   :  { %8776 = vmatpush3.msra.mxu1 %v5587_v14  ;;  %8768 = vmatmul.mubr.msk.f32.vlgmr.msra.gmra.mxu0 %vm511_vm0, %v8657_v29 }
 0x5bd   :  { %8777 = vmatprep.subr.mxu1 %v8671_v32  ;;  %8770 = vmatprep.mubr.msk.f32.mxu0 %vm511_vm0, %v5490_v59  ;;  %v6373_v59 = vcombine.high %v10382_v7, %v10382_v7 }
 0x5be   :  { %8778 = vmatpush3.msra.mxu1 %v8671_v32 }
 0x5bf   :  { %8779 = vmatprep.subr.mxu1 %v5577_v30 }
 0x5c0   :  { %8780 = vmatpush3.msra.mxu1 %v5577_v30  ;;  %8771 = vmatmul.mubr.msk.f32.gmra.mxu0 %vm511_vm0, %v8660_v46 }
 0x5c1   :  { %8782 = vmatmul.mubr.msk.f32.vlgmr.msra.gmra.mxu1 %vm511_vm0, %v8671_v32 }
 0x5c2   :  { %8784 = vmatprep.mubr.msk.f32.mxu1 %vm511_vm0, %v5587_v14  ;;  %v6387_v14 = vrot.slane %v6373_v59, %v11195_v44 }
 0x5c4   :  { %v6389_v28 = vcombine.high %v6387_v14, %v6387_v14  ;;  %v6403_v23 = vrot.slane %v6387_v14, %v11195_v44 }
 0x5c5   :  { %8785 = vmatmul.mubr.msk.f32.gmra.mxu1 %vm511_vm0, %v8674_v2 }
 0x5c6   :  { %v6417_v51 = vrot.slane %v6389_v28, %v11195_v44 }
 0x625   :  { %v10388_v20 = vpop.f32.mrf.mxu0 }
 0x626   :  { %v6463_v63 = vmul.f32 %v10388_v20, %v6425_v33 }
 0x627   :  { %v10391_v50 = vpop.f32.mrf.mxu0 }
 0x628   :  { %v6462_v48 = vmul.f32 %v6425_v33, %v10391_v50  ;;  %v6497_v4 = vsel %vm511_vm0, %v6463_v63, 0.0 }
 0x629   :  { %6498 = vadd.xlane.f32.xlu1 %v6497_v4  ;;  %v10398_v49 = vpop.f32.mrf.mxu0 }
 0x62a   :  { %v6494_v60 = vsel %vm511_vm0, %v6462_v48, 0.0  ;;  %v6465_v31 = vmul.f32 %v10398_v49, %v6425_v33  ;;  %v6445_v48 = vrot.slane %v6417_v51, %v11196_v15 }
 0x62b   :  { %6495 = vadd.xlane.f32.xlu0 %v6494_v60  ;;  %v10408_v57 = vpop.f32.mrf.mxu0 }
 0x62c   :  { %v6464_v12 = vmul.f32 %v6425_v33, %v10408_v57  ;;  %v6503_v40 = vsel %vm511_vm0, %v6465_v31, 0.0  ;;  %v6441_v33 = vrot.slane %v6403_v23, %v11196_v15 }
 0x62e   :  { %v6500_v3 = vsel %vm511_vm0, %v6464_v12, 0.0 }
 0x636   :  { %v10400_v45 = vpop.f32.mrf.mxu1 }
 0x637   :  { %v6467_v36 = vmul.f32 %v10400_v45, %v6429_v55 }
 0x638   :  { %v10403_v19 = vpop.f32.mrf.mxu1 }
 0x639   :  { %v6466_v39 = vmul.f32 %v6429_v55, %v10403_v19  ;;  %v6509_v5 = vsel %vm511_vm0, %v6467_v36, 0.0 }
 0x63a   :  { %v10410_v9 = vpop.f32.mrf.mxu1  ;;  %6510 = vadd.xlane.f32.xlu0 %v6509_v5 }
 0x63b   :  { %v6506_v41 = vsel %vm511_vm0, %v6466_v39, 0.0  ;;  %v6469_v34 = vmul.f32 %v10410_v9, %v6429_v55 }
 0x63c   :  { %v10413_v53 = vpop.f32.mrf.mxu1  ;;  %6507 = vadd.xlane.f32.xlu1 %v6506_v41 }
 0x63d   :  { %v6468_v1 = vmul.f32 %v6429_v55, %v10413_v53  ;;  %v6515_v6 = vsel %vm511_vm0, %v6469_v34, 0.0 }
 0x63e   :  { %6504 = vadd.xlane.f32.xlu0 %v6503_v40 }
 0x63f   :  { %v6512_v0 = vsel %vm511_vm0, %v6468_v1, 0.0 }
 0x640   :  { %6513 = vadd.xlane.f32.xlu1 %v6512_v0 }
 0x641   :  { %v10422_v11 = vpop.f32.mrf.mxu0 }
 0x642   :  { %6501 = vadd.xlane.f32.xlu0 %v6500_v3  ;;  %v6471_v24 = vmul.f32 %v10422_v11, %v6433_v16 }
 0x643   :  { %v10424_v22 = vpop.f32.mrf.mxu0 }
 0x644   :  { %v6470_v61 = vmul.f32 %v6433_v16, %v10424_v22  ;;  %v6521_v37 = vsel %vm511_vm0, %v6471_v24, 0.0 }
 0x645   :  { %v10430_v25 = vpop.f32.mrf.mxu0 }
 0x646   :  { %6516 = vadd.xlane.f32.xlu0 %v6515_v6  ;;  %v6518_v18 = vsel %vm511_vm0, %v6470_v61, 0.0  ;;  %v6473_v13 = vmul.f32 %v10430_v25, %v6433_v16  ;;  %v6419_v61 = vcombine.high %v6403_v23, %v6403_v23 }
 0x647   :  { %6519 = vadd.xlane.f32.xlu1 %v6518_v18  ;;  %v10437_v10 = vpop.f32.mrf.mxu0  ;;  %v6421_v18 = vcombine.high %v6417_v51, %v6417_v51 }
 0x648   :  { %v6472_v17 = vmul.f32 %v6433_v16, %v10437_v10  ;;  %v6527_v43 = vsel %vm511_vm0, %v6473_v13, 0.0 }
 0x649   :  { %v10433_v8 = vpop.f32.mrf.mxu1  ;;  %v6453_v13 = vrot.slane %v6421_v18, %v11196_v15 }
 0x64a   :  { %v6475_v58 = vmul.f32 %v10433_v8, %v6437_v38  ;;  %6522 = vadd.xlane.f32.xlu0 %v6521_v37  ;;  %v6524_v32 = vsel %vm511_vm0, %v6472_v17, 0.0 }
 0x64b   :  { %v10439_v35 = vpop.f32.mrf.mxu1 }
 0x64c   :  { %v6474_v21 = vmul.f32 %v6437_v38, %v10439_v35  ;;  %v6533_v42 = vsel %vm511_vm0, %v6475_v58, 0.0 }
 0x64d   :  { %v10443_v26 = vpop.f32.mrf.mxu1 }
 0x64e   :  { %6534 = vadd.xlane.f32.xlu0 %v6533_v42  ;;  %v6530_v62 = vsel %vm511_vm0, %v6474_v21, 0.0  ;;  %v6477_v29 = vmul.f32 %v10443_v26, %v6437_v38 }
 0x64f   :  { %v10448_v56 = vpop.f32.mrf.mxu1  ;;  %6531 = vadd.xlane.f32.xlu1 %v6530_v62 }
 0x650   :  { %v6476_v46 = vmul.f32 %v6437_v38, %v10448_v56  ;;  %v6539_v30 = vsel %vm511_vm0, %v6477_v29, 0.0  ;;  %v6449_v38 = vrot.slane %v6419_v61, %v11196_v15 }
 0x652   :  { %6528 = vadd.xlane.f32.xlu0 %v6527_v43  ;;  %v6536_v2 = vsel %vm511_vm0, %v6476_v46, 0.0 }
 0x653   :  { %6525 = vadd.xlane.f32.xlu1 %v6524_v32 }
 0x656   :  { %6540 = vadd.xlane.f32.xlu0 %v6539_v30 }
 0x657   :  { %6537 = vadd.xlane.f32.xlu1 %v6536_v2 }
 0x661   :  { %v10462_v63 = vpop.f32.mrf.mxu1 }
 0x662   :  { %v6483_v27 = vmul.f32 %v10462_v63, %v6445_v48 }
 0x663   :  { %v10468_v60 = vpop.f32.mrf.mxu1 }
 0x664   :  { %v6482_v31 = vmul.f32 %v6445_v48, %v10468_v60  ;;  %v6557_v1 = vsel %vm511_vm0, %v6483_v27, 0.0 }
 0x665   :  { %v10465_v7 = vpop.f32.mrf.mxu0  ;;  %v10479_v5 = vpop.f32.mrf.mxu1 }
 0x666   :  { %v6479_v4 = vmul.f32 %v10465_v7, %v6441_v33  ;;  %v6554_v52 = vsel %vm511_vm0, %v6482_v31, 0.0  ;;  %v6485_v34 = vmul.f32 %v10479_v5, %v6445_v48  ;;  %v10529_v31 = vpop.permute.xlu1 %6972 }
 0x667   :  { %v10470_v54 = vpop.f32.mrf.mxu0  ;;  %v10487_v0 = vpop.f32.mrf.mxu1 }
 0x668   :  { %v6478_v55 = vmul.f32 %v6441_v33, %v10470_v54  ;;  %v6545_v44 = vsel %vm511_vm0, %v6479_v4, 0.0  ;;  %v6484_v3 = vmul.f32 %v6445_v48, %v10487_v0  ;;  %v6563_v24 = vsel %vm511_vm0, %v6485_v34, 0.0  ;;  %v11197_v34 = vld [vmem:[#allocation52_spill] sm:$0xff] }
 0x669   :  { %v10475_v36 = vpop.f32.mrf.mxu0  ;;  %6546 = vadd.xlane.f32.xlu0 %v6545_v44 }
 0x66a   :  { %v6542_v39 = vsel %vm511_vm0, %v6478_v55, 0.0  ;;  %v6481_v12 = vmul.f32 %v10475_v36, %v6441_v33  ;;  %v6560_v6 = vsel %vm511_vm0, %v6484_v3, 0.0 }
 0x66b   :  { %v10481_v41 = vpop.f32.mrf.mxu0  ;;  %6543 = vadd.xlane.f32.xlu1 %v6542_v39  ;;  %v10531_v39 = vpop.permute.xlu1 %6980 }
 0x66c   :  { %v6480_v40 = vmul.f32 %v6441_v33, %v10481_v41  ;;  %v6551_v16 = vsel %vm511_vm0, %v6481_v12, 0.0  ;;  %v10533_v12 = vpop.permute.xlu0 %6976 }
 0x66d   :  { %6558 = vadd.xlane.f32.xlu0 %v6557_v1 }
 0x66e   :  { %v6548_v47 = vsel %vm511_vm0, %v6480_v40, 0.0 }
 0x66f   :  { %6555 = vadd.xlane.f32.xlu1 %v6554_v52  ;;  %v10535_v1 = vpop.permute.xlu1 %6984 }
 0x671   :  { %6552 = vadd.xlane.f32.xlu0 %v6551_v16  ;;  %v6626_v16 = vadd.s32 4294967288, %v11197_v34 }
 0x673   :  { %6549 = vadd.xlane.f32.xlu1 %v6548_v47  ;;  %v11198_v47 = vld [vmem:[#allocation8_spill] sm:$0xff] }
 0x674   :  { %v10545_v18 = vsub.s32 %v6626_v16, %v11198_v47 }
 0x675   :  { %6564 = vadd.xlane.f32.xlu0 %v6563_v24  ;;  %v10540_v24 = vsub.s32 %v11197_v34, %v11198_v47 }
 0x677   :  { %6561 = vadd.xlane.f32.xlu1 %v6560_v6  ;;  %v6640_v6 = vadd.s32 4294967272, %v11197_v34 }
 0x67c   :  { %v10496_v37 = vpop.f32.mrf.mxu0 }
 0x67d   :  { %v6487_v58 = vmul.f32 %v10496_v37, %v6449_v38 }
 0x67e   :  { %v10499_v21 = vpop.f32.mrf.mxu0 }
 0x67f   :  { %v6486_v42 = vmul.f32 %v6449_v38, %v10499_v21  ;;  %v6569_v17 = vsel %vm511_vm0, %v6487_v58, 0.0 }
 0x680   :  { %v10504_v62 = vpop.f32.mrf.mxu0  ;;  %6570 = vadd.xlane.f32.xlu0 %v6569_v17 }
 0x681   :  { %v10506_v29 = vpop.f32.mrf.mxu1  ;;  %v6566_v43 = vsel %vm511_vm0, %v6486_v42, 0.0  ;;  %v6489_v28 = vmul.f32 %v10504_v62, %v6449_v38  ;;  %v10549_v42 = vsub.s32 %v6640_v6, %v11198_v47 }
 0x682   :  { %v6491_v46 = vmul.f32 %v10506_v29, %v6453_v13  ;;  %v10510_v32 = vpop.f32.mrf.mxu0  ;;  %6567 = vadd.xlane.f32.xlu1 %v6566_v43 }
 0x683   :  { %v10512_v59 = vpop.f32.mrf.mxu1  ;;  %v6488_v30 = vmul.f32 %v6449_v38, %v10510_v32  ;;  %v6575_v27 = vsel %vm511_vm0, %v6489_v28, 0.0  ;;  %v6633_v38 = vadd.s32 4294967280, %v11197_v34 }
 0x684   :  { %v6490_v15 = vmul.f32 %v6453_v13, %v10512_v59  ;;  %v6581_v14 = vsel %vm511_vm0, %v6491_v46, 0.0 }
 0x685   :  { %v10516_v2 = vpop.f32.mrf.mxu1  ;;  %v6572_v48 = vsel %vm511_vm0, %v6488_v30, 0.0  ;;  %v10552_v17 = vsub.s32 %v6633_v38, %v11198_v47 }
 0x686   :  { %6582 = vadd.xlane.f32.xlu1 %v6581_v14  ;;  %v6578_v23 = vsel %vm511_vm0, %v6490_v15, 0.0  ;;  %v6493_v4 = vmul.f32 %v10516_v2, %v6453_v13 }
 0x687   :  { %v10521_v51 = vpop.f32.mrf.mxu1  ;;  %6579 = vadd.xlane.f32.xlu0 %v6578_v23 }
 0x688   :  { %v6492_v33 = vmul.f32 %v6453_v13, %v10521_v51  ;;  %v6587_v44 = vsel %vm511_vm0, %v6493_v4, 0.0 }
 0x68a   :  { %6573 = vadd.xlane.f32.xlu1 %v6572_v48  ;;  %v6584_v55 = vsel %vm511_vm0, %v6492_v33, 0.0 }
 0x68b   :  { %6576 = vadd.xlane.f32.xlu0 %v6575_v27 }
 0x68e   :  { %6585 = vadd.xlane.f32.xlu1 %v6584_v55 }
 0x68f   :  { %6588 = vadd.xlane.f32.xlu0 %v6587_v44 }
 0x6b2   :  { %v6499_v52 = vpop.xlane.xlu1 %6498 }
 0x6b3   :  { %v6630_v46 = vrot.slane %v6499_v52, %v10545_v18 }
 0x6b4   :  { %v6496_v40 = vpop.xlane.xlu0 %6495 }
 0x6b5   :  { %v6625_v13 = vrot.slane %v6496_v40, %v10540_v24 }
 0x6b7   :  { %v6632_v28 = vsel %vm6631_vm5, %v6630_v46, %v6625_v13 }
 0x6c3   :  { %v6511_v3 = vpop.xlane.xlu0 %6510 }
 0x6c4   :  { %v6654_v48 = vrot.slane %v6511_v3, %v10545_v18 }
 0x6c5   :  { %v6508_v61 = vpop.xlane.xlu1 %6507 }
 0x6c6   :  { %v6650_v30 = vrot.slane %v6508_v61, %v10540_v24 }
 0x6c7   :  { %v6505_v58 = vpop.xlane.xlu0 %6504 }
 0x6c8   :  { %v6644_v23 = vrot.slane %v6505_v58, %v10549_v42  ;;  %v6655_v44 = vsel %vm6631_vm5, %v6654_v48, %v6650_v30 }
 0x6c9   :  { %v6514_v43 = vpop.xlane.xlu1 %6513 }
 0x6ca   :  { %v6659_v33 = vrot.slane %v6514_v43, %v10552_v17 }
 0x6cb   :  { %v6502_v15 = vpop.xlane.xlu0 %6501 }
 0x6cc   :  { %v6637_v14 = vrot.slane %v6502_v15, %v10552_v17  ;;  %v6660_v16 = vsel %vm6638_vm7, %v6659_v33, %v6655_v44 }
 0x6ce   :  { %v6639_v4 = vsel %vm6638_vm7, %v6637_v14, %v6632_v28 }
 0x6cf   :  { %v6517_v27 = vpop.xlane.xlu0 %6516  ;;  %v6646_v55 = vsel %vm6645_vm6, %v6644_v23, %v6639_v4 }
 0x6d0   :  { %v6664_v40 = vrot.slane %v6517_v27, %v10549_v42  ;;  %v6843_v52 = vmul.f32 %v6646_v55, %v10391_v50  ;;  %v6844_v34 = vmul.f32 %v10388_v20, %v6646_v55  ;;  %v6845_v3 = vmul.f32 %v6646_v55, %v10408_v57  ;;  %v6520_v13 = vpop.xlane.xlu1 %6519 }
 0x6d1   :  { %v6846_v6 = vmul.f32 %v10398_v49, %v6646_v55  ;;  %v6669_v33 = vrot.slane %v6520_v13, %v10540_v24 }
 0x6d2   :  { %v6875_v47 = vsel %vm511_vm0, %v6843_v52, 0.0  ;;  %v6878_v61 = vsel %vm511_vm0, %v6844_v34, 0.0  ;;  %v6665_v38 = vsel %vm6645_vm6, %v6664_v40, %v6660_v16  ;;  %v6881_v50 = vsel %vm511_vm0, %v6845_v3, 0.0 }
 0x6d3   :  { %v6523_v58 = vpop.xlane.xlu0 %6522  ;;  %6876 = vadd.xlane.f32.xlu1 %v6875_v47  ;;  %6879 = vadd.xlane.f32.xlu0 %v6878_v61  ;;  %v6884_v20 = vsel %vm511_vm0, %v6846_v6, 0.0  ;;  %v6847_v43 = vmul.f32 %v6665_v38, %v10403_v19  ;;  %v6848_v46 = vmul.f32 %v10400_v45, %v6665_v38  ;;  %v6849_v28 = vmul.f32 %v6665_v38, %v10413_v53 }
 0x6d4   :  { %v6673_v49 = vrot.slane %v6523_v58, %v10545_v18  ;;  %v6850_v23 = vmul.f32 %v10410_v9, %v6665_v38 }
 0x6d5   :  { %v6887_v30 = vsel %vm511_vm0, %v6847_v43, 0.0  ;;  %v6890_v14 = vsel %vm511_vm0, %v6848_v46, 0.0  ;;  %v6893_v53 = vsel %vm511_vm0, %v6849_v28, 0.0 }
 0x6d6   :  { %v6674_v4 = vsel %vm6631_vm5, %v6673_v49, %v6669_v33  ;;  %v6896_v9 = vsel %vm511_vm0, %v6850_v23, 0.0 }
 0x6d7   :  { %v6535_v15 = vpop.xlane.xlu0 %6534  ;;  %6882 = vadd.xlane.f32.xlu1 %v6881_v50  ;;  %6885 = vadd.xlane.f32.xlu0 %v6884_v20 }
 0x6d8   :  { %v6532_v57 = vpop.xlane.xlu1 %6531  ;;  %v6692_v55 = vrot.slane %v6535_v15, %v10545_v18 }
 0x6d9   :  { %v6688_v44 = vrot.slane %v6532_v57, %v10540_v24 }
 0x6db   :  { %v6529_v48 = vpop.xlane.xlu0 %6528  ;;  %6888 = vadd.xlane.f32.xlu1 %v6887_v30  ;;  %6891 = vadd.xlane.f32.xlu0 %v6890_v14  ;;  %v6693_v38 = vsel %vm6631_vm5, %v6692_v55, %v6688_v44 }
 0x6dc   :  { %v6683_v45 = vrot.slane %v6529_v48, %v10549_v42  ;;  %v6526_v19 = vpop.xlane.xlu1 %6525 }
 0x6dd   :  { %v6678_v27 = vrot.slane %v6526_v19, %v10552_v17 }
 0x6df   :  { %v6679_v40 = vsel %vm6638_vm7, %v6678_v27, %v6674_v4  ;;  %v6541_v52 = vpop.xlane.xlu0 %6540  ;;  %6894 = vadd.xlane.f32.xlu1 %v6893_v53  ;;  %6897 = vadd.xlane.f32.xlu0 %v6896_v9 }
 0x6e0   :  { %v6702_v34 = vrot.slane %v6541_v52, %v10549_v42  ;;  %v6538_v16 = vpop.xlane.xlu1 %6537  ;;  %v6684_v47 = vsel %vm6645_vm6, %v6683_v45, %v6679_v40 }
 0x6e1   :  { %v6697_v61 = vrot.slane %v6538_v16, %v10552_v17  ;;  %v6851_v3 = vmul.f32 %v6684_v47, %v10424_v22  ;;  %v6852_v6 = vmul.f32 %v10422_v11, %v6684_v47  ;;  %v6853_v58 = vmul.f32 %v6684_v47, %v10437_v10 }
 0x6e2   :  { %v6854_v43 = vmul.f32 %v10430_v25, %v6684_v47 }
 0x6e3   :  { %v6698_v13 = vsel %vm6638_vm7, %v6697_v61, %v6693_v38  ;;  %v6899_v50 = vsel %vm511_vm0, %v6851_v3, 0.0  ;;  %v6902_v20 = vsel %vm511_vm0, %v6852_v6, 0.0  ;;  %v6905_v22 = vsel %vm511_vm0, %v6853_v58, 0.0 }
 0x6e4   :  { %6900 = vadd.xlane.f32.xlu1 %v6899_v50  ;;  %6903 = vadd.xlane.f32.xlu0 %v6902_v20  ;;  %v6703_v46 = vsel %vm6645_vm6, %v6702_v34, %v6698_v13  ;;  %v6908_v11 = vsel %vm511_vm0, %v6854_v43, 0.0 }
 0x6e5   :  { %v6855_v15 = vmul.f32 %v6703_v46, %v10439_v35  ;;  %v6856_v10 = vmul.f32 %v10433_v8, %v6703_v46  ;;  %v6857_v25 = vmul.f32 %v6703_v46, %v10448_v56  ;;  %v6858_v30 = vmul.f32 %v10443_v26, %v6703_v46 }
 0x6e7   :  { %v6911_v57 = vsel %vm511_vm0, %v6855_v15, 0.0  ;;  %v6914_v49 = vsel %vm511_vm0, %v6856_v10, 0.0  ;;  %v6917_v14 = vsel %vm511_vm0, %v6857_v25, 0.0  ;;  %v6920_v28 = vsel %vm511_vm0, %v6858_v30, 0.0 }
 0x6e8   :  { %6906 = vadd.xlane.f32.xlu1 %v6905_v22  ;;  %6909 = vadd.xlane.f32.xlu0 %v6908_v11 }
 0x6ec   :  { %6912 = vadd.xlane.f32.xlu1 %v6911_v57  ;;  %6915 = vadd.xlane.f32.xlu0 %v6914_v49 }
 0x6f0   :  { %6918 = vadd.xlane.f32.xlu1 %v6917_v14  ;;  %6921 = vadd.xlane.f32.xlu0 %v6920_v28 }
 0x6f2   :  { %v6547_v35 = vpop.xlane.xlu0 %6546 }
 0x6f3   :  { %v6711_v19 = vrot.slane %v6547_v35, %v10545_v18 }
 0x6f4   :  { %v6544_v8 = vpop.xlane.xlu1 %6543 }
 0x6f5   :  { %v6707_v48 = vrot.slane %v6544_v8, %v10540_v24 }
 0x6f6   :  { %v6559_v23 = vpop.xlane.xlu0 %6558 }
 0x6f7   :  { %v6712_v4 = vsel %vm6631_vm5, %v6711_v19, %v6707_v48  ;;  %v6730_v9 = vrot.slane %v6559_v23, %v10545_v18 }
 0x6f8   :  { %v6556_v33 = vpop.xlane.xlu1 %6555 }
 0x6f9   :  { %v6726_v27 = vrot.slane %v6556_v33, %v10540_v24 }
 0x6fa   :  { %v6553_v45 = vpop.xlane.xlu0 %6552 }
 0x6fb   :  { %v6721_v55 = vrot.slane %v6553_v45, %v10549_v42  ;;  %v6731_v61 = vsel %vm6631_vm5, %v6730_v9, %v6726_v27 }
 0x6fc   :  { %v6550_v56 = vpop.xlane.xlu1 %6549 }
 0x6fd   :  { %v6716_v26 = vrot.slane %v6550_v56, %v10552_v17 }
 0x6fe   :  { %v6565_v53 = vpop.xlane.xlu0 %6564 }
 0x6ff   :  { %v6717_v44 = vsel %vm6638_vm7, %v6716_v26, %v6712_v4  ;;  %v6740_v3 = vrot.slane %v6565_v53, %v10549_v42 }
 0x700   :  { %v6562_v40 = vpop.xlane.xlu1 %6561  ;;  %v6722_v52 = vsel %vm6645_vm6, %v6721_v55, %v6717_v44 }
 0x701   :  { %v6735_v34 = vrot.slane %v6562_v40, %v10552_v17  ;;  %v6859_v16 = vmul.f32 %v6722_v52, %v10470_v54  ;;  %v6860_v47 = vmul.f32 %v10465_v7, %v6722_v52  ;;  %v6861_v6 = vmul.f32 %v6722_v52, %v10481_v41 }
 0x702   :  { %v6862_v50 = vmul.f32 %v10475_v36, %v6722_v52 }
 0x703   :  { %v6736_v38 = vsel %vm6638_vm7, %v6735_v34, %v6731_v61  ;;  %v6923_v58 = vsel %vm511_vm0, %v6859_v16, 0.0  ;;  %v6926_v13 = vsel %vm511_vm0, %v6860_v47, 0.0  ;;  %v6929_v7 = vsel %vm511_vm0, %v6861_v6, 0.0 }
 0x704   :  { %v6741_v20 = vsel %vm6645_vm6, %v6740_v3, %v6736_v38  ;;  %6924 = vadd.xlane.f32.xlu1 %v6923_v58  ;;  %6927 = vadd.xlane.f32.xlu0 %v6926_v13  ;;  %v6932_v54 = vsel %vm511_vm0, %v6862_v50, 0.0 }
 0x705   :  { %v6863_v43 = vmul.f32 %v6741_v20, %v10468_v60  ;;  %v6864_v41 = vmul.f32 %v10462_v63, %v6741_v20  ;;  %v6865_v36 = vmul.f32 %v6741_v20, %v10487_v0  ;;  %v6866_v15 = vmul.f32 %v10479_v5, %v6741_v20 }
 0x707   :  { %v6935_v22 = vsel %vm511_vm0, %v6863_v43, 0.0  ;;  %v6938_v11 = vsel %vm511_vm0, %v6864_v41, 0.0  ;;  %v6941_v57 = vsel %vm511_vm0, %v6865_v36, 0.0  ;;  %v6944_v60 = vsel %vm511_vm0, %v6866_v15, 0.0 }
 0x708   :  { %6930 = vadd.xlane.f32.xlu1 %v6929_v7  ;;  %6933 = vadd.xlane.f32.xlu0 %v6932_v54 }
 0x709   :  { %v6571_v10 = vpop.xlane.xlu0 %6570 }
 0x70a   :  { %v6749_v30 = vrot.slane %v6571_v10, %v10545_v18 }
 0x70b   :  { %v6568_v46 = vpop.xlane.xlu1 %6567 }
 0x70c   :  { %6936 = vadd.xlane.f32.xlu1 %v6935_v22  ;;  %6939 = vadd.xlane.f32.xlu0 %v6938_v11  ;;  %v6745_v25 = vrot.slane %v6568_v46, %v10540_v24 }
 0x70e   :  { %v6750_v5 = vsel %vm6631_vm5, %v6749_v30, %v6745_v25 }
 0x70f   :  { %v6583_v49 = vpop.xlane.xlu1 %6582 }
 0x710   :  { %6942 = vadd.xlane.f32.xlu1 %v6941_v57  ;;  %6945 = vadd.xlane.f32.xlu0 %v6944_v60  ;;  %v6580_v63 = vpop.xlane.xlu0 %6579  ;;  %v6768_v35 = vrot.slane %v6583_v49, %v10545_v18 }
 0x711   :  { %v6764_v8 = vrot.slane %v6580_v63, %v10540_v24 }
 0x713   :  { %v6574_v14 = vpop.xlane.xlu1 %6573  ;;  %v6769_v27 = vsel %vm6631_vm5, %v6768_v35, %v6764_v8 }
 0x714   :  { %v6754_v0 = vrot.slane %v6574_v14, %v10552_v17  ;;  %v6577_v28 = vpop.xlane.xlu0 %6576 }
 0x715   :  { %v6759_v23 = vrot.slane %v6577_v28, %v10549_v42 }
 0x716   :  { %v6755_v33 = vsel %vm6638_vm7, %v6754_v0, %v6750_v5 }
 0x717   :  { %v6760_v48 = vsel %vm6645_vm6, %v6759_v23, %v6755_v33  ;;  %v6586_v45 = vpop.xlane.xlu1 %6585 }
 0x718   :  { %v6773_v19 = vrot.slane %v6586_v45, %v10552_v17  ;;  %v6589_v56 = vpop.xlane.xlu0 %6588  ;;  %v6868_v26 = vmul.f32 %v10496_v37, %v6760_v48  ;;  %v6867_v4 = vmul.f32 %v6760_v48, %v10499_v21  ;;  %v6870_v44 = vmul.f32 %v10504_v62, %v6760_v48 }
 0x719   :  { %v6778_v55 = vrot.slane %v6589_v56, %v10549_v42  ;;  %v6869_v52 = vmul.f32 %v6760_v48, %v10510_v32 }
 0x71a   :  { %v6774_v53 = vsel %vm6638_vm7, %v6773_v19, %v6769_v27  ;;  %v6950_v9 = vsel %vm511_vm0, %v6868_v26, 0.0  ;;  %v6947_v40 = vsel %vm511_vm0, %v6867_v4, 0.0  ;;  %v6956_v37 = vsel %vm511_vm0, %v6870_v44, 0.0 }
 0x71b   :  { %v6779_v34 = vsel %vm6645_vm6, %v6778_v55, %v6774_v53  ;;  %6951 = vadd.xlane.f32.xlu0 %v6950_v9  ;;  %6948 = vadd.xlane.f32.xlu1 %v6947_v40  ;;  %v6953_v21 = vsel %vm511_vm0, %v6869_v52, 0.0 }
 0x71c   :  { %v6872_v16 = vmul.f32 %v10506_v29, %v6779_v34  ;;  %v6871_v62 = vmul.f32 %v6779_v34, %v10512_v59  ;;  %v6874_v32 = vmul.f32 %v10516_v2, %v6779_v34  ;;  %v6873_v3 = vmul.f32 %v6779_v34, %v10521_v51 }
 0x71e   :  { %v6962_v47 = vsel %vm511_vm0, %v6872_v16, 0.0  ;;  %v6959_v61 = vsel %vm511_vm0, %v6871_v62, 0.0  ;;  %v6968_v6 = vsel %vm511_vm0, %v6874_v32, 0.0  ;;  %v6965_v38 = vsel %vm511_vm0, %v6873_v3, 0.0 }
 0x71f   :  { %6957 = vadd.xlane.f32.xlu0 %v6956_v37  ;;  %6954 = vadd.xlane.f32.xlu1 %v6953_v21 }
 0x723   :  { %6963 = vadd.xlane.f32.xlu0 %v6962_v47  ;;  %6960 = vadd.xlane.f32.xlu1 %v6959_v61 }
 0x727   :  { %6969 = vadd.xlane.f32.xlu0 %v6968_v6  ;;  %6966 = vadd.xlane.f32.xlu1 %v6965_v38 }
 0x75c   :  { %v6877_v29 = vpop.xlane.xlu1 %6876  ;;  %v6880_v59 = vpop.xlane.xlu0 %6879 }
 0x75d   :  { %v6990_v58 = vadd.f32 %v10529_v31, %v6877_v29  ;;  %v6991_v13 = vadd.f32 %v10533_v12, %v6880_v59 }
 0x75f   :  { %7055 = vperm.xlu0 %8822, %v6990_v58   ;;  %7058 = vperm.xlu1 %8823, %v6991_v13  }
 0x760   :  { %v6883_v50 = vpop.xlane.xlu1 %6882  ;;  %v6886_v2 = vpop.xlane.xlu0 %6885 }
 0x761   :  { %v6992_v51 = vadd.f32 %v10531_v39, %v6883_v50  ;;  %v6993_v20 = vadd.f32 %v10535_v1, %v6886_v2 }
 0x763   :  { %7061 = vperm.xlu1 %8823, %v6992_v51   ;;  %7064 = vperm.xlu0 %8822, %v6993_v20  }
 0x764   :  { %v6889_v7 = vpop.xlane.xlu1 %6888  ;;  %v6892_v54 = vpop.xlane.xlu0 %6891 }
 0x765   :  { %v6994_v43 = vadd.f32 %v10529_v31, %v6889_v7  ;;  %v6995_v41 = vadd.f32 %v10533_v12, %v6892_v54 }
 0x767   :  { %7067 = vperm.xlu1 %8823, %v6994_v43   ;;  %7070 = vperm.xlu0 %8822, %v6995_v41  }
 0x768   :  { %v6895_v46 = vpop.xlane.xlu1 %6894  ;;  %v6898_v22 = vpop.xlane.xlu0 %6897 }
 0x769   :  { %v6996_v11 = vadd.f32 %v10531_v39, %v6895_v46  ;;  %v6997_v36 = vadd.f32 %v10535_v1, %v6898_v22 }
 0x76b   :  { %7073 = vperm.xlu1 %8823, %v6996_v11   ;;  %7076 = vperm.xlu0 %8822, %v6997_v36  }
 0x76d   :  { %v6901_v15 = vpop.xlane.xlu1 %6900  ;;  %v6904_v10 = vpop.xlane.xlu0 %6903 }
 0x76e   :  { %v6998_v57 = vadd.f32 %v10529_v31, %v6901_v15  ;;  %v6999_v49 = vadd.f32 %v10533_v12, %v6904_v10 }
 0x770   :  { %7079 = vperm.xlu1 %8823, %v6998_v57   ;;  %7082 = vperm.xlu0 %8822, %v6999_v49  }
 0x771   :  { %v6907_v60 = vpop.xlane.xlu1 %6906  ;;  %v6910_v63 = vpop.xlane.xlu0 %6909 }
 0x772   :  { %v7000_v25 = vadd.f32 %v10531_v39, %v6907_v60  ;;  %v7001_v30 = vadd.f32 %v10535_v1, %v6910_v63 }
 0x774   :  { %7085 = vperm.xlu1 %8823, %v7000_v25   ;;  %7088 = vperm.xlu0 %8822, %v7001_v30  }
 0x775   :  { %v6913_v14 = vpop.xlane.xlu1 %6912  ;;  %v6916_v0 = vpop.xlane.xlu0 %6915 }
 0x776   :  { %v7002_v28 = vadd.f32 %v10529_v31, %v6913_v14  ;;  %v7003_v5 = vadd.f32 %v10533_v12, %v6916_v0 }
 0x778   :  { %7091 = vperm.xlu1 %8823, %v7002_v28   ;;  %7094 = vperm.xlu0 %8822, %v7003_v5  }
 0x779   :  { %v6919_v35 = vpop.xlane.xlu1 %6918  ;;  %v6922_v8 = vpop.xlane.xlu0 %6921 }
 0x77a   :  { %v7004_v23 = vadd.f32 %v10531_v39, %v6919_v35  ;;  %v7005_v33 = vadd.f32 %v10535_v1, %v6922_v8 }
 0x77c   :  { %7097 = vperm.xlu1 %8823, %v7004_v23   ;;  %7100 = vperm.xlu0 %8822, %v7005_v33  }
 0x78d   :  { %v6925_v48 = vpop.xlane.xlu1 %6924  ;;  %v6928_v45 = vpop.xlane.xlu0 %6927 }
 0x78e   :  { %v7006_v19 = vadd.f32 %v10529_v31, %v6925_v48  ;;  %v7007_v56 = vadd.f32 %v10533_v12, %v6928_v45 }
 0x790   :  { %7103 = vperm.xlu0 %8822, %v7006_v19   ;;  %7106 = vperm.xlu1 %8823, %v7007_v56  }
 0x791   :  { %v6931_v26 = vpop.xlane.xlu1 %6930  ;;  %v6934_v4 = vpop.xlane.xlu0 %6933 }
 0x792   :  { %v7008_v27 = vadd.f32 %v10531_v39, %v6931_v26  ;;  %v7009_v55 = vadd.f32 %v10535_v1, %v6934_v4 }
 0x794   :  { %7109 = vperm.xlu1 %8823, %v7008_v27   ;;  %7112 = vperm.xlu0 %8822, %v7009_v55  }
 0x795   :  { %v6937_v44 = vpop.xlane.xlu1 %6936  ;;  %v6940_v53 = vpop.xlane.xlu0 %6939 }
 0x796   :  { %v7010_v9 = vadd.f32 %v10529_v31, %v6937_v44  ;;  %v7011_v40 = vadd.f32 %v10533_v12, %v6940_v53 }
 0x798   :  { %7115 = vperm.xlu0 %8822, %v7010_v9   ;;  %7118 = vperm.xlu1 %8823, %v7011_v40  }
 0x799   :  { %v6943_v52 = vpop.xlane.xlu1 %6942  ;;  %v6946_v34 = vpop.xlane.xlu0 %6945 }
 0x79a   :  { %v7012_v37 = vadd.f32 %v10531_v39, %v6943_v52  ;;  %v7013_v21 = vadd.f32 %v10535_v1, %v6946_v34 }
 0x79c   :  { %7121 = vperm.xlu1 %8823, %v7012_v37   ;;  %7124 = vperm.xlu0 %8822, %v7013_v21  }
 0x7a4   :  { %v6949_v16 = vpop.xlane.xlu1 %6948  ;;  %v6952_v62 = vpop.xlane.xlu0 %6951 }
 0x7a5   :  { %v7014_v47 = vadd.f32 %v10529_v31, %v6949_v16  ;;  %v7015_v61 = vadd.f32 %v10533_v12, %v6952_v62 }
 0x7a7   :  { %7127 = vperm.xlu0 %8822, %v7014_v47   ;;  %7130 = vperm.xlu1 %8823, %v7015_v61  }
 0x7a8   :  { %v6955_v32 = vpop.xlane.xlu1 %6954  ;;  %v6958_v3 = vpop.xlane.xlu0 %6957 }
 0x7a9   :  { %v7016_v6 = vadd.f32 %v10531_v39, %v6955_v32  ;;  %v7017_v38 = vadd.f32 %v10535_v1, %v6958_v3 }
 0x7ab   :  { %7133 = vperm.xlu1 %8823, %v7016_v6   ;;  %7136 = vperm.xlu0 %8822, %v7017_v38  }
 0x7ac   :  { %v6961_v29 = vpop.xlane.xlu1 %6960  ;;  %v6964_v59 = vpop.xlane.xlu0 %6963 }
 0x7ad   :  { %v7018_v58 = vadd.f32 %v10529_v31, %v6961_v29  ;;  %v7019_v13 = vadd.f32 %v10533_v12, %v6964_v59 }
 0x7af   :  { %7139 = vperm.xlu0 %8822, %v7018_v58   ;;  %7142 = vperm.xlu1 %8823, %v7019_v13  }
 0x7b0   :  { %v6967_v50 = vpop.xlane.xlu1 %6966  ;;  %v6970_v2 = vpop.xlane.xlu0 %6969 }
 0x7b1   :  { %v7020_v51 = vadd.f32 %v10531_v39, %v6967_v50  ;;  %v7021_v20 = vadd.f32 %v10535_v1, %v6970_v2 }
 0x7b3   :  { %7145 = vperm.xlu1 %8823, %v7020_v51   ;;  %7148 = vperm.xlu0 %8822, %v7021_v20  }
 0x7da   :  { %v7059_v7 = vpop.permute.xlu1 %7058  ;;  %v7056_v54 = vpop.permute.xlu0 %7055 }
 0x7db   :  { %v7157_v28 = vrot.slane %v7059_v7, %v10545_v18  ;;  %v7153_v5 = vrot.slane %v7056_v54, %v10540_v24 }
 0x7dd   :  { %v7158_v19 = vsel %vm6631_vm5, %v7157_v28, %v7153_v5 }
 0x7de   :  { %v7062_v43 = vpop.permute.xlu1 %7061  ;;  %v7065_v41 = vpop.permute.xlu0 %7064 }
 0x7df   :  { %v7162_v23 = vrot.slane %v7062_v43, %v10552_v17  ;;  %v7167_v44 = vrot.slane %v7065_v41, %v10549_v42 }
 0x7e1   :  { %v7163_v55 = vsel %vm6638_vm7, %v7162_v23, %v7158_v19 }
 0x7e2   :  { %v7068_v46 = vpop.permute.xlu1 %7067  ;;  %v7071_v22 = vpop.permute.xlu0 %7070  ;;  %v7168_v7 = vsel %vm6645_vm6, %v7167_v44, %v7163_v55 }
 0x7e3   :  { %v7172_v33 = vrot.slane %v7068_v46, %v10540_v24  ;;  %v7176_v48 = vrot.slane %v7071_v22, %v10545_v18 }
 0x7e5   :  { %v7177_v53 = vsel %vm6631_vm5, %v7176_v48, %v7172_v33 }
 0x7e6   :  { %v7074_v11 = vpop.permute.xlu1 %7073  ;;  %v7077_v31 = vpop.permute.xlu0 %7076 }
 0x7e7   :  { %v7181_v45 = vrot.slane %v7074_v11, %v10552_v17  ;;  %v7186_v9 = vrot.slane %v7077_v31, %v10549_v42 }
 0x7e9   :  { %v7182_v37 = vsel %vm6638_vm7, %v7181_v45, %v7177_v53 }
 0x7ea   :  { %v7187_v46 = vsel %vm6645_vm6, %v7186_v9, %v7182_v37 }
 0x7eb   :  { %v7080_v36 = vpop.permute.xlu1 %7079  ;;  %v7083_v12 = vpop.permute.xlu0 %7082 }
 0x7ec   :  { %v7191_v56 = vrot.slane %v7080_v36, %v10540_v24  ;;  %v7195_v26 = vrot.slane %v7083_v12, %v10545_v18 }
 0x7ee   :  { %v7196_v47 = vsel %vm6631_vm5, %v7195_v26, %v7191_v56 }
 0x7ef   :  { %v7086_v15 = vpop.permute.xlu1 %7085  ;;  %v10705_v10 = vpop.permute.xlu0 %7088 }
 0x7f0   :  { %v7200_v40 = vrot.slane %v7086_v15, %v10552_v17  ;;  %v7205_v29 = vrot.slane %v10705_v10, %v10549_v42 }
 0x7f2   :  { %v7201_v50 = vsel %vm6638_vm7, %v7200_v40, %v7196_v47 }
 0x7f3   :  { %v7092_v57 = vpop.permute.xlu1 %7091  ;;  %v7095_v49 = vpop.permute.xlu0 %7094  ;;  %v7206_v15 = vsel %vm6645_vm6, %v7205_v29, %v7201_v50 }
 0x7f4   :  { %v7210_v52 = vrot.slane %v7092_v57, %v10540_v24  ;;  %v7214_v34 = vrot.slane %v7095_v49, %v10545_v18 }
 0x7f6   :  { %v7215_v2 = vsel %vm6631_vm5, %v7214_v34, %v7210_v52 }
 0x7f7   :  { %v7098_v39 = vpop.permute.xlu1 %7097  ;;  %v10707_v60 = vpop.permute.xlu0 %7100 }
 0x7f8   :  { %v7219_v21 = vrot.slane %v7098_v39, %v10552_v17  ;;  %v7224_v51 = vrot.slane %v10707_v60, %v10549_v42 }
 0x7fa   :  { %v7220_v54 = vsel %vm6638_vm7, %v7219_v21, %v7215_v2 }
 0x7fb   :  { %v7225_v39 = vsel %vm6645_vm6, %v7224_v51, %v7220_v54 }
 0x80b   :  { %v7107_v1 = vpop.permute.xlu1 %7106  ;;  %v7104_v63 = vpop.permute.xlu0 %7103 }
 0x80c   :  { %v7233_v16 = vrot.slane %v7107_v1, %v10545_v18  ;;  %v7229_v62 = vrot.slane %v7104_v63, %v10540_v24 }
 0x80e   :  { %v7234_v43 = vsel %vm6631_vm5, %v7233_v16, %v7229_v62 }
 0x80f   :  { %v7110_v25 = vpop.permute.xlu1 %7109  ;;  %v10709_v30 = vpop.permute.xlu0 %7112 }
 0x810   :  { %v7238_v61 = vrot.slane %v7110_v25, %v10552_v17  ;;  %v7243_v41 = vrot.slane %v10709_v30, %v10549_v42  ;;  %v7302_v25 = vsel %vm6780_vm8, %v7187_v46, %v7168_v7 }
 0x812   :  { %v7239_v22 = vsel %vm6638_vm7, %v7238_v61, %v7234_v43 }
 0x813   :  { %v7119_v14 = vpop.permute.xlu1 %7118  ;;  %v7116_v0 = vpop.permute.xlu0 %7115  ;;  %v7244_v30 = vsel %vm6645_vm6, %v7243_v41, %v7239_v22 }
 0x814   :  { %v7252_v32 = vrot.slane %v7119_v14, %v10545_v18  ;;  %v7248_v3 = vrot.slane %v7116_v0, %v10540_v24  ;;  %v7303_v14 = vsel %vm6781_vm9, %v7206_v15, %v7302_v25 }
 0x816   :  { %v7253_v11 = vsel %vm6631_vm5, %v7252_v32, %v7248_v3 }
 0x817   :  { %v7122_v35 = vpop.permute.xlu1 %7121  ;;  %v10713_v8 = vpop.permute.xlu0 %7124 }
 0x818   :  { %v7257_v59 = vrot.slane %v7122_v35, %v10552_v17  ;;  %v7262_v31 = vrot.slane %v10713_v8, %v10549_v42  ;;  %v7304_v35 = vsel %vm6783_vm10, %v7225_v39, %v7303_v14 }
 0x819   :  { %v7305_v23 = vsel %vm6785_vm11, %v7244_v30, %v7304_v35 }
 0x81a   :  { %v7258_v10 = vsel %vm6638_vm7, %v7257_v59, %v7253_v11 }
 0x81b   :  { %v7263_v0 = vsel %vm6645_vm6, %v7262_v31, %v7258_v10 }
 0x81c   :  { %v7306_v48 = vsel %vm6787_vm12, %v7263_v0, %v7305_v23 }
 0x822   :  { %v7131_v4 = vpop.permute.xlu1 %7130  ;;  %v7128_v27 = vpop.permute.xlu0 %7127 }
 0x823   :  { %v7271_v58 = vrot.slane %v7131_v4, %v10545_v18  ;;  %v7267_v13 = vrot.slane %v7128_v27, %v10540_v24 }
 0x825   :  { %v7272_v57 = vsel %vm6631_vm5, %v7271_v58, %v7267_v13 }
 0x826   :  { %v7134_v6 = vpop.permute.xlu1 %7133  ;;  %v7137_v38 = vpop.permute.xlu0 %7136 }
 0x827   :  { %v7276_v20 = vrot.slane %v7134_v6, %v10552_v17  ;;  %v7281_v49 = vrot.slane %v7137_v38, %v10549_v42 }
 0x829   :  { %v7277_v60 = vsel %vm6638_vm7, %v7276_v20, %v7272_v57 }
 0x82a   :  { %v7143_v36 = vpop.permute.xlu1 %7142  ;;  %v7140_v12 = vpop.permute.xlu0 %7139  ;;  %v7282_v8 = vsel %vm6645_vm6, %v7281_v49, %v7277_v60 }
 0x82b   :  { %v7290_v1 = vrot.slane %v7143_v36, %v10545_v18  ;;  %v7286_v63 = vrot.slane %v7140_v12, %v10540_v24  ;;  %v7307_v56 = vsel %vm6789_vm13, %v7282_v8, %v7306_v48 }
 0x82d   :  { %v7291_v33 = vsel %vm6631_vm5, %v7290_v1, %v7286_v63 }
 0x82e   :  { %v7146_v28 = vpop.permute.xlu1 %7145  ;;  %v7149_v5 = vpop.permute.xlu0 %7148 }
 0x82f   :  { %v7295_v18 = vrot.slane %v7146_v28, %v10552_v17  ;;  %v7300_v24 = vrot.slane %v7149_v5, %v10549_v42 }
 0x831   :  { %v7296_v45 = vsel %vm6638_vm7, %v7295_v18, %v7291_v33 }
 0x832   :  { %v7301_v19 = vsel %vm6645_vm6, %v7300_v24, %v7296_v45 }
 0x833   :  { %v7308_v26 = vsel %vm6791_vm14, %v7301_v19, %v7307_v56 }
 0x834   :  { %7310 = vst.msk [vmem:[#allocation5] sm:$0xff] %vm511_vm0, %v7308_v26 }
 0x835   :  { %8856 = shalt.err (!%p8853_p9)
}
 0x836   :  { %7320 = dma.vmem_to_hbm [thread:$0]  %s7318_s25, 128, %s10784_s4, [#allocation4]  }
 0x837   :  { %8867 = dma.done.wait [#allocation4], 128  }
 0x838   :  { %8868 = vsyncadd [#allocation4], 4294967168 }
 0x839   :  { %7324 = vsyncpa [#allocation3], 1 }
 0x83a   :  { %7325 = vsyncpa [#allocation4], 1 }

</bundles_post_ra>
